<compile_context>
chip_gen: v7x
topology: tpu7x:2x2x1
jax: 0.10.0
libtpu: 0.0.40
codegen_flags: <defaults>
</compile_context>

<pallas_src>
from functools import partial

import jax
import jax.numpy as jnp
from jax import lax
from jax.experimental import pallas as pl
from jax.experimental.pallas import tpu as pltpu

NEG_SLOPE = 0.018
BN_EPS = 1e-5
LANE = 128  # channel padding target (lane width)


def _round_up(x, m):
    return ((x + m - 1) // m) * m


def _pick_row_tile(h, wd, cp_in, cp_out, row_tile):
    """Largest divisor of H whose tile fits a ~6 MiB VMEM working-set budget."""
    if row_tile is not None:
        th = max(1, min(int(row_tile), h))
    else:
        budget = 6 * 1024 * 1024
        per_row = ((wd + 2) * cp_in * 2 * 2   # bf16 input window, double-buffered
                   + wd * cp_out * 4 * 2      # f32 output tile, double-buffered
                   + wd * cp_out * 4)         # f32 accumulator
        th = max(1, min(h, budget // max(per_row, 1)))
    while h % th:
        th -= 1
    return th


# ---------------------------------------------------------------------------
# Pass 1: 3x3 conv (9 shifted tap-matmuls) + bias + LeakyReLU (+ tile stats)
# ---------------------------------------------------------------------------
def _conv_lrelu_kernel(xw_ref, w_ref, b_ref, *out_refs, th, wd, cp_in, cp_out,
                       with_stats):
    """One row tile.

    xw_ref: (1, th+2, wd+2, cp_in)  bf16  input window with 1-px halo
    w_ref:  (3, 3, cp_in, cp_out)   bf16  conv weight (HWIO, zero-padded)
    b_ref:  (1, cp_out)             f32   conv bias (zero-padded)
    out 0:  (1, th, wd, cp_out)           conv+bias+LeakyReLU output
    out 1:  (1, 2, cp_out)          f32   row0 = sum(z), row1 = sum(z*z)
    """
    z_ref = out_refs[0]
    acc = jnp.zeros((th * wd, cp_out), jnp.float32)
    for kh in range(3):
        for kw in range(3):
            xs = xw_ref[0, kh:kh + th, kw:kw + wd, :].reshape(th * wd, cp_in)
            acc += jnp.dot(xs, w_ref[kh, kw], preferred_element_type=jnp.float32)
    y = acc + b_ref[...]
    z = jnp.where(y > 0, y, jnp.float32(NEG_SLOPE) * y)
    z_ref[...] = z.reshape(1, th, wd, cp_out).astype(z_ref.dtype)

    if with_stats:
        st_ref = out_refs[1]
        s = jnp.sum(z, axis=0, keepdims=True)        # (1, cp_out)
        ss = jnp.sum(z * z, axis=0, keepdims=True)   # (1, cp_out)
        st_ref[...] = jnp.concatenate([s, ss], axis=0).reshape(1, 2, cp_out)


def _conv_lrelu_pass(x_win, w_bf16, b_pad, *, th, wd, cp_in, cp_out,
                     with_stats, out_dtype):
    g = x_win.shape[0]
    kern = partial(_conv_lrelu_kernel, th=th, wd=wd, cp_in=cp_in,
                   cp_out=cp_out, with_stats=with_stats)
    z_shape = jax.ShapeDtypeStruct((g, th, wd, cp_out), out_dtype)
    z_spec = pl.BlockSpec((1, th, wd, cp_out), lambda i: (i, 0, 0, 0))
    if with_stats:
        out_shape = (z_shape, jax.ShapeDtypeStruct((g, 2, cp_out), jnp.float32))
        out_specs = (z_spec, pl.BlockSpec((1, 2, cp_out), lambda i: (i, 0, 0)))
    else:
        out_shape = z_shape
        out_specs = z_spec
    return pl.pallas_call(
        kern,
        out_shape=out_shape,
        grid=(g,),
        in_specs=[
            pl.BlockSpec((1, th + 2, wd + 2, cp_in), lambda i: (i, 0, 0, 0)),
            pl.BlockSpec((3, 3, cp_in, cp_out), lambda i: (0, 0, 0, 0)),
            pl.BlockSpec((1, cp_out), lambda i: (0, 0)),
        ],
        out_specs=out_specs,
        compiler_params=pltpu.CompilerParams(
            dimension_semantics=("parallel",),
            vmem_limit_bytes=48 * 1024 * 1024,
        ),
    )(x_win, w_bf16, b_pad)


# ---------------------------------------------------------------------------
# Pass 2: apply BatchNorm as per-channel affine  z * scale + shift
# ---------------------------------------------------------------------------
def _bn_apply_kernel(z_ref, scale_ref, shift_ref, o_ref):
    o_ref[...] = (z_ref[...] * scale_ref[0] + shift_ref[0]).astype(o_ref.dtype)


def _bn_apply_pass(z, scale, shift, *, th, wd, cp_out, out_dtype):
    g = z.shape[0]
    return pl.pallas_call(
        _bn_apply_kernel,
        out_shape=jax.ShapeDtypeStruct((g, th, wd, cp_out), out_dtype),
        grid=(g,),
        in_specs=[
            pl.BlockSpec((1, th, wd, cp_out), lambda i: (i, 0, 0, 0)),
            pl.BlockSpec((1, cp_out), lambda i: (0, 0)),
            pl.BlockSpec((1, cp_out), lambda i: (0, 0)),
        ],
        out_specs=pl.BlockSpec((1, th, wd, cp_out), lambda i: (i, 0, 0, 0)),
        compiler_params=pltpu.CompilerParams(
            dimension_semantics=("parallel",),
            vmem_limit_bytes=48 * 1024 * 1024,
        ),
    )(z, scale, shift)


def conv_lrelu_bn_block(x, w_hwio, bias, gamma, beta, *, use_bn, row_tile=None,
                        out_dtype=jnp.float32):
    """One block: Conv2d(3x3, pad=1) -> LeakyReLU -> [BatchNorm2d(train)].

    `x` is NHWC; its channel dim may already be lane-padded (extra channels
    are zero).  Returns an NHWC activation with channels padded to 128.
    """
    n, h, wd, cx = x.shape
    _, _, cin, cout = w_hwio.shape
    cp_in = _round_up(max(cx, cin), LANE)
    cp_out = _round_up(cout, LANE)

    th = _pick_row_tile(h, wd, cp_in, cp_out, row_tile)
    nht = h // th
    g = n * nht

    # Lane-dense (zero) channel padding for operands.
    if cx < cp_in:
        x = jnp.pad(x, ((0, 0), (0, 0), (0, 0), (0, cp_in - cx)))
    w_p = jnp.zeros((3, 3, cp_in, cp_out), jnp.float32).at[:, :, :cin, :cout].set(w_hwio)
    b_p = jnp.zeros((1, cp_out), jnp.float32).at[0, :cout].set(bias)

    # Spatial zero-pad + (if needed) overlapping row-tile windows (1-row halo).
    x_sp = jnp.pad(x, ((0, 0), (1, 1), (1, 1), (0, 0))).astype(jnp.bfloat16)
    if nht == 1:
        x_win = x_sp                                           # no duplication
    else:
        wins = [x_sp[:, i * th:i * th + th + 2] for i in range(nht)]
        x_win = jnp.stack(wins, axis=1).reshape(g, th + 2, wd + 2, cp_in)
    w_bf = w_p.astype(jnp.bfloat16)

    if use_bn:
        # Conv output stays f32 so BN statistics/normalization keep accuracy.
        z, st = _conv_lrelu_pass(x_win, w_bf, b_p, th=th, wd=wd, cp_in=cp_in,
                                 cp_out=cp_out, with_stats=True,
                                 out_dtype=jnp.float32)
        # Finish the per-channel reduction over the FULL (N,H,W) extent.
        count = jnp.float32(n * h * wd)
        s = jnp.sum(st[:, 0, :], axis=0)
        ss = jnp.sum(st[:, 1, :], axis=0)
        mean = s / count
        var = jnp.maximum(ss / count - mean * mean, 0.0)   # biased variance
        g_p = jnp.zeros((cp_out,), jnp.float32).at[:cout].set(gamma)
        beta_p = jnp.zeros((cp_out,), jnp.float32).at[:cout].set(beta)
        scale = g_p / jnp.sqrt(var + jnp.float32(BN_EPS))
        shift = beta_p - mean * scale
        out = _bn_apply_pass(z, scale.reshape(1, cp_out), shift.reshape(1, cp_out),
                             th=th, wd=wd, cp_out=cp_out, out_dtype=out_dtype)
    else:
        out = _conv_lrelu_pass(x_win, w_bf, b_p, th=th, wd=wd, cp_in=cp_in,
                               cp_out=cp_out, with_stats=False,
                               out_dtype=out_dtype)

    return out.reshape(n, h, wd, cp_out)


def conv_block_forward(x_nhwc, params, *, batch_norm=True, row_tile=None):
    """Apply num_blocks of (conv + leaky_relu [+ bn]) sequentially."""
    y = x_nhwc
    nb = len(params)
    for bi, (w_hwio, b, gamma, beta) in enumerate(params):
        last = bi == nb - 1
        # Intermediate activations are written back as bf16 (same rounding the
        # next conv would apply anyway); the final block output stays f32.
        y = conv_lrelu_bn_block(
            y, w_hwio, b, gamma, beta, use_bn=batch_norm, row_tile=row_tile,
            out_dtype=jnp.float32 if last else jnp.bfloat16)
    cout = params[-1][0].shape[-1]
    return y[..., :cout]   # drop lane padding only at the very end


def init_params(key, in_channels, out_channels, num_blocks):
    """Deterministic parameter init (synthetic; mirrors the module's shapes)."""
    params = []
    for i in range(num_blocks):
        cin = in_channels if i == 0 else out_channels
        key, kw, kb = jax.random.split(key, 3)
        w = jax.random.normal(kw, (3, 3, cin, out_channels), jnp.float32) * 0.1  # HWIO
        b = jax.random.normal(kb, (out_channels,), jnp.float32) * 0.05
        gamma = jnp.ones((out_channels,), jnp.float32)   # PyTorch BN default
        beta = jnp.zeros((out_channels,), jnp.float32)
        params.append((w, b, gamma, beta))
    return params


def _reference_forward(x_nhwc, params, *, batch_norm=True):
    """Pure-JAX reference (bf16 conv operands, f32 accumulation / BN)."""
    y = x_nhwc
    for (w, b, gamma, beta) in params:
        y = lax.conv_general_dilated(
            y.astype(jnp.bfloat16), w.astype(jnp.bfloat16),
            window_strides=(1, 1), padding="SAME",
            dimension_numbers=("NHWC", "HWIO", "NHWC"),
            preferred_element_type=jnp.float32)
        y = y + b
        y = jnp.where(y > 0, y, NEG_SLOPE * y)
        if batch_norm:
            mean = jnp.mean(y, axis=(0, 1, 2), keepdims=True)
            var = jnp.mean((y - mean) ** 2, axis=(0, 1, 2), keepdims=True)
            y = (y - mean) / jnp.sqrt(var + BN_EPS) * gamma + beta
    return y


if __name__ == "__main__":
    key = jax.random.PRNGKey(0)
    key, kx = jax.random.split(key)

    # Module config (small, consistent with the forward pass).
    in_channels, out_channels, num_blocks = 4, 8, 2
    batch, height, width = 2, 16, 16

    # PyTorch-style NCHW input; convert to NHWC for the TPU kernels.
    x_nchw = jax.random.normal(kx, (batch, in_channels, height, width), jnp.float32)
    x_nhwc = jnp.transpose(x_nchw, (0, 2, 3, 1))

    params = init_params(key, in_channels, out_channels, num_blocks)

    fwd = jax.jit(conv_block_forward, static_argnames=("batch_norm", "row_tile"))

    out = jax.block_until_ready(fwd(x_nhwc, params, batch_norm=True))
    ref = _reference_forward(x_nhwc, params, batch_norm=True)
    assert out.shape == (batch, height, width, out_channels)
    assert jnp.allclose(out, ref, atol=2e-3, rtol=2e-3), \
        float(jnp.max(jnp.abs(out - ref)))

    out_nb = jax.block_until_ready(fwd(x_nhwc, params, batch_norm=False))
    ref_nb = _reference_forward(x_nhwc, params, batch_norm=False)
    assert jnp.allclose(out_nb, ref_nb, atol=2e-3, rtol=2e-3)

    print("KERNEL_OK")
</pallas_src>

<mosaic_0001>
module attributes {stable_mosaic.version = 11 : i64} {
  func.func @_bn_apply_kernel(%arg0: i32, %arg1: memref<1x16x16x128xf32, #tpu.memory_space<vmem>>, %arg2: memref<1x128xf32, #tpu.memory_space<vmem>>, %arg3: memref<1x128xf32, #tpu.memory_space<vmem>>, %arg4: memref<1x16x16x128xbf16, #tpu.memory_space<vmem>>) attributes {dimension_semantics = [#tpu.dimension_semantics<parallel>], iteration_bounds = array<i64: 2>, scalar_prefetch = 0 : i64, scratch_operands = 0 : i64, tpu.core_type = #tpu.core_type<tc>, window_params = [{transform_indices = @transform_0, window_bounds = array<i64: 1, 16, 16, 128>}, {pipeline_mode = #tpu.pipeline_mode<synchronous>, transform_indices = @transform_1, window_bounds = array<i64: 1, 128>}, {pipeline_mode = #tpu.pipeline_mode<synchronous>, transform_indices = @transform_2, window_bounds = array<i64: 1, 128>}, {transform_indices = @transform_3, window_bounds = array<i64: 1, 16, 16, 128>}]} {
    %c0 = arith.constant 0 : index
    %c0_0 = arith.constant 0 : index
    %c0_1 = arith.constant 0 : index
    %c0_2 = arith.constant 0 : index
    %0 = vector.load %arg1[%c0, %c0_0, %c0_1, %c0_2] : memref<1x16x16x128xf32, #tpu.memory_space<vmem>>, vector<1x16x16x128xf32>
    %c0_3 = arith.constant 0 : index
    %c0_4 = arith.constant 0 : index
    %1 = vector.load %arg2[%c0_3, %c0_4] : memref<1x128xf32, #tpu.memory_space<vmem>>, vector<1x128xf32>
    %2 = vector.shape_cast %1 : vector<1x128xf32> to vector<128xf32>
    %3 = vector.shape_cast %2 : vector<128xf32> to vector<1x1x1x128xf32>
    %4 = vector.broadcast %3 : vector<1x1x1x128xf32> to vector<1x16x16x128xf32>
    %5 = arith.mulf %0, %4 : vector<1x16x16x128xf32>
    %c0_5 = arith.constant 0 : index
    %c0_6 = arith.constant 0 : index
    %6 = vector.load %arg3[%c0_5, %c0_6] : memref<1x128xf32, #tpu.memory_space<vmem>>, vector<1x128xf32>
    %7 = vector.shape_cast %6 : vector<1x128xf32> to vector<128xf32>
    %8 = vector.shape_cast %7 : vector<128xf32> to vector<1x1x1x128xf32>
    %9 = vector.broadcast %8 : vector<1x1x1x128xf32> to vector<1x16x16x128xf32>
    %10 = arith.addf %5, %9 : vector<1x16x16x128xf32>
    %11 = arith.truncf %10 : vector<1x16x16x128xf32> to vector<1x16x16x128xbf16>
    %c0_7 = arith.constant 0 : index
    %c0_8 = arith.constant 0 : index
    %c0_9 = arith.constant 0 : index
    %c0_10 = arith.constant 0 : index
    %12 = vector.load %arg4[%c0_7, %c0_8, %c0_9, %c0_10] : memref<1x16x16x128xbf16, #tpu.memory_space<vmem>>, vector<1x16x16x128xbf16>
    tpu.vector_store %arg4[%c0_7, %c0_8, %c0_9, %c0_10], %11 {strides = array<i32>} : memref<1x16x16x128xbf16, #tpu.memory_space<vmem>>, vector<1x16x16x128xbf16>,
    return
  }
  func.func @transform_0(%arg0: i32) -> (i32, i32, i32, i32) {
    %c0_i32 = arith.constant 0 : i32
    %c0_i32_0 = arith.constant 0 : i32
    %c0_i32_1 = arith.constant 0 : i32
    %c0_i32_2 = arith.constant 0 : i32
    return %arg0, %c0_i32, %c0_i32_0, %c0_i32_1 : i32, i32, i32, i32
  }
  func.func @transform_1(%arg0: i32) -> (i32, i32) {
    %c0_i32 = arith.constant 0 : i32
    %c0_i32_0 = arith.constant 0 : i32
    %c0_i32_1 = arith.constant 0 : i32
    return %c0_i32, %c0_i32_0 : i32, i32
  }
  func.func @transform_2(%arg0: i32) -> (i32, i32) {
    %c0_i32 = arith.constant 0 : i32
    %c0_i32_0 = arith.constant 0 : i32
    %c0_i32_1 = arith.constant 0 : i32
    return %c0_i32, %c0_i32_0 : i32, i32
  }
  func.func @transform_3(%arg0: i32) -> (i32, i32, i32, i32) {
    %c0_i32 = arith.constant 0 : i32
    %c0_i32_0 = arith.constant 0 : i32
    %c0_i32_1 = arith.constant 0 : i32
    %c0_i32_2 = arith.constant 0 : i32
    return %arg0, %c0_i32, %c0_i32_0, %c0_i32_1 : i32, i32, i32, i32
  }
}

module attributes {stable_mosaic.version = 11 : i64} {
  func.func @_conv_lrelu_kernel(%arg0: i32, %arg1: memref<1x18x18x128xbf16, #tpu.memory_space<vmem>>, %arg2: memref<3x3x128x128xbf16, #tpu.memory_space<vmem>>, %arg3: memref<1x128xf32, #tpu.memory_space<vmem>>, %arg4: memref<1x16x16x128xf32, #tpu.memory_space<vmem>>, %arg5: memref<1x2x128xf32, #tpu.memory_space<vmem>>) attributes {dimension_semantics = [#tpu.dimension_semantics<parallel>], iteration_bounds = array<i64: 2>, scalar_prefetch = 0 : i64, scratch_operands = 0 : i64, tpu.core_type = #tpu.core_type<tc>, window_params = [{transform_indices = @transform_0, window_bounds = array<i64: 1, 18, 18, 128>}, {pipeline_mode = #tpu.pipeline_mode<synchronous>, transform_indices = @transform_1, window_bounds = array<i64: 3, 3, 128, 128>}, {pipeline_mode = #tpu.pipeline_mode<synchronous>, transform_indices = @transform_2, window_bounds = array<i64: 1, 128>}, {transform_indices = @transform_3, window_bounds = array<i64: 1, 16, 16, 128>}, {transform_indices = @transform_4, window_bounds = array<i64: 1, 2, 128>}]} {
    %cst = arith.constant 0.000000e+00 : f32
    %0 = vector.broadcast %cst : f32 to vector<256x128xf32>
    %c0 = arith.constant 0 : index
    %c0_0 = arith.constant 0 : index
    %c0_1 = arith.constant 0 : index
    %c0_2 = arith.constant 0 : index
    %1 = vector.load %arg1[%c0, %c0_0, %c0_1, %c0_2] : memref<1x18x18x128xbf16, #tpu.memory_space<vmem>>, vector<1x16x16x128xbf16>
    %2 = vector.shape_cast %1 : vector<1x16x16x128xbf16> to vector<16x16x128xbf16>
    %3 = vector.shape_cast %2 : vector<16x16x128xbf16> to vector<256x128xbf16>
    %c0_3 = arith.constant 0 : index
    %c0_4 = arith.constant 0 : index
    %c0_5 = arith.constant 0 : index
    %c0_6 = arith.constant 0 : index
    %4 = vector.load %arg2[%c0_3, %c0_4, %c0_5, %c0_6] : memref<3x3x128x128xbf16, #tpu.memory_space<vmem>>, vector<1x1x128x128xbf16>
    %5 = vector.shape_cast %4 : vector<1x1x128x128xbf16> to vector<128x128xbf16>
    %cst_7 = arith.constant dense<0.000000e+00> : vector<256x128xf32>
    %6 = tpu.matmul %3, %5, %cst_7 {dimension_numbers = #tpu.dot_dimension_numbers<[1], [0], [0], [1], [0, 0, 1, 1], [], []>} : vector<256x128xbf16>, vector<128x128xbf16>, vector<256x128xf32> -> vector<256x128xf32>
    %7 = arith.addf %0, %6 : vector<256x128xf32>
    %c0_8 = arith.constant 0 : index
    %c0_9 = arith.constant 0 : index
    %c1 = arith.constant 1 : index
    %c0_10 = arith.constant 0 : index
    %8 = vector.load %arg1[%c0_8, %c0_9, %c1, %c0_10] : memref<1x18x18x128xbf16, #tpu.memory_space<vmem>>, vector<1x16x16x128xbf16>
    %9 = vector.shape_cast %8 : vector<1x16x16x128xbf16> to vector<16x16x128xbf16>
    %10 = vector.shape_cast %9 : vector<16x16x128xbf16> to vector<256x128xbf16>
    %c0_11 = arith.constant 0 : index
    %c1_12 = arith.constant 1 : index
    %c0_13 = arith.constant 0 : index
    %c0_14 = arith.constant 0 : index
    %11 = vector.load %arg2[%c0_11, %c1_12, %c0_13, %c0_14] : memref<3x3x128x128xbf16, #tpu.memory_space<vmem>>, vector<1x1x128x128xbf16>
    %12 = vector.shape_cast %11 : vector<1x1x128x128xbf16> to vector<128x128xbf16>
    %cst_15 = arith.constant dense<0.000000e+00> : vector<256x128xf32>
    %13 = tpu.matmul %10, %12, %cst_15 {dimension_numbers = #tpu.dot_dimension_numbers<[1], [0], [0], [1], [0, 0, 1, 1], [], []>} : vector<256x128xbf16>, vector<128x128xbf16>, vector<256x128xf32> -> vector<256x128xf32>
    %14 = arith.addf %7, %13 : vector<256x128xf32>
    %c0_16 = arith.constant 0 : index
    %c0_17 = arith.constant 0 : index
    %c2 = arith.constant 2 : index
    %c0_18 = arith.constant 0 : index
    %15 = vector.load %arg1[%c0_16, %c0_17, %c2, %c0_18] : memref<1x18x18x128xbf16, #tpu.memory_space<vmem>>, vector<1x16x16x128xbf16>
    %16 = vector.shape_cast %15 : vector<1x16x16x128xbf16> to vector<16x16x128xbf16>
    %17 = vector.shape_cast %16 : vector<16x16x128xbf16> to vector<256x128xbf16>
    %c0_19 = arith.constant 0 : index
    %c2_20 = arith.constant 2 : index
    %c0_21 = arith.constant 0 : index
    %c0_22 = arith.constant 0 : index
    %18 = vector.load %arg2[%c0_19, %c2_20, %c0_21, %c0_22] : memref<3x3x128x128xbf16, #tpu.memory_space<vmem>>, vector<1x1x128x128xbf16>
    %19 = vector.shape_cast %18 : vector<1x1x128x128xbf16> to vector<128x128xbf16>
    %cst_23 = arith.constant dense<0.000000e+00> : vector<256x128xf32>
    %20 = tpu.matmul %17, %19, %cst_23 {dimension_numbers = #tpu.dot_dimension_numbers<[1], [0], [0], [1], [0, 0, 1, 1], [], []>} : vector<256x128xbf16>, vector<128x128xbf16>, vector<256x128xf32> -> vector<256x128xf32>
    %21 = arith.addf %14, %20 : vector<256x128xf32>
    %c0_24 = arith.constant 0 : index
    %c1_25 = arith.constant 1 : index
    %c0_26 = arith.constant 0 : index
    %c0_27 = arith.constant 0 : index
    %22 = vector.load %arg1[%c0_24, %c1_25, %c0_26, %c0_27] : memref<1x18x18x128xbf16, #tpu.memory_space<vmem>>, vector<1x16x16x128xbf16>
    %23 = vector.shape_cast %22 : vector<1x16x16x128xbf16> to vector<16x16x128xbf16>
    %24 = vector.shape_cast %23 : vector<16x16x128xbf16> to vector<256x128xbf16>
    %c1_28 = arith.constant 1 : index
    %c0_29 = arith.constant 0 : index
    %c0_30 = arith.constant 0 : index
    %c0_31 = arith.constant 0 : index
    %25 = vector.load %arg2[%c1_28, %c0_29, %c0_30, %c0_31] : memref<3x3x128x128xbf16, #tpu.memory_space<vmem>>, vector<1x1x128x128xbf16>
    %26 = vector.shape_cast %25 : vector<1x1x128x128xbf16> to vector<128x128xbf16>
    %cst_32 = arith.constant dense<0.000000e+00> : vector<256x128xf32>
    %27 = tpu.matmul %24, %26, %cst_32 {dimension_numbers = #tpu.dot_dimension_numbers<[1], [0], [0], [1], [0, 0, 1, 1], [], []>} : vector<256x128xbf16>, vector<128x128xbf16>, vector<256x128xf32> -> vector<256x128xf32>
    %28 = arith.addf %21, %27 : vector<256x128xf32>
    %c0_33 = arith.constant 0 : index
    %c1_34 = arith.constant 1 : index
    %c1_35 = arith.constant 1 : index
    %c0_36 = arith.constant 0 : index
    %29 = vector.load %arg1[%c0_33, %c1_34, %c1_35, %c0_36] : memref<1x18x18x128xbf16, #tpu.memory_space<vmem>>, vector<1x16x16x128xbf16>
    %30 = vector.shape_cast %29 : vector<1x16x16x128xbf16> to vector<16x16x128xbf16>
    %31 = vector.shape_cast %30 : vector<16x16x128xbf16> to vector<256x128xbf16>
    %c1_37 = arith.constant 1 : index
    %c1_38 = arith.constant 1 : index
    %c0_39 = arith.constant 0 : index
    %c0_40 = arith.constant 0 : index
    %32 = vector.load %arg2[%c1_37, %c1_38, %c0_39, %c0_40] : memref<3x3x128x128xbf16, #tpu.memory_space<vmem>>, vector<1x1x128x128xbf16>
    %33 = vector.shape_cast %32 : vector<1x1x128x128xbf16> to vector<128x128xbf16>
    %cst_41 = arith.constant dense<0.000000e+00> : vector<256x128xf32>
    %34 = tpu.matmul %31, %33, %cst_41 {dimension_numbers = #tpu.dot_dimension_numbers<[1], [0], [0], [1], [0, 0, 1, 1], [], []>} : vector<256x128xbf16>, vector<128x128xbf16>, vector<256x128xf32> -> vector<256x128xf32>
    %35 = arith.addf %28, %34 : vector<256x128xf32>
    %c0_42 = arith.constant 0 : index
    %c1_43 = arith.constant 1 : index
    %c2_44 = arith.constant 2 : index
    %c0_45 = arith.constant 0 : index
    %36 = vector.load %arg1[%c0_42, %c1_43, %c2_44, %c0_45] : memref<1x18x18x128xbf16, #tpu.memory_space<vmem>>, vector<1x16x16x128xbf16>
    %37 = vector.shape_cast %36 : vector<1x16x16x128xbf16> to vector<16x16x128xbf16>
    %38 = vector.shape_cast %37 : vector<16x16x128xbf16> to vector<256x128xbf16>
    %c1_46 = arith.constant 1 : index
    %c2_47 = arith.constant 2 : index
    %c0_48 = arith.constant 0 : index
    %c0_49 = arith.constant 0 : index
    %39 = vector.load %arg2[%c1_46, %c2_47, %c0_48, %c0_49] : memref<3x3x128x128xbf16, #tpu.memory_space<vmem>>, vector<1x1x128x128xbf16>
    %40 = vector.shape_cast %39 : vector<1x1x128x128xbf16> to vector<128x128xbf16>
    %cst_50 = arith.constant dense<0.000000e+00> : vector<256x128xf32>
    %41 = tpu.matmul %38, %40, %cst_50 {dimension_numbers = #tpu.dot_dimension_numbers<[1], [0], [0], [1], [0, 0, 1, 1], [], []>} : vector<256x128xbf16>, vector<128x128xbf16>, vector<256x128xf32> -> vector<256x128xf32>
    %42 = arith.addf %35, %41 : vector<256x128xf32>
    %c0_51 = arith.constant 0 : index
    %c2_52 = arith.constant 2 : index
    %c0_53 = arith.constant 0 : index
    %c0_54 = arith.constant 0 : index
    %43 = vector.load %arg1[%c0_51, %c2_52, %c0_53, %c0_54] : memref<1x18x18x128xbf16, #tpu.memory_space<vmem>>, vector<1x16x16x128xbf16>
    %44 = vector.shape_cast %43 : vector<1x16x16x128xbf16> to vector<16x16x128xbf16>
    %45 = vector.shape_cast %44 : vector<16x16x128xbf16> to vector<256x128xbf16>
    %c2_55 = arith.constant 2 : index
    %c0_56 = arith.constant 0 : index
    %c0_57 = arith.constant 0 : index
    %c0_58 = arith.constant 0 : index
    %46 = vector.load %arg2[%c2_55, %c0_56, %c0_57, %c0_58] : memref<3x3x128x128xbf16, #tpu.memory_space<vmem>>, vector<1x1x128x128xbf16>
    %47 = vector.shape_cast %46 : vector<1x1x128x128xbf16> to vector<128x128xbf16>
    %cst_59 = arith.constant dense<0.000000e+00> : vector<256x128xf32>
    %48 = tpu.matmul %45, %47, %cst_59 {dimension_numbers = #tpu.dot_dimension_numbers<[1], [0], [0], [1], [0, 0, 1, 1], [], []>} : vector<256x128xbf16>, vector<128x128xbf16>, vector<256x128xf32> -> vector<256x128xf32>
    %49 = arith.addf %42, %48 : vector<256x128xf32>
    %c0_60 = arith.constant 0 : index
    %c2_61 = arith.constant 2 : index
    %c1_62 = arith.constant 1 : index
    %c0_63 = arith.constant 0 : index
    %50 = vector.load %arg1[%c0_60, %c2_61, %c1_62, %c0_63] : memref<1x18x18x128xbf16, #tpu.memory_space<vmem>>, vector<1x16x16x128xbf16>
    %51 = vector.shape_cast %50 : vector<1x16x16x128xbf16> to vector<16x16x128xbf16>
    %52 = vector.shape_cast %51 : vector<16x16x128xbf16> to vector<256x128xbf16>
    %c2_64 = arith.constant 2 : index
    %c1_65 = arith.constant 1 : index
    %c0_66 = arith.constant 0 : index
    %c0_67 = arith.constant 0 : index
    %53 = vector.load %arg2[%c2_64, %c1_65, %c0_66, %c0_67] : memref<3x3x128x128xbf16, #tpu.memory_space<vmem>>, vector<1x1x128x128xbf16>
    %54 = vector.shape_cast %53 : vector<1x1x128x128xbf16> to vector<128x128xbf16>
    %cst_68 = arith.constant dense<0.000000e+00> : vector<256x128xf32>
    %55 = tpu.matmul %52, %54, %cst_68 {dimension_numbers = #tpu.dot_dimension_numbers<[1], [0], [0], [1], [0, 0, 1, 1], [], []>} : vector<256x128xbf16>, vector<128x128xbf16>, vector<256x128xf32> -> vector<256x128xf32>
    %56 = arith.addf %49, %55 : vector<256x128xf32>
    %c0_69 = arith.constant 0 : index
    %c2_70 = arith.constant 2 : index
    %c2_71 = arith.constant 2 : index
    %c0_72 = arith.constant 0 : index
    %57 = vector.load %arg1[%c0_69, %c2_70, %c2_71, %c0_72] : memref<1x18x18x128xbf16, #tpu.memory_space<vmem>>, vector<1x16x16x128xbf16>
    %58 = vector.shape_cast %57 : vector<1x16x16x128xbf16> to vector<16x16x128xbf16>
    %59 = vector.shape_cast %58 : vector<16x16x128xbf16> to vector<256x128xbf16>
    %c2_73 = arith.constant 2 : index
    %c2_74 = arith.constant 2 : index
    %c0_75 = arith.constant 0 : index
    %c0_76 = arith.constant 0 : index
    %60 = vector.load %arg2[%c2_73, %c2_74, %c0_75, %c0_76] : memref<3x3x128x128xbf16, #tpu.memory_space<vmem>>, vector<1x1x128x128xbf16>
    %61 = vector.shape_cast %60 : vector<1x1x128x128xbf16> to vector<128x128xbf16>
    %cst_77 = arith.constant dense<0.000000e+00> : vector<256x128xf32>
    %62 = tpu.matmul %59, %61, %cst_77 {dimension_numbers = #tpu.dot_dimension_numbers<[1], [0], [0], [1], [0, 0, 1, 1], [], []>} : vector<256x128xbf16>, vector<128x128xbf16>, vector<256x128xf32> -> vector<256x128xf32>
    %63 = arith.addf %56, %62 : vector<256x128xf32>
    %c0_78 = arith.constant 0 : index
    %c0_79 = arith.constant 0 : index
    %64 = vector.load %arg3[%c0_78, %c0_79] : memref<1x128xf32, #tpu.memory_space<vmem>>, vector<1x128xf32>
    %65 = vector.broadcast %64 : vector<1x128xf32> to vector<256x128xf32>
    %66 = arith.addf %63, %65 : vector<256x128xf32>
    %cst_80 = arith.constant 0.000000e+00 : f32
    %67 = vector.broadcast %cst_80 : f32 to vector<256x128xf32>
    %68 = arith.cmpf ogt, %66, %67 : vector<256x128xf32>
    %cst_81 = arith.constant 1.800000e-02 : f32
    %69 = vector.broadcast %cst_81 : f32 to vector<256x128xf32>
    %70 = arith.mulf %69, %66 : vector<256x128xf32>
    %71 = arith.select %68, %66, %70 : vector<256x128xi1>, vector<256x128xf32>
    %72 = vector.shape_cast %71 : vector<256x128xf32> to vector<1x16x16x128xf32>
    %c0_82 = arith.constant 0 : index
    %c0_83 = arith.constant 0 : index
    %c0_84 = arith.constant 0 : index
    %c0_85 = arith.constant 0 : index
    %73 = vector.load %arg4[%c0_82, %c0_83, %c0_84, %c0_85] : memref<1x16x16x128xf32, #tpu.memory_space<vmem>>, vector<1x16x16x128xf32>
    tpu.vector_store %arg4[%c0_82, %c0_83, %c0_84, %c0_85], %72 {strides = array<i32>} : memref<1x16x16x128xf32, #tpu.memory_space<vmem>>, vector<1x16x16x128xf32>,
    %cst_86 = arith.constant dense<0.000000e+00> : vector<128xf32>
    %74 = vector.multi_reduction <add>, %71, %cst_86 [0] : vector<256x128xf32> to vector<128xf32>
    %75 = vector.shape_cast %74 : vector<128xf32> to vector<1x128xf32>
    %76 = arith.mulf %71, %71 : vector<256x128xf32>
    %cst_87 = arith.constant dense<0.000000e+00> : vector<128xf32>
    %77 = vector.multi_reduction <add>, %76, %cst_87 [0] : vector<256x128xf32> to vector<128xf32>
    %78 = vector.shape_cast %77 : vector<128xf32> to vector<1x128xf32>
    %79 = tpu.concatenate %75, %78 in 0 : vector<1x128xf32>, vector<1x128xf32> -> vector<2x128xf32>
    %80 = vector.shape_cast %79 : vector<2x128xf32> to vector<1x2x128xf32>
    %c0_88 = arith.constant 0 : index
    %c0_89 = arith.constant 0 : index
    %c0_90 = arith.constant 0 : index
    %81 = vector.load %arg5[%c0_88, %c0_89, %c0_90] : memref<1x2x128xf32, #tpu.memory_space<vmem>>, vector<1x2x128xf32>
    tpu.vector_store %arg5[%c0_88, %c0_89, %c0_90], %80 {strides = array<i32>} : memref<1x2x128xf32, #tpu.memory_space<vmem>>, vector<1x2x128xf32>,
    return
  }
  func.func @transform_0(%arg0: i32) -> (i32, i32, i32, i32) {
    %c0_i32 = arith.constant 0 : i32
    %c0_i32_0 = arith.constant 0 : i32
    %c0_i32_1 = arith.constant 0 : i32
    %c0_i32_2 = arith.constant 0 : i32
    return %arg0, %c0_i32, %c0_i32_0, %c0_i32_1 : i32, i32, i32, i32
  }
  func.func @transform_1(%arg0: i32) -> (i32, i32, i32, i32) {
    %c0_i32 = arith.constant 0 : i32
    %c0_i32_0 = arith.constant 0 : i32
    %c0_i32_1 = arith.constant 0 : i32
    %c0_i32_2 = arith.constant 0 : i32
    %c0_i32_3 = arith.constant 0 : i32
    return %c0_i32, %c0_i32_0, %c0_i32_1, %c0_i32_2 : i32, i32, i32, i32
  }
  func.func @transform_2(%arg0: i32) -> (i32, i32) {
    %c0_i32 = arith.constant 0 : i32
    %c0_i32_0 = arith.constant 0 : i32
    %c0_i32_1 = arith.constant 0 : i32
    return %c0_i32, %c0_i32_0 : i32, i32
  }
  func.func @transform_3(%arg0: i32) -> (i32, i32, i32, i32) {
    %c0_i32 = arith.constant 0 : i32
    %c0_i32_0 = arith.constant 0 : i32
    %c0_i32_1 = arith.constant 0 : i32
    %c0_i32_2 = arith.constant 0 : i32
    return %arg0, %c0_i32, %c0_i32_0, %c0_i32_1 : i32, i32, i32, i32
  }
  func.func @transform_4(%arg0: i32) -> (i32, i32, i32) {
    %c0_i32 = arith.constant 0 : i32
    %c0_i32_0 = arith.constant 0 : i32
    %c0_i32_1 = arith.constant 0 : i32
    return %arg0, %c0_i32, %c0_i32_0 : i32, i32, i32
  }
}

module attributes {stable_mosaic.version = 11 : i64} {
  func.func @_bn_apply_kernel(%arg0: i32, %arg1: memref<1x16x16x128xf32, #tpu.memory_space<vmem>>, %arg2: memref<1x128xf32, #tpu.memory_space<vmem>>, %arg3: memref<1x128xf32, #tpu.memory_space<vmem>>, %arg4: memref<1x16x16x128xf32, #tpu.memory_space<vmem>>) attributes {dimension_semantics = [#tpu.dimension_semantics<parallel>], iteration_bounds = array<i64: 2>, scalar_prefetch = 0 : i64, scratch_operands = 0 : i64, tpu.core_type = #tpu.core_type<tc>, window_params = [{transform_indices = @transform_0, window_bounds = array<i64: 1, 16, 16, 128>}, {pipeline_mode = #tpu.pipeline_mode<synchronous>, transform_indices = @transform_1, window_bounds = array<i64: 1, 128>}, {pipeline_mode = #tpu.pipeline_mode<synchronous>, transform_indices = @transform_2, window_bounds = array<i64: 1, 128>}, {transform_indices = @transform_3, window_bounds = array<i64: 1, 16, 16, 128>}]} {
    %c0 = arith.constant 0 : index
    %c0_0 = arith.constant 0 : index
    %c0_1 = arith.constant 0 : index
    %c0_2 = arith.constant 0 : index
    %0 = vector.load %arg1[%c0, %c0_0, %c0_1, %c0_2] : memref<1x16x16x128xf32, #tpu.memory_space<vmem>>, vector<1x16x16x128xf32>
    %c0_3 = arith.constant 0 : index
    %c0_4 = arith.constant 0 : index
    %1 = vector.load %arg2[%c0_3, %c0_4] : memref<1x128xf32, #tpu.memory_space<vmem>>, vector<1x128xf32>
    %2 = vector.shape_cast %1 : vector<1x128xf32> to vector<128xf32>
    %3 = vector.shape_cast %2 : vector<128xf32> to vector<1x1x1x128xf32>
    %4 = vector.broadcast %3 : vector<1x1x1x128xf32> to vector<1x16x16x128xf32>
    %5 = arith.mulf %0, %4 : vector<1x16x16x128xf32>
    %c0_5 = arith.constant 0 : index
    %c0_6 = arith.constant 0 : index
    %6 = vector.load %arg3[%c0_5, %c0_6] : memref<1x128xf32, #tpu.memory_space<vmem>>, vector<1x128xf32>
    %7 = vector.shape_cast %6 : vector<1x128xf32> to vector<128xf32>
    %8 = vector.shape_cast %7 : vector<128xf32> to vector<1x1x1x128xf32>
    %9 = vector.broadcast %8 : vector<1x1x1x128xf32> to vector<1x16x16x128xf32>
    %10 = arith.addf %5, %9 : vector<1x16x16x128xf32>
    %c0_7 = arith.constant 0 : index
    %c0_8 = arith.constant 0 : index
    %c0_9 = arith.constant 0 : index
    %c0_10 = arith.constant 0 : index
    %11 = vector.load %arg4[%c0_7, %c0_8, %c0_9, %c0_10] : memref<1x16x16x128xf32, #tpu.memory_space<vmem>>, vector<1x16x16x128xf32>
    tpu.vector_store %arg4[%c0_7, %c0_8, %c0_9, %c0_10], %10 {strides = array<i32>} : memref<1x16x16x128xf32, #tpu.memory_space<vmem>>, vector<1x16x16x128xf32>,
    return
  }
  func.func @transform_0(%arg0: i32) -> (i32, i32, i32, i32) {
    %c0_i32 = arith.constant 0 : i32
    %c0_i32_0 = arith.constant 0 : i32
    %c0_i32_1 = arith.constant 0 : i32
    %c0_i32_2 = arith.constant 0 : i32
    return %arg0, %c0_i32, %c0_i32_0, %c0_i32_1 : i32, i32, i32, i32
  }
  func.func @transform_1(%arg0: i32) -> (i32, i32) {
    %c0_i32 = arith.constant 0 : i32
    %c0_i32_0 = arith.constant 0 : i32
    %c0_i32_1 = arith.constant 0 : i32
    return %c0_i32, %c0_i32_0 : i32, i32
  }
  func.func @transform_2(%arg0: i32) -> (i32, i32) {
    %c0_i32 = arith.constant 0 : i32
    %c0_i32_0 = arith.constant 0 : i32
    %c0_i32_1 = arith.constant 0 : i32
    return %c0_i32, %c0_i32_0 : i32, i32
  }
  func.func @transform_3(%arg0: i32) -> (i32, i32, i32, i32) {
    %c0_i32 = arith.constant 0 : i32
    %c0_i32_0 = arith.constant 0 : i32
    %c0_i32_1 = arith.constant 0 : i32
    %c0_i32_2 = arith.constant 0 : i32
    return %arg0, %c0_i32, %c0_i32_0, %c0_i32_1 : i32, i32, i32, i32
  }
}

</mosaic_0001>

<bundles_post_ra>
// kernel: conv_block_forward.5
= control target key start
LH: loop header
LB: loop body
LE: loop exit
PB: predicated region body
PF: predicated region fallthrough
CT: control target
= control target key end

     0   :  { %s706_s12 = smov 0   ;;  %s849_s0 = inlined_call_operand.vmem [shape: f32[2,16,16,128], index: 0, kind: input, shape index: {}]   ;;  %s850_s1 = inlined_call_operand.vmem [shape: f32[1,128], index: 1, kind: input, shape index: {}]   ;;  %s851_s2 = inlined_call_operand.vmem [shape: f32[1,128], index: 2, kind: input, shape index: {}]   ;;  %s852_s3 = inlined_call_operand.vmem [shape: bf16[2,16,16,128], index: 3, kind: output, shape index: {}]  }
   0x1 LB: > { %s496_s13 = sadd.s32 4294967295, %s684_s12   ;;  %p500_p0 = scmp.ge.s32.totalorder %s684_s12, 1  ;;  %s684_s12 = sphi %s706_s12, %s13_s12  }
   0x2   : > { %p137_p1 = scmp.lt.s32.totalorder %s684_s12, 3 }
   0x4   : > { %p138_p2 = pnand %p500_p0, %p137_p1 }
   0x5   : > { %p161_p3 = scmp.lt.s32.totalorder (!%p138_p2), %s496_s13, 1  ;;  %v717_v0 = vld [vmem:[%s850_s1] ss:$0 sm:$0xff] (!%p138_p2) }
   0x6   : > { %141 = sbr.rel (%p138_p2) target bundleno = 42 (0x2a), region = 32  ;;  %v727_v1 = vld [vmem:[%s851_s2] ss:$0 sm:$0xff] (!%p138_p2) }
   0xd   : > { %s854_s13 = smov (!%p161_p3, %s496_s13), 1 }
   0xe   : > { %s541_s14 = sshll.u32 %s854_s13, 8  ;;  %s542_s22 = sshll.u32 %s854_s13, 7 }
   0xf   : > { %s722_s19 = scalar_lea.vmem %s849_s0, %s541_s14  ;;  %s753_s25 = scalar_lea.vmem %s852_s3, %s542_s22 }
  0x10   : > { %v171_v2 = vld [vmem:[%s722_s19] sm:$0xff]  ;;  %v172_v3 = vld [vmem:[%s722_s19 + $0x8] sm:$0xff]  ;;  %v173_v4 = vld [vmem:[%s722_s19 + $0x10] sm:$0xff] }
  0x11   : > { %v210_v5 = vmul.f32 %v717_v0, %v171_v2  ;;  %v211_v6 = vmul.f32 %v717_v0, %v172_v3  ;;  %v174_v7 = vld [vmem:[%s722_s19 + $0x18] sm:$0xff]  ;;  %v212_v8 = vmul.f32 %v717_v0, %v173_v4  ;;  %v175_v9 = vld [vmem:[%s722_s19 + $0x20] sm:$0xff]  ;;  %v176_v10 = vld [vmem:[%s722_s19 + $0x28] sm:$0xff] }
  0x12   : > { %v213_v11 = vmul.f32 %v717_v0, %v174_v7  ;;  %v214_v12 = vmul.f32 %v717_v0, %v175_v9  ;;  %v215_v13 = vmul.f32 %v717_v0, %v176_v10  ;;  %v177_v14 = vld [vmem:[%s722_s19 + $0x30] sm:$0xff]  ;;  %v178_v15 = vld [vmem:[%s722_s19 + $0x38] sm:$0xff]  ;;  %v179_v16 = vld [vmem:[%s722_s19 + $0x40] sm:$0xff] }
  0x13   : > { %v249_v17 = vadd.f32 %v727_v1, %v210_v5  ;;  %v250_v18 = vadd.f32 %v727_v1, %v211_v6  ;;  %v251_v19 = vadd.f32 %v727_v1, %v212_v8  ;;  %v216_v20 = vmul.f32 %v717_v0, %v177_v14  ;;  %v180_v21 = vld [vmem:[%s722_s19 + $0x48] sm:$0xff]  ;;  %v181_v22 = vld [vmem:[%s722_s19 + $0x50] sm:$0xff]  ;;  %v182_v27 = vld [vmem:[%s722_s19 + $0x58] sm:$0xff] }
  0x14   : > { %v252_v23 = vadd.f32 %v727_v1, %v213_v11  ;;  %v253_v24 = vadd.f32 %v727_v1, %v214_v12  ;;  %v254_v25 = vadd.f32 %v727_v1, %v215_v13  ;;  %v217_v26 = vmul.f32 %v717_v0, %v178_v15  ;;  %v183_v28 = vld [vmem:[%s722_s19 + $0x60] sm:$0xff]  ;;  %v184_v33 = vld [vmem:[%s722_s19 + $0x68] sm:$0xff]  ;;  %v185_v34 = vld [vmem:[%s722_s19 + $0x70] sm:$0xff] }
  0x15   : > { %v578_v29 = vpack.c.bf16 %v250_v18, %v249_v17  ;;  %v255_v30 = vadd.f32 %v727_v1, %v216_v20  ;;  %v218_v31 = vmul.f32 %v717_v0, %v179_v16  ;;  %v219_v32 = vmul.f32 %v717_v0, %v180_v21  ;;  %v186_v39 = vld [vmem:[%s722_s19 + $0x78] sm:$0xff]  ;;  %v187_v44 = vld [vmem:[%s722_s19 + $0x80] sm:$0xff]  ;;  %v188_v45 = vld [vmem:[%s722_s19 + $0x88] sm:$0xff] }
  0x16   : > { %v583_v35 = vpack.c.bf16 %v252_v23, %v251_v19  ;;  %v588_v36 = vpack.c.bf16 %v254_v25, %v253_v24  ;;  %v256_v37 = vadd.f32 %v727_v1, %v217_v26  ;;  %v220_v38 = vmul.f32 %v717_v0, %v181_v22  ;;  %v189_v50 = vld [vmem:[%s722_s19 + $0x90] sm:$0xff]  ;;  %v190_v51 = vld [vmem:[%s722_s19 + $0x98] sm:$0xff]  ;;  %v191_v56 = vld [vmem:[%s722_s19 + $0xa0] sm:$0xff] }
  0x17   : > { %579 = vst [vmem:[%s753_s25] sm:$0xff] %v578_v29   ;;  %v257_v40 = vadd.f32 %v727_v1, %v218_v31  ;;  %v258_v41 = vadd.f32 %v727_v1, %v219_v32  ;;  %v221_v42 = vmul.f32 %v717_v0, %v182_v27  ;;  %v222_v43 = vmul.f32 %v717_v0, %v183_v28  ;;  %v192_v61 = vld [vmem:[%s722_s19 + $0xa8] sm:$0xff]  ;;  %v193_v4 = vld [vmem:[%s722_s19 + $0xb0] sm:$0xff]  ;;  %v194_v5 = vld [vmem:[%s722_s19 + $0xb8] sm:$0xff] }
  0x18   : > { %655 = vst [vmem:[%s753_s25 + $0x8] sm:$0xff] %v583_v35   ;;  %656 = vst [vmem:[%s753_s25 + $0x10] sm:$0xff] %v588_v36   ;;  %v593_v46 = vpack.c.bf16 %v256_v37, %v255_v30  ;;  %v259_v47 = vadd.f32 %v727_v1, %v220_v38  ;;  %v223_v48 = vmul.f32 %v717_v0, %v184_v33  ;;  %v195_v10 = vld [vmem:[%s722_s19 + $0xc0] sm:$0xff]  ;;  %v196_v11 = vld [vmem:[%s722_s19 + $0xc8] sm:$0xff] }
  0x19   : > { %v224_v49 = vmul.f32 %v717_v0, %v185_v34  ;;  %v598_v52 = vpack.c.bf16 %v258_v41, %v257_v40  ;;  %v260_v53 = vadd.f32 %v727_v1, %v221_v42  ;;  %v261_v54 = vadd.f32 %v727_v1, %v222_v43  ;;  %v197_v16 = vld [vmem:[%s722_s19 + $0xd0] sm:$0xff]  ;;  %v198_v17 = vld [vmem:[%s722_s19 + $0xd8] sm:$0xff]  ;;  %v199_v22 = vld [vmem:[%s722_s19 + $0xe0] sm:$0xff] }
  0x1a   : > { %v225_v55 = vmul.f32 %v717_v0, %v186_v39  ;;  %657 = vst [vmem:[%s753_s25 + $0x18] sm:$0xff] %v593_v46   ;;  %v262_v57 = vadd.f32 %v727_v1, %v223_v48  ;;  %v226_v59 = vmul.f32 %v717_v0, %v187_v44  ;;  %v227_v60 = vmul.f32 %v717_v0, %v188_v45  ;;  %v200_v27 = vld [vmem:[%s722_s19 + $0xe8] sm:$0xff]  ;;  %v201_v32 = vld [vmem:[%s722_s19 + $0xf0] sm:$0xff]  ;;  %v202_v33 = vld [vmem:[%s722_s19 + $0xf8] sm:$0xff] }
  0x1b   : > { %v263_v58 = vadd.f32 %v727_v1, %v224_v49  ;;  %658 = vst [vmem:[%s753_s25 + $0x20] sm:$0xff] %v598_v52   ;;  %v603_v62 = vpack.c.bf16 %v260_v53, %v259_v47  ;;  %v228_v2 = vmul.f32 %v717_v0, %v189_v50  ;;  %v229_v3 = vmul.f32 %v717_v0, %v190_v51 }
  0x1c   : > { %v264_v63 = vadd.f32 %v727_v1, %v225_v55  ;;  %v608_v6 = vpack.c.bf16 %v262_v57, %v261_v54  ;;  %v265_v7 = vadd.f32 %v727_v1, %v226_v59  ;;  %v266_v8 = vadd.f32 %v727_v1, %v227_v60 }
  0x1d   : > { %v230_v9 = vmul.f32 %v717_v0, %v191_v56  ;;  %659 = vst [vmem:[%s753_s25 + $0x28] sm:$0xff] %v603_v62   ;;  %v267_v13 = vadd.f32 %v727_v1, %v228_v2  ;;  %v268_v14 = vadd.f32 %v727_v1, %v229_v3  ;;  %v231_v15 = vmul.f32 %v717_v0, %v192_v61 }
  0x1e   : > { %v613_v12 = vpack.c.bf16 %v264_v63, %v263_v58  ;;  %660 = vst [vmem:[%s753_s25 + $0x30] sm:$0xff] %v608_v6   ;;  %v618_v18 = vpack.c.bf16 %v266_v8, %v265_v7  ;;  %v232_v20 = vmul.f32 %v717_v0, %v193_v4  ;;  %v233_v21 = vmul.f32 %v717_v0, %v194_v5 }
  0x1f   : > { %v269_v19 = vadd.f32 %v727_v1, %v230_v9  ;;  %v623_v23 = vpack.c.bf16 %v268_v14, %v267_v13  ;;  %v270_v24 = vadd.f32 %v727_v1, %v231_v15  ;;  %v234_v25 = vmul.f32 %v717_v0, %v195_v10 }
  0x20   : > { %661 = vst [vmem:[%s753_s25 + $0x38] sm:$0xff] %v613_v12   ;;  %v235_v26 = vmul.f32 %v717_v0, %v196_v11  ;;  %662 = vst [vmem:[%s753_s25 + $0x40] sm:$0xff] %v618_v18   ;;  %v271_v28 = vadd.f32 %v727_v1, %v232_v20  ;;  %v272_v29 = vadd.f32 %v727_v1, %v233_v21 }
  0x21   : > { %v236_v30 = vmul.f32 %v717_v0, %v197_v16  ;;  %v237_v31 = vmul.f32 %v717_v0, %v198_v17  ;;  %663 = vst [vmem:[%s753_s25 + $0x48] sm:$0xff] %v623_v23   ;;  %v628_v34 = vpack.c.bf16 %v270_v24, %v269_v19  ;;  %v273_v35 = vadd.f32 %v727_v1, %v234_v25 }
  0x22   : > { %v274_v36 = vadd.f32 %v727_v1, %v235_v26  ;;  %v238_v37 = vmul.f32 %v717_v0, %v199_v22  ;;  %v633_v38 = vpack.c.bf16 %v272_v29, %v271_v28  ;;  %v239_v41 = vmul.f32 %v717_v0, %v200_v27 }
  0x23   : > { %v275_v39 = vadd.f32 %v727_v1, %v236_v30  ;;  %v276_v40 = vadd.f32 %v727_v1, %v237_v31  ;;  %664 = vst [vmem:[%s753_s25 + $0x50] sm:$0xff] %v628_v34   ;;  %v240_v44 = vmul.f32 %v717_v0, %v201_v32  ;;  %v241_v45 = vmul.f32 %v717_v0, %v202_v33 }
  0x24   : > { %v638_v42 = vpack.c.bf16 %v274_v36, %v273_v35  ;;  %v277_v43 = vadd.f32 %v727_v1, %v238_v37  ;;  %665 = vst [vmem:[%s753_s25 + $0x58] sm:$0xff] %v633_v38   ;;  %v278_v47 = vadd.f32 %v727_v1, %v239_v41 }
  0x25   : > { %v643_v46 = vpack.c.bf16 %v276_v40, %v275_v39  ;;  %v279_v48 = vadd.f32 %v727_v1, %v240_v44  ;;  %v280_v49 = vadd.f32 %v727_v1, %v241_v45 }
  0x26   : > { %666 = vst [vmem:[%s753_s25 + $0x60] sm:$0xff] %v638_v42   ;;  %v648_v50 = vpack.c.bf16 %v278_v47, %v277_v43 }
  0x27   : > { %667 = vst [vmem:[%s753_s25 + $0x68] sm:$0xff] %v643_v46   ;;  %v653_v51 = vpack.c.bf16 %v280_v49, %v279_v48 }
  0x28   : > { %668 = vst [vmem:[%s753_s25 + $0x70] sm:$0xff] %v648_v50  }
  0x29   : > { %669 = vst [vmem:[%s753_s25 + $0x78] sm:$0xff] %v653_v51  }
  0x2a PF: > { %s13_s12 = sadd.s32 1, %s684_s12  }
  0x2b   : > { %p10_p4 = scmp.ge.s32.totalorder %s13_s12, 4  }
  0x2d   :  { %12 = sbr.rel (!%p10_p4) target bundleno = 1 (0x1), region = 62 }

// kernel: conv_block_forward.7
= control target key start
LH: loop header
LB: loop body
LE: loop exit
PB: predicated region body
PF: predicated region fallthrough
CT: control target
= control target key end

     0   :  { %s419_s12 = smov 0   ;;  %s578_s0 = inlined_call_operand.vmem [shape: f32[2,16,16,128], index: 0, kind: input, shape index: {}]   ;;  %s579_s1 = inlined_call_operand.vmem [shape: f32[1,128], index: 1, kind: input, shape index: {}]   ;;  %s580_s2 = inlined_call_operand.vmem [shape: f32[1,128], index: 2, kind: input, shape index: {}]   ;;  %s581_s3 = inlined_call_operand.vmem [shape: f32[2,16,16,128], index: 3, kind: output, shape index: {}]  }
   0x1 LB: > { %s368_s13 = sadd.s32 4294967295, %s397_s12   ;;  %p372_p0 = scmp.ge.s32.totalorder %s397_s12, 1  ;;  %s397_s12 = sphi %s419_s12, %s13_s12  }
   0x2   : > { %p137_p1 = scmp.lt.s32.totalorder %s397_s12, 3 }
   0x4   : > { %p138_p2 = pnand %p372_p0, %p137_p1 }
   0x5   : > { %p161_p3 = scmp.lt.s32.totalorder (!%p138_p2), %s368_s13, 1  ;;  %v430_v0 = vld [vmem:[%s579_s1] ss:$0 sm:$0xff] (!%p138_p2) }
   0x6   : > { %141 = sbr.rel (%p138_p2) target bundleno = 40 (0x28), region = 32  ;;  %v440_v1 = vld [vmem:[%s580_s2] ss:$0 sm:$0xff] (!%p138_p2) }
   0xd   : > { %s583_s13 = smov (!%p161_p3, %s368_s13), 1 }
   0xe   : > { %s381_s14 = sshll.u32 %s583_s13, 8 }
   0xf   : > { %s435_s19 = scalar_lea.vmem %s578_s0, %s381_s14  ;;  %s454_s24 = scalar_lea.vmem %s581_s3, %s381_s14 }
  0x10   : > { %v171_v2 = vld [vmem:[%s435_s19] sm:$0xff]  ;;  %v172_v3 = vld [vmem:[%s435_s19 + $0x8] sm:$0xff]  ;;  %v173_v4 = vld [vmem:[%s435_s19 + $0x10] sm:$0xff] }
  0x11   : > { %v210_v5 = vmul.f32 %v430_v0, %v171_v2  ;;  %v211_v6 = vmul.f32 %v430_v0, %v172_v3  ;;  %v212_v7 = vmul.f32 %v430_v0, %v173_v4  ;;  %v174_v8 = vld [vmem:[%s435_s19 + $0x18] sm:$0xff]  ;;  %v175_v9 = vld [vmem:[%s435_s19 + $0x20] sm:$0xff]  ;;  %v176_v10 = vld [vmem:[%s435_s19 + $0x28] sm:$0xff] }
  0x12   : > { %v213_v11 = vmul.f32 %v430_v0, %v174_v8  ;;  %v214_v12 = vmul.f32 %v430_v0, %v175_v9  ;;  %v215_v13 = vmul.f32 %v430_v0, %v176_v10  ;;  %v177_v14 = vld [vmem:[%s435_s19 + $0x30] sm:$0xff]  ;;  %v178_v15 = vld [vmem:[%s435_s19 + $0x38] sm:$0xff]  ;;  %v179_v16 = vld [vmem:[%s435_s19 + $0x40] sm:$0xff] }
  0x13   : > { %v249_v17 = vadd.f32 %v440_v1, %v210_v5  ;;  %v250_v18 = vadd.f32 %v440_v1, %v211_v6  ;;  %v251_v19 = vadd.f32 %v440_v1, %v212_v7  ;;  %v216_v20 = vmul.f32 %v430_v0, %v177_v14  ;;  %v180_v21 = vld [vmem:[%s435_s19 + $0x48] sm:$0xff]  ;;  %v181_v22 = vld [vmem:[%s435_s19 + $0x50] sm:$0xff]  ;;  %v182_v23 = vld [vmem:[%s435_s19 + $0x58] sm:$0xff] }
  0x14   : > { %v252_v24 = vadd.f32 %v440_v1, %v213_v11  ;;  %v253_v25 = vadd.f32 %v440_v1, %v214_v12  ;;  %v254_v26 = vadd.f32 %v440_v1, %v215_v13  ;;  %v217_v27 = vmul.f32 %v430_v0, %v178_v15  ;;  %v183_v28 = vld [vmem:[%s435_s19 + $0x60] sm:$0xff]  ;;  %v184_v29 = vld [vmem:[%s435_s19 + $0x68] sm:$0xff]  ;;  %v185_v30 = vld [vmem:[%s435_s19 + $0x70] sm:$0xff] }
  0x15   : > { %281 = vst [vmem:[%s454_s24] sm:$0xff] %v249_v17  ;;  %282 = vst [vmem:[%s454_s24 + $0x8] sm:$0xff] %v250_v18  ;;  %v255_v31 = vadd.f32 %v440_v1, %v216_v20  ;;  %v218_v32 = vmul.f32 %v430_v0, %v179_v16  ;;  %v219_v33 = vmul.f32 %v430_v0, %v180_v21  ;;  %v186_v35 = vld [vmem:[%s435_s19 + $0x78] sm:$0xff]  ;;  %v187_v40 = vld [vmem:[%s435_s19 + $0x80] sm:$0xff] }
  0x16   : > { %283 = vst [vmem:[%s454_s24 + $0x10] sm:$0xff] %v251_v19  ;;  %v220_v34 = vmul.f32 %v430_v0, %v181_v22  ;;  %284 = vst [vmem:[%s454_s24 + $0x18] sm:$0xff] %v252_v24  ;;  %v256_v36 = vadd.f32 %v440_v1, %v217_v27  ;;  %v221_v37 = vmul.f32 %v430_v0, %v182_v23  ;;  %v188_v41 = vld [vmem:[%s435_s19 + $0x88] sm:$0xff]  ;;  %v189_v42 = vld [vmem:[%s435_s19 + $0x90] sm:$0xff] }
  0x17   : > { %285 = vst [vmem:[%s454_s24 + $0x20] sm:$0xff] %v253_v25  ;;  %286 = vst [vmem:[%s454_s24 + $0x28] sm:$0xff] %v254_v26  ;;  %v222_v38 = vmul.f32 %v430_v0, %v183_v28  ;;  %v223_v39 = vmul.f32 %v430_v0, %v184_v29  ;;  %v257_v43 = vadd.f32 %v440_v1, %v218_v32  ;;  %v190_v47 = vld [vmem:[%s435_s19 + $0x98] sm:$0xff]  ;;  %v191_v48 = vld [vmem:[%s435_s19 + $0xa0] sm:$0xff] }
  0x18   : > { %287 = vst [vmem:[%s454_s24 + $0x30] sm:$0xff] %v255_v31  ;;  %v258_v44 = vadd.f32 %v440_v1, %v219_v33  ;;  %v259_v45 = vadd.f32 %v440_v1, %v220_v34  ;;  %v224_v46 = vmul.f32 %v430_v0, %v185_v30  ;;  %v192_v49 = vld [vmem:[%s435_s19 + $0xa8] sm:$0xff]  ;;  %288 = vst [vmem:[%s454_s24 + $0x38] sm:$0xff] %v256_v36  ;;  %v193_v54 = vld [vmem:[%s435_s19 + $0xb0] sm:$0xff] }
  0x19   : > { %v260_v50 = vadd.f32 %v440_v1, %v221_v37  ;;  %v261_v51 = vadd.f32 %v440_v1, %v222_v38  ;;  %v262_v52 = vadd.f32 %v440_v1, %v223_v39  ;;  %v225_v53 = vmul.f32 %v430_v0, %v186_v35  ;;  %289 = vst [vmem:[%s454_s24 + $0x40] sm:$0xff] %v257_v43  ;;  %v194_v59 = vld [vmem:[%s435_s19 + $0xb8] sm:$0xff]  ;;  %v195_v2 = vld [vmem:[%s435_s19 + $0xc0] sm:$0xff]  ;;  %v196_v3 = vld [vmem:[%s435_s19 + $0xc8] sm:$0xff] }
  0x1a   : > { %290 = vst [vmem:[%s454_s24 + $0x48] sm:$0xff] %v258_v44  ;;  %291 = vst [vmem:[%s454_s24 + $0x50] sm:$0xff] %v259_v45  ;;  %v263_v55 = vadd.f32 %v440_v1, %v224_v46  ;;  %v226_v56 = vmul.f32 %v430_v0, %v187_v40  ;;  %v227_v57 = vmul.f32 %v430_v0, %v188_v41  ;;  %v197_v4 = vld [vmem:[%s435_s19 + $0xd0] sm:$0xff]  ;;  %v198_v9 = vld [vmem:[%s435_s19 + $0xd8] sm:$0xff] }
  0x1b   : > { %v228_v58 = vmul.f32 %v430_v0, %v189_v42  ;;  %292 = vst [vmem:[%s454_s24 + $0x58] sm:$0xff] %v260_v50  ;;  %293 = vst [vmem:[%s454_s24 + $0x60] sm:$0xff] %v261_v51  ;;  %v264_v60 = vadd.f32 %v440_v1, %v225_v53  ;;  %v229_v61 = vmul.f32 %v430_v0, %v190_v47  ;;  %v199_v10 = vld [vmem:[%s435_s19 + $0xe0] sm:$0xff]  ;;  %v200_v11 = vld [vmem:[%s435_s19 + $0xe8] sm:$0xff] }
  0x1c   : > { %294 = vst [vmem:[%s454_s24 + $0x68] sm:$0xff] %v262_v52  ;;  %v230_v62 = vmul.f32 %v430_v0, %v191_v48  ;;  %v231_v63 = vmul.f32 %v430_v0, %v192_v49  ;;  %295 = vst [vmem:[%s454_s24 + $0x70] sm:$0xff] %v263_v55  ;;  %v265_v5 = vadd.f32 %v440_v1, %v226_v56  ;;  %v201_v16 = vld [vmem:[%s435_s19 + $0xf0] sm:$0xff]  ;;  %v202_v21 = vld [vmem:[%s435_s19 + $0xf8] sm:$0xff] }
  0x1d   : > { %v266_v6 = vadd.f32 %v440_v1, %v227_v57  ;;  %v267_v7 = vadd.f32 %v440_v1, %v228_v58  ;;  %v232_v8 = vmul.f32 %v430_v0, %v193_v54  ;;  %296 = vst [vmem:[%s454_s24 + $0x78] sm:$0xff] %v264_v60  ;;  %v268_v12 = vadd.f32 %v440_v1, %v229_v61 }
  0x1e   : > { %v269_v13 = vadd.f32 %v440_v1, %v230_v62  ;;  %v270_v14 = vadd.f32 %v440_v1, %v231_v63  ;;  %v233_v15 = vmul.f32 %v430_v0, %v194_v59  ;;  %297 = vst [vmem:[%s454_s24 + $0x80] sm:$0xff] %v265_v5  ;;  %v234_v18 = vmul.f32 %v430_v0, %v195_v2 }
  0x1f   : > { %298 = vst [vmem:[%s454_s24 + $0x88] sm:$0xff] %v266_v6  ;;  %299 = vst [vmem:[%s454_s24 + $0x90] sm:$0xff] %v267_v7  ;;  %v271_v17 = vadd.f32 %v440_v1, %v232_v8  ;;  %v235_v19 = vmul.f32 %v430_v0, %v196_v3  ;;  %v236_v20 = vmul.f32 %v430_v0, %v197_v4 }
  0x20   : > { %300 = vst [vmem:[%s454_s24 + $0x98] sm:$0xff] %v268_v12  ;;  %301 = vst [vmem:[%s454_s24 + $0xa0] sm:$0xff] %v269_v13  ;;  %v272_v22 = vadd.f32 %v440_v1, %v233_v15  ;;  %v237_v23 = vmul.f32 %v430_v0, %v198_v9  ;;  %v238_v24 = vmul.f32 %v430_v0, %v199_v10 }
  0x21   : > { %302 = vst [vmem:[%s454_s24 + $0xa8] sm:$0xff] %v270_v14  ;;  %v239_v25 = vmul.f32 %v430_v0, %v200_v11  ;;  %303 = vst [vmem:[%s454_s24 + $0xb0] sm:$0xff] %v271_v17  ;;  %v273_v26 = vadd.f32 %v440_v1, %v234_v18  ;;  %v274_v27 = vadd.f32 %v440_v1, %v235_v19 }
  0x22   : > { %v275_v28 = vadd.f32 %v440_v1, %v236_v20  ;;  %v240_v29 = vmul.f32 %v430_v0, %v201_v16  ;;  %304 = vst [vmem:[%s454_s24 + $0xb8] sm:$0xff] %v272_v22  ;;  %v276_v30 = vadd.f32 %v440_v1, %v237_v23  ;;  %v277_v31 = vadd.f32 %v440_v1, %v238_v24 }
  0x23   : > { %v278_v32 = vadd.f32 %v440_v1, %v239_v25  ;;  %v241_v33 = vmul.f32 %v430_v0, %v202_v21  ;;  %305 = vst [vmem:[%s454_s24 + $0xc0] sm:$0xff] %v273_v26  ;;  %306 = vst [vmem:[%s454_s24 + $0xc8] sm:$0xff] %v274_v27 }
  0x24   : > { %307 = vst [vmem:[%s454_s24 + $0xd0] sm:$0xff] %v275_v28  ;;  %v279_v34 = vadd.f32 %v440_v1, %v240_v29  ;;  %308 = vst [vmem:[%s454_s24 + $0xd8] sm:$0xff] %v276_v30 }
  0x25   : > { %309 = vst [vmem:[%s454_s24 + $0xe0] sm:$0xff] %v277_v31  ;;  %310 = vst [vmem:[%s454_s24 + $0xe8] sm:$0xff] %v278_v32  ;;  %v280_v35 = vadd.f32 %v440_v1, %v241_v33 }
  0x26   : > { %311 = vst [vmem:[%s454_s24 + $0xf0] sm:$0xff] %v279_v34 }
  0x27   : > { %312 = vst [vmem:[%s454_s24 + $0xf8] sm:$0xff] %v280_v35 }
  0x28 PF: > { %s13_s12 = sadd.s32 1, %s397_s12  }
  0x29   : > { %p10_p4 = scmp.ge.s32.totalorder %s13_s12, 4  }
  0x2b   :  { %12 = sbr.rel (!%p10_p4) target bundleno = 1 (0x1), region = 62 }

// kernel: conv_block_forward.4
= control target key start
LH: loop header
LB: loop body
LE: loop exit
PB: predicated region body
PF: predicated region fallthrough
CT: control target
= control target key end

     0   :  { %s7130_s15 = smov 0   ;;  %s9009_s0 = inlined_call_operand.vmem [shape: bf16[2,18,18,128], index: 0, kind: input, shape index: {}]   ;;  %s9010_s1 = inlined_call_operand.vmem [shape: bf16[3,3,128,128], index: 1, kind: input, shape index: {}]   ;;  %s9011_s2 = inlined_call_operand.vmem [shape: f32[1,128], index: 2, kind: input, shape index: {}]   ;;  %s9012_s3 = inlined_call_operand.vmem [shape: f32[2,16,16,128], index: 3, kind: output, shape index: {0}]   ;;  %s9013_s4 = inlined_call_operand.vmem [shape: f32[2,2,128], index: 4, kind: output, shape index: {1}]  }
   0x1 LB: > { %s5381_s16 = sadd.s32 4294967295, %s7103_s15   ;;  %p5385_p0 = scmp.ge.s32.totalorder %s7103_s15, 1  ;;  %s7103_s15 = sphi %s7130_s15, %s15_s15  }
   0x2   : > { %p165_p1 = scmp.lt.s32.totalorder %s7103_s15, 3 }
   0x4   : > { %p166_p2 = pnand %p5385_p0, %p165_p1 }
   0x6   : > { %169 = sbr.rel (%p166_p2) target bundleno = 612 (0x264), region = 32 }
   0xd   : > { %v6907_v0 = vld [vmem:[%s9010_s1 + $0x40] sm:$0xff]   ;;  %p195_p3 = scmp.lt.s32.totalorder %s5381_s16, 1  ;;  %v6909_v2 = vld [vmem:[%s9010_s1 + $0x48] sm:$0xff]   ;;  %v6911_v4 = vld [vmem:[%s9010_s1 + $0x50] sm:$0xff]   ;;  %vm274_vm0 = vsmask.f32 3328 }
   0xe   : > { %v6908_v1 = vld [vmem:[%s9010_s1 + $0x100] sm:$0xff]   ;;  %6194 = vmatprep.subr.bf16.mxu1 %v6907_v0  ;;  %v6910_v3 = vld [vmem:[%s9010_s1 + $0x108] sm:$0xff]   ;;  %v6912_v5 = vld [vmem:[%s9010_s1 + $0x110] sm:$0xff]   ;;  %vm275_vm1 = vsmask.f32 7440  ;;  %vm1304_vm3 = vcmask 1042432  }
   0xf   : > { %6386 = vmatprep.subr.bf16.mxu0 %v6908_v1  ;;  %6195 = vmatpush3.bf16.msra.mxu1 %v6907_v0  ;;  %s9081_s16 = smov (!%p195_p3, %s5381_s16), 1  ;;  %v6913_v6 = vld [vmem:[%s9010_s1 + $0x58] sm:$0xff]   ;;  %v6915_v8 = vld [vmem:[%s9010_s1 + $0x60] sm:$0xff]   ;;  %v6917_v10 = vld [vmem:[%s9010_s1 + $0x68] sm:$0xff]   ;;  %vm1305_vm4 = vcmask 1046532  }
  0x10   : > { %6387 = vmatpush3.bf16.msra.mxu0 %v6908_v1  ;;  %6196 = vmatprep.subr.bf16.mxu1 %v6909_v2  ;;  %v6914_v7 = vld [vmem:[%s9010_s1 + $0x118] sm:$0xff]   ;;  %s6898_s7 = smul.u32 216, %s9081_s16  ;;  %v6916_v9 = vld [vmem:[%s9010_s1 + $0x120] sm:$0xff]   ;;  %v6918_v11 = vld [vmem:[%s9010_s1 + $0x128] sm:$0xff]   ;;  %s5977_s20 = sshll.u32 %s9081_s16, 8 }
  0x11   : > { %6388 = vmatprep.subr.bf16.mxu0 %v6910_v3  ;;  %v6919_v25 = vld [vmem:[%s9010_s1 + $0x70] sm:$0xff]   ;;  %v6921_v36 = vld [vmem:[%s9010_s1 + $0x78] sm:$0xff]   ;;  %vm7206_vm2 = vmor %vm274_vm0, %vm275_vm1  ;;  %s8929_s23 = scalar_lea.vmem %s9012_s3, %s5977_s20  ;;  %s5389_s24 = sshll.u32 %s9081_s16, 1 }
  0x12   : > { %s7174_s14 = scalar_lea.vmem %s9009_s0, %s6898_s7  ;;  %v6920_v30 = vld [vmem:[%s9010_s1 + $0x130] sm:$0xff]   ;;  %v6922_v51 = vld [vmem:[%s9010_s1 + $0x138] sm:$0xff]   ;;  %vm7452_vm5 = vmor %vm1304_vm3, %vm1305_vm4  ;;  %s208_s27 = scalar_lea.vmem %s9013_s4, %s5389_s24 }
  0x13   : > { %6197 = vmatpush3.bf16.msra.mxu1 %v6909_v2  ;;  %v210_v12 = vld [vmem:[%s7174_s14] sm:$0xf]  ;;  %v211_v13 = vld [vmem:[%s7174_s14 + $0x4] sm:$0xf]  ;;  %v258_v14 = vld [vmem:[%s7174_s14 + $0x8] sm:$0x1] }
  0x14   : > { %6389 = vmatpush3.bf16.msra.mxu0 %v6910_v3  ;;  %6198 = vmatprep.subr.bf16.mxu1 %v6911_v4  ;;  %v278_v15 = vshrl.u32 %v210_v12, 16  ;;  %v281_v16 = vshll.u32 %v210_v12, 16  ;;  %v287_v17 = vshll.u32 %v211_v13, 16  ;;  %v291_v18 = vshrl.u32 %v211_v13, 16  ;;  %v5582_v20 = vld [vmem:[%s7174_s14 + $0xc] sm:$0xf] }
  0x15   : > { %6390 = vmatprep.subr.bf16.mxu0 %v6912_v5  ;;  %v297_v19 = vshll.u32 %v258_v14, 16  ;;  %v7187_v23 = vld [vmem:[%s7174_s14 + $0x10] sm:$0xf]  ;;  %v7190_v24 = vld [vmem:[%s7174_s14 + $0x14] sm:$0x1]  ;;  %v2177_v29 = vshrl.u32 %v5582_v20, 16 }
  0x16   : > { %v280_v21 = vrot.slane %v278_v15, 4  ;;  %v283_v22 = vrot.slane %v281_v16, 5  ;;  %v289_v26 = vrot.slane %v287_v17, 5  ;;  %v293_v27 = vrot.slane %v291_v18, 4  ;;  %v212_v35 = vld [vmem:[%s7174_s14 + $0xc] sm:$0xf] }
  0x17   : > { %6199 = vmatpush3.bf16.msra.mxu1 %v6911_v4  ;;  %v299_v28 = vrot.slane %v297_v19, 5  ;;  %v2180_v32 = vshll.u32 %v5582_v20, 16  ;;  %v2186_v33 = vshll.u32 %v7187_v23, 16  ;;  %v2190_v34 = vshrl.u32 %v7187_v23, 16  ;;  %v213_v42 = vld [vmem:[%s7174_s14 + $0x10] sm:$0xf] }
  0x18   : > { %6391 = vmatpush3.bf16.msra.mxu0 %v6912_v5  ;;  %6200 = vmatprep.subr.bf16.mxu1 %v6913_v6  ;;  %v284_v31 = vor.u32 %v283_v22, %v280_v21  ;;  %v294_v38 = vor.u32 %v293_v27, %v289_v26  ;;  %v2179_v39 = vrot.slane %v2177_v29, 4  ;;  %v2196_v40 = vshll.u32 %v7190_v24, 16  ;;  %v259_v55 = vld [vmem:[%s7174_s14 + $0x14] sm:$0x1]  ;;  %v5585_v57 = vld [vmem:[%s7174_s14 + $0x18] sm:$0xf] }
  0x19   : > { %6392 = vmatprep.subr.bf16.mxu0 %v6914_v7  ;;  %v2951_v41 = vrot.slane %v7190_v24, 5  ;;  %v2182_v44 = vrot.slane %v2180_v32, 5  ;;  %v2188_v45 = vrot.slane %v2186_v33, 5  ;;  %v2192_v46 = vrot.slane %v2190_v34, 4  ;;  %v7223_v62 = vld [vmem:[%s7174_s14 + $0x1c] sm:$0xf] }
  0x1a   : > { %v285_v43 = vrot.slane %v284_v31, 4  ;;  %v295_v47 = vrot.slane %v294_v38, 4  ;;  %v2198_v48 = vrot.slane %v2196_v40, 5  ;;  %v302_v49 = vshrl.u32 %v212_v35, 16  ;;  %v6923_v3 = vld [vmem:[%s9010_s1] sm:$0xff]  }
  0x1b   : > { %6201 = vmatpush3.bf16.msra.mxu1 %v6913_v6  ;;  %v305_v50 = vshll.u32 %v212_v35, 16  ;;  %v2183_v53 = vor.u32 %v2182_v44, %v2179_v39  ;;  %v2193_v54 = vor.u32 %v2192_v46, %v2188_v45  ;;  %v311_v56 = vshll.u32 %v213_v42, 16  ;;  %v7231_v4 = vld [vmem:[%s9010_s1 + $0x140] sm:$0xff]   ;;  %v214_v21 = vld [vmem:[%s7174_s14 + $0x18] sm:$0xf]  ;;  %v6926_v46 = vld [vmem:[%s9010_s1 + $0x8] sm:$0xff]  }
  0x1c   : > { %6393 = vmatpush3.bf16.msra.mxu0 %v6914_v7  ;;  %6202 = vmatprep.subr.bf16.mxu1 %v6915_v8  ;;  %v290_v52 = vsel %vm7206_vm2, %v285_v43, %v289_v26  ;;  %v300_v58 = vsel %vm7206_vm2, %v295_v47, %v299_v28  ;;  %v304_v59 = vrot.slane %v302_v49, 4  ;;  %v315_v61 = vshrl.u32 %v213_v42, 16  ;;  %v215_v28 = vld [vmem:[%s7174_s14 + $0x1c] sm:$0xf]  ;;  %v260_v33 = vld [vmem:[%s7174_s14 + $0x20] sm:$0x1] }
  0x1d   : > { %6394 = vmatprep.subr.bf16.mxu0 %v6916_v9  ;;  %v307_v60 = vrot.slane %v305_v50, 5  ;;  %v5406_v63 = vcombine.low %v290_v52, %v300_v58  ;;  %v2184_v0 = vrot.slane %v2183_v53, 4  ;;  %v2194_v1 = vrot.slane %v2193_v54, 4  ;;  %v5588_v39 = vld [vmem:[%s7174_s14 + $0x24] sm:$0xf] }
  0x1e   : > { %v313_v2 = vrot.slane %v311_v56, 5  ;;  %v317_v6 = vrot.slane %v315_v61, 4  ;;  %v321_v7 = vshll.u32 %v259_v55, 16  ;;  %v2204_v12 = vshll.u32 %v5585_v57, 16  ;;  %v216_v52 = vld [vmem:[%s7174_s14 + $0x24] sm:$0xf] }
  0x1f   : > { %6203 = vmatpush3.bf16.msra.mxu1 %v6915_v8  ;;  %v308_v5 = vor.u32 %v307_v60, %v304_v59  ;;  %v7234_v8 = vld [vmem:[%s7174_s14 + $0x20] sm:$0x1]  ;;  %6210 = vmatprep.mubr.bf16.mxu1 %v5406_v63  ;;  %v2210_v19 = vshll.u32 %v7223_v62, 16  ;;  %v2214_v20 = vshrl.u32 %v7223_v62, 16  ;;  %v2955_v27 = vrot.slane %v7223_v62, 5  ;;  %v6925_v63 = vld [vmem:[%s9010_s1 + $0x148] sm:$0xff]  }
  0x20   : > { %6395 = vmatpush3.bf16.msra.mxu0 %v6916_v9  ;;  %6204 = vmatprep.subr.bf16.mxu1 %v6917_v10  ;;  %v2189_v9 = vsel %vm7206_vm2, %v2184_v0, %v2188_v45  ;;  %v318_v15 = vor.u32 %v317_v6, %v313_v2  ;;  %v323_v16 = vrot.slane %v321_v7, 5  ;;  %v2206_v18 = vrot.slane %v2204_v12, 5  ;;  %v7259_v45 = vld [vmem:[%s7174_s14 + $0x28] sm:$0xf] }
  0x21   : > { %6396 = vmatprep.subr.bf16.mxu0 %v6918_v11  ;;  %v309_v14 = vrot.slane %v308_v5, 4  ;;  %v2220_v26 = vshll.u32 %v7234_v8, 16  ;;  %v2216_v31 = vrot.slane %v2214_v20, 4  ;;  %v2958_v32 = vrot.slane %v7234_v8, 5  ;;  %v217_v5 = vld [vmem:[%s7174_s14 + $0x28] sm:$0xf] }
  0x22   : > { %v326_v38 = vshrl.u32 %v214_v21, 16  ;;  %v329_v44 = vshll.u32 %v214_v21, 16  ;;  %v339_v49 = vshrl.u32 %v215_v28, 16  ;;  %v345_v50 = vshll.u32 %v260_v33, 16  ;;  %v7290_v33 = vld [vmem:[%s7174_s14 + $0x34] sm:$0xf] }
  0x23   : > { %6205 = vmatpush3.bf16.msra.mxu1 %v6917_v10  ;;  %v2199_v10 = vsel %vm7206_vm2, %v2194_v1, %v2198_v48  ;;  %v314_v22 = vsel %vm7206_vm2, %v309_v14, %v313_v2  ;;  %v2222_v35 = vrot.slane %v2220_v26, 5  ;;  %v335_v48 = vshll.u32 %v215_v28, 16 }
  0x24   : > { %6397 = vmatpush3.bf16.msra.mxu0 %v6918_v11  ;;  %6206 = vmatprep.subr.bf16.mxu1 %v6919_v25  ;;  %v2201_v11 = vshrl.u32 %v5585_v57, 16  ;;  %v5646_v13 = vcombine.low %v2189_v9, %v2199_v10  ;;  %v328_v47 = vrot.slane %v326_v38, 4  ;;  %v331_v55 = vrot.slane %v329_v44, 5 }
  0x25   : > { %6398 = vmatprep.subr.bf16.mxu0 %v6920_v30  ;;  %v2225_v56 = vshrl.u32 %v5588_v39, 16  ;;  %v337_v57 = vrot.slane %v335_v48, 5  ;;  %v341_v58 = vrot.slane %v339_v49, 4  ;;  %v347_v59 = vrot.slane %v345_v50, 5  ;;  %v6928_v48 = vld [vmem:[%s9010_s1 + $0x158] sm:$0xff]  }
  0x26   : > { %v2203_v17 = vrot.slane %v2201_v11, 4  ;;  %6402 = vmatprep.mubr.bf16.mxu0 %v5646_v13  ;;  %v2228_v60 = vshll.u32 %v5588_v39, 16  ;;  %v332_v0 = vor.u32 %v331_v55, %v328_v47  ;;  %v2234_v2 = vshll.u32 %v7259_v45, 16  ;;  %v261_v11 = vld [vmem:[%s7174_s14 + $0x2c] sm:$0x1] }
  0x27   : > { %6207 = vmatpush3.bf16.msra.mxu1 %v6919_v25  ;;  %v319_v25 = vrot.slane %v318_v15, 4  ;;  %v2227_v1 = vrot.slane %v2225_v56, 4  ;;  %v342_v7 = vor.u32 %v341_v58, %v337_v57  ;;  %v2238_v10 = vshrl.u32 %v7259_v45, 16 }
  0x28   : > { %6399 = vmatpush3.bf16.msra.mxu0 %v6920_v30  ;;  %6208 = vmatprep.subr.bf16.mxu1 %v6921_v36  ;;  %v2207_v29 = vor.u32 %v2206_v18, %v2203_v17  ;;  %v2212_v30 = vrot.slane %v2210_v19, 5  ;;  %v2230_v9 = vrot.slane %v2228_v60, 5  ;;  %v333_v12 = vrot.slane %v332_v0, 4  ;;  %v6935_v60 = vld [vmem:[%s9010_s1 + $0x20] sm:$0xff]  }
  0x29   : > { %6400 = vmatprep.subr.bf16.mxu0 %v6922_v51  ;;  %v324_v34 = vsel %vm7206_vm2, %v319_v25, %v323_v16  ;;  %v2236_v13 = vrot.slane %v2234_v2, 5  ;;  %v350_v15 = vshrl.u32 %v216_v52, 16  ;;  %v5591_v16 = vld [vmem:[%s7174_s14 + $0x30] sm:$0xf]  ;;  %v343_v17 = vrot.slane %v342_v7, 4 }
  0x2a   : > { %v5407_v40 = vcombine.low %v314_v22, %v324_v34  ;;  %v2208_v42 = vrot.slane %v2207_v29, 4  ;;  %v2217_v43 = vor.u32 %v2216_v31, %v2212_v30  ;;  %v2231_v18 = vor.u32 %v2230_v9, %v2227_v1  ;;  %v6932_v34 = vld [vmem:[%s9010_s1 + $0x18] sm:$0xff]  }
  0x2b   : > { %6209 = vmatpush3.bf16.msra.mxu1 %v6921_v36  ;;  %v7255_v36 = vrot.slane %v2955_v27, 4  ;;  %v2240_v19 = vrot.slane %v2238_v10, 4  ;;  %v353_v20 = vshll.u32 %v216_v52, 16  ;;  %v338_v21 = vsel %vm7206_vm2, %v333_v12, %v337_v57  ;;  %v262_v2 = vld [vmem:[%s7174_s14 + $0x38] sm:$0x1] }
  0x2c   : > { %6401 = vmatpush3.bf16.msra.mxu0 %v6922_v51  ;;  %6242 = vmatprep.subr.bf16.mxu1 %v6923_v3  ;;  %v7265_v51 = vld [vmem:[%s7174_s14 + $0x2c] sm:$0x1]  ;;  %v2213_v53 = vsel %vm7206_vm2, %v2208_v42, %v2212_v30  ;;  %v2218_v54 = vrot.slane %v2217_v43, 4  ;;  %v352_v25 = vrot.slane %v350_v15, 4  ;;  %v359_v26 = vshll.u32 %v217_v5, 16 }
  0x2d   : > { %6434 = vmatprep.subr.bf16.mxu0 %v7231_v4  ;;  %v2244_v14 = vshll.u32 %v7265_v51, 16  ;;  %v348_v28 = vsel %vm7206_vm2, %v343_v17, %v347_v59  ;;  %v2232_v29 = vrot.slane %v2231_v18, 4  ;;  %v2241_v30 = vor.u32 %v2240_v19, %v2236_v13  ;;  %v219_v59 = vld [vmem:[%s7174_s14 + $0x34] sm:$0xf]  ;;  %v5594_v9 = vld [vmem:[%s7174_s14 + $0x3c] sm:$0xf] }
  0x2e   : > { %6211 = vmatmul.mubr.bf16.vlgmr.msra.gmra.mrb[0].mxu1 %v5407_v40  ;;  %v2223_v61 = vsel %vm7206_vm2, %v2218_v54, %v2222_v35  ;;  %v355_v31 = vrot.slane %v353_v20, 5  ;;  %v5408_v35 = vcombine.low %v338_v21, %v348_v28  ;;  %v361_v38 = vrot.slane %v359_v26, 5  ;;  %v218_v54 = vld [vmem:[%s7174_s14 + $0x30] sm:$0xf]  ;;  %v7324_v19 = vld [vmem:[%s7174_s14 + $0x40] sm:$0xf] }
  0x2f   : > { %6243 = vmatpush3.bf16.msra.mxu1 %v6923_v3  ;;  %v6929_v3 = vld [vmem:[%s9010_s1 + $0x10] sm:$0xff]   ;;  %v5647_v6 = vcombine.low %v2213_v53, %v2223_v61  ;;  %v2246_v22 = vrot.slane %v2244_v14, 5  ;;  %v363_v39 = vshrl.u32 %v217_v5, 16  ;;  %v369_v40 = vshll.u32 %v261_v11, 16  ;;  %v6937_v14 = vld [vmem:[%s9010_s1 + $0x28] sm:$0xff]   ;;  %v6930_v20 = vld [vmem:[%s9010_s1 + $0x160] sm:$0xff]  }
  0x30   : > { %6244 = vmatprep.subr.bf16.mxu1 %v6926_v46  ;;  %v2237_v42 = vsel %vm7206_vm2, %v2232_v29, %v2236_v13  ;;  %v2242_v43 = vrot.slane %v2241_v30, 4  ;;  %v356_v44 = vor.u32 %v355_v31, %v352_v25  ;;  %v2249_v47 = vshrl.u32 %v5591_v16, 16  ;;  %6214 = vmatprep.mubr.bf16.mxu1 %v5408_v35  ;;  %v7332_v28 = vld [vmem:[%s7174_s14 + $0x44] sm:$0x1]  ;;  %v6939_v35 = vld [vmem:[%s9010_s1 + $0x30] sm:$0xff]  }
  0x31   : > { %6403 = vmatmul.mubr.bf16.vlgmr.msra.gmra.mrb[0].mxu0 %v5647_v6  ;;  %v365_v49 = vrot.slane %v363_v39, 4  ;;  %v371_v50 = vrot.slane %v369_v40, 5  ;;  %v2252_v52 = vshll.u32 %v5591_v16, 16  ;;  %v2258_v53 = vshll.u32 %v7290_v33, 16 }
  0x32   : > { %6435 = vmatpush3.bf16.msra.mxu0 %v7231_v4  ;;  %v6927_v4 = vld [vmem:[%s9010_s1 + $0x150] sm:$0xff]   ;;  %v2247_v55 = vsel %vm7206_vm2, %v2242_v43, %v2246_v22  ;;  %v357_v56 = vrot.slane %v356_v44, 4  ;;  %v2251_v57 = vrot.slane %v2249_v47, 4  ;;  %v2262_v58 = vshrl.u32 %v7290_v33, 16 }
  0x33   : > { %6245 = vmatpush3.bf16.msra.mxu1 %v6926_v46  ;;  %6436 = vmatprep.subr.bf16.mxu0 %v6925_v63  ;;  %v7301_v46 = vld [vmem:[%s7174_s14 + $0x38] sm:$0x1]  ;;  %v5648_v61 = vcombine.low %v2237_v42, %v2247_v55  ;;  %v2254_v0 = vrot.slane %v2252_v52, 5  ;;  %v2260_v1 = vrot.slane %v2258_v53, 5  ;;  %v374_v7 = vshrl.u32 %v218_v54, 16 }
  0x34   : > { %6246 = vmatprep.subr.bf16.mxu1 %v6929_v3  ;;  %v362_v5 = vsel %vm7206_vm2, %v357_v56, %v361_v38  ;;  %v2268_v6 = vshll.u32 %v7301_v46, 16  ;;  %v377_v12 = vshll.u32 %v218_v54, 16  ;;  %v383_v13 = vshll.u32 %v219_v59, 16  ;;  %v221_v55 = vld [vmem:[%s7174_s14 + $0x40] sm:$0xf] }
  0x35   : > { %6406 = vmatprep.mubr.bf16.mxu0 %v5648_v61  ;;  %v2255_v11 = vor.u32 %v2254_v0, %v2251_v57  ;;  %v376_v17 = vrot.slane %v374_v7, 4  ;;  %v387_v18 = vshrl.u32 %v219_v59, 16  ;;  %v2273_v40 = vshrl.u32 %v5594_v9, 16 }
  0x36   : > { %6437 = vmatpush3.bf16.msra.mxu0 %v6925_v63  ;;  %v366_v63 = vor.u32 %v365_v49, %v361_v38  ;;  %v2270_v16 = vrot.slane %v2268_v6, 5  ;;  %v379_v25 = vrot.slane %v377_v12, 5  ;;  %v385_v26 = vrot.slane %v383_v13, 5 }
  0x37   : > { %6247 = vmatpush3.bf16.msra.mxu1 %v6929_v3  ;;  %6438 = vmatprep.subr.bf16.mxu0 %v6927_v4  ;;  %v2264_v3 = vrot.slane %v2262_v58, 4  ;;  %v2256_v22 = vrot.slane %v2255_v11, 4  ;;  %v389_v31 = vrot.slane %v387_v18, 4  ;;  %v2276_v42 = vshll.u32 %v5594_v9, 16  ;;  %v5597_v9 = vld [vmem:[%s7174_s14 + $0x48] sm:$0xf] }
  0x38   : > { %6248 = vmatprep.subr.bf16.mxu1 %v6932_v34  ;;  %v367_v10 = vrot.slane %v366_v63, 4  ;;  %v380_v39 = vor.u32 %v379_v25, %v376_v17  ;;  %v2282_v49 = vshll.u32 %v7324_v19, 16  ;;  %v2275_v53 = vrot.slane %v2273_v40, 4  ;;  %v263_v63 = vld [vmem:[%s7174_s14 + $0x44] sm:$0x1] }
  0x39   : > { %v2265_v15 = vor.u32 %v2264_v3, %v2260_v1  ;;  %v2261_v38 = vsel %vm7206_vm2, %v2256_v22, %v2260_v1  ;;  %v390_v44 = vor.u32 %v389_v31, %v385_v26  ;;  %v2278_v54 = vrot.slane %v2276_v42, 5  ;;  %v7365_v22 = vld [vmem:[%s7174_s14 + $0x50] sm:$0x1]  ;;  %v6934_v31 = vld [vmem:[%s9010_s1 + $0x178] sm:$0xff]  }
  0x3a   : > { %6439 = vmatpush3.bf16.msra.mxu0 %v6927_v4  ;;  %v372_v21 = vsel %vm7206_vm2, %v367_v10, %v371_v50  ;;  %v393_v4 = vshll.u32 %v262_v2, 16  ;;  %v381_v52 = vrot.slane %v380_v39, 4  ;;  %v2284_v57 = vrot.slane %v2282_v49, 5  ;;  %v6941_v2 = vld [vmem:[%s9010_s1 + $0x38] sm:$0xff]  }
  0x3b   : > { %6249 = vmatpush3.bf16.msra.mxu1 %v6932_v34  ;;  %6440 = vmatprep.subr.bf16.mxu0 %v6928_v48  ;;  %v5409_v29 = vcombine.low %v362_v5, %v372_v21  ;;  %v2266_v30 = vrot.slane %v2265_v15, 4  ;;  %v220_v34 = vld [vmem:[%s7174_s14 + $0x3c] sm:$0xf]  ;;  %v391_v56 = vrot.slane %v390_v44, 4  ;;  %v2286_v58 = vshrl.u32 %v7324_v19, 16  ;;  %v6933_v15 = vld [vmem:[%s9010_s1 + $0x170] sm:$0xff]  }
  0x3c   : > { %6250 = vmatprep.subr.bf16.mxu1 %v6935_v60  ;;  %v395_v47 = vrot.slane %v393_v4, 5  ;;  %v2292_v59 = vshll.u32 %v7332_v28, 16  ;;  %v2279_v61 = vor.u32 %v2278_v54, %v2275_v53  ;;  %v398_v0 = vshrl.u32 %v220_v34, 16  ;;  %v7376_v4 = vld [vmem:[%s9010_s1 + $0x80] sm:$0xff]   ;;  %v223_v53 = vld [vmem:[%s7174_s14 + $0x4c] sm:$0xf] }
  0x3d   : > { %6215 = vmatmul.mubr.bf16.gmra.mrb[4].mxu1 %v5409_v29  ;;  %v2271_v43 = vsel %vm7206_vm2, %v2266_v30, %v2270_v16  ;;  %v401_v1 = vshll.u32 %v220_v34, 16  ;;  %v2288_v3 = vrot.slane %v2286_v58, 4  ;;  %v407_v7 = vshll.u32 %v221_v55, 16  ;;  %v222_v30 = vld [vmem:[%s7174_s14 + $0x48] sm:$0xf] }
  0x3e   : > { %6441 = vmatpush3.bf16.msra.mxu0 %v6928_v48  ;;  %v5649_v50 = vcombine.low %v2261_v38, %v2271_v43  ;;  %v6931_v48 = vld [vmem:[%s9010_s1 + $0x168] sm:$0xff]   ;;  %v396_v5 = vsel %vm7206_vm2, %v391_v56, %v395_v47  ;;  %v2294_v6 = vrot.slane %v2292_v59, 5  ;;  %v2280_v11 = vrot.slane %v2279_v61, 4  ;;  %v264_v54 = vld [vmem:[%s7174_s14 + $0x50] sm:$0x1] }
  0x3f   : > { %6251 = vmatpush3.bf16.msra.mxu1 %v6935_v60  ;;  %6442 = vmatprep.subr.bf16.mxu0 %v6930_v20  ;;  %v386_v60 = vsel %vm7206_vm2, %v381_v52, %v385_v26  ;;  %v400_v12 = vrot.slane %v398_v0, 4  ;;  %v403_v13 = vrot.slane %v401_v1, 5  ;;  %v2289_v16 = vor.u32 %v2288_v3, %v2284_v57  ;;  %v5600_v58 = vld [vmem:[%s7174_s14 + $0x54] sm:$0xf]  ;;  %v7390_v0 = vld [vmem:[%s7174_s14 + $0x58] sm:$0xf] }
  0x40   : > { %6252 = vmatprep.subr.bf16.mxu1 %v6937_v14  ;;  %6407 = vmatmul.mubr.bf16.gmra.mrb[4].mxu0 %v5649_v50  ;;  %v5410_v10 = vcombine.low %v386_v60, %v396_v5  ;;  %v409_v17 = vrot.slane %v407_v7, 5  ;;  %v411_v18 = vshrl.u32 %v221_v55, 16  ;;  %v417_v21 = vshll.u32 %v263_v63, 16 }
  0x41   : > { %v404_v25 = vor.u32 %v403_v13, %v400_v12  ;;  %v2297_v26 = vshrl.u32 %v5597_v9, 16  ;;  %v2300_v29 = vshll.u32 %v5597_v9, 16  ;;  %v2290_v34 = vrot.slane %v2289_v16, 4 }
  0x42   : > { %6443 = vmatpush3.bf16.msra.mxu0 %v6930_v20  ;;  %6218 = vmatprep.mubr.bf16.mxu1 %v5410_v10  ;;  %v2285_v20 = vsel %vm7206_vm2, %v2280_v11, %v2284_v57  ;;  %v419_v38 = vrot.slane %v417_v21, 5  ;;  %v2316_v52 = vshll.u32 %v7365_v22, 16  ;;  %v422_v61 = vshrl.u32 %v222_v30, 16 }
  0x43   : > { %6253 = vmatpush3.bf16.msra.mxu1 %v6937_v14  ;;  %v7359_v14 = vld [vmem:[%s7174_s14 + $0x4c] sm:$0xf]  ;;  %6444 = vmatprep.subr.bf16.mxu0 %v6931_v48  ;;  %v405_v40 = vrot.slane %v404_v25, 4  ;;  %v2299_v42 = vrot.slane %v2297_v26, 4  ;;  %v2302_v43 = vrot.slane %v2300_v29, 5  ;;  %v2295_v47 = vsel %vm7206_vm2, %v2290_v34, %v2294_v6  ;;  %v7395_v6 = vld [vmem:[%s9010_s1 + $0x180] sm:$0xff]  }
  0x44   : > { %6254 = vmatprep.subr.bf16.mxu1 %v6939_v35  ;;  %v2306_v39 = vshll.u32 %v7359_v14, 16  ;;  %v2310_v44 = vshrl.u32 %v7359_v14, 16  ;;  %v5650_v55 = vcombine.low %v2285_v20, %v2295_v47  ;;  %v2318_v60 = vrot.slane %v2316_v52, 5  ;;  %v7402_v20 = vld [vmem:[%s7174_s14 + $0x5c] sm:$0x1] }
  0x45   : > { %v2303_v56 = vor.u32 %v2302_v43, %v2299_v42  ;;  %v425_v63 = vshll.u32 %v222_v30, 16  ;;  %v435_v3 = vshrl.u32 %v223_v53, 16  ;;  %v424_v9 = vrot.slane %v422_v61, 4  ;;  %v225_v43 = vld [vmem:[%s7174_s14 + $0x58] sm:$0xf] }
  0x46   : > { %6445 = vmatpush3.bf16.msra.mxu0 %v6931_v48  ;;  %v2308_v50 = vrot.slane %v2306_v39, 5  ;;  %v410_v48 = vsel %vm7206_vm2, %v405_v40, %v409_v17  ;;  %v2312_v57 = vrot.slane %v2310_v44, 4  ;;  %6410 = vmatprep.mubr.bf16.mxu0 %v5650_v55  ;;  %v441_v11 = vshll.u32 %v264_v54, 16  ;;  %v5603_v52 = vld [vmem:[%s7174_s14 + $0x60] sm:$0xf] }
  0x47   : > { %6255 = vmatpush3.bf16.msra.mxu1 %v6939_v35  ;;  %v413_v35 = vrot.slane %v411_v18, 4  ;;  %6446 = vmatprep.subr.bf16.mxu0 %v6933_v15  ;;  %v2304_v1 = vrot.slane %v2303_v56, 4  ;;  %v427_v10 = vrot.slane %v425_v63, 5  ;;  %v437_v18 = vrot.slane %v435_v3, 4 }
  0x48   : > { %6256 = vmatprep.subr.bf16.mxu1 %v6941_v2  ;;  %v2313_v5 = vor.u32 %v2312_v57, %v2308_v50  ;;  %v443_v21 = vrot.slane %v441_v11, 5  ;;  %v2321_v25 = vshrl.u32 %v5600_v58, 16  ;;  %v2324_v29 = vshll.u32 %v5600_v58, 16 }
  0x49   : > { %v414_v49 = vor.u32 %v413_v35, %v409_v17  ;;  %v2309_v13 = vsel %vm7206_vm2, %v2304_v1, %v2308_v50  ;;  %v428_v17 = vor.u32 %v427_v10, %v424_v9  ;;  %v2330_v30 = vshll.u32 %v7390_v0, 16  ;;  %v224_v35 = vld [vmem:[%s7174_s14 + $0x54] sm:$0xf]  ;;  %v265_v50 = vld [vmem:[%s7174_s14 + $0x5c] sm:$0x1] }
  0x4a   : > { %6447 = vmatpush3.bf16.msra.mxu0 %v6933_v15  ;;  %v2314_v15 = vrot.slane %v2313_v5, 4  ;;  %v2334_v34 = vshrl.u32 %v7390_v0, 16  ;;  %v2323_v42 = vrot.slane %v2321_v25, 4  ;;  %v446_v55 = vshrl.u32 %v224_v35, 16  ;;  %v7430_v25 = vld [vmem:[%s7174_s14 + $0x60] sm:$0xf] }
  0x4b   : > { %6257 = vmatpush3.bf16.msra.mxu1 %v6941_v2  ;;  %v415_v59 = vrot.slane %v414_v49, 4  ;;  %v431_v2 = vshll.u32 %v223_v53, 16  ;;  %6448 = vmatprep.subr.bf16.mxu0 %v6934_v31  ;;  %v429_v39 = vrot.slane %v428_v17, 4  ;;  %v2332_v44 = vrot.slane %v2330_v30, 5  ;;  %v7426_v17 = vld [vmem:[%s7174_s14 + $0x68] sm:$0x1] }
  0x4c   : > { %6290 = vmatprep.subr.bf16.mxu1 %v7376_v4  ;;  %v2319_v26 = vsel %vm7206_vm2, %v2314_v15, %v2318_v60  ;;  %v2336_v47 = vrot.slane %v2334_v34, 4  ;;  %v2340_v49 = vshll.u32 %v7402_v20, 16  ;;  %v7417_v60 = vld [vmem:[%s7174_s14 + $0x64] sm:$0xf]  ;;  %v448_v63 = vrot.slane %v446_v55, 4 }
  0x4d   : > { %v420_v7 = vsel %vm7206_vm2, %v415_v59, %v419_v38  ;;  %v433_v16 = vrot.slane %v431_v2, 5  ;;  %v5651_v38 = vcombine.low %v2309_v13, %v2319_v26  ;;  %v455_v59 = vshll.u32 %v225_v43, 16 }
  0x4e   : > { %v5411_v12 = vcombine.low %v410_v48, %v420_v7  ;;  %6449 = vmatpush3.bf16.msra.mxu0 %v6934_v31  ;;  %v2326_v31 = vrot.slane %v2324_v29, 5  ;;  %v449_v48 = vshll.u32 %v224_v35, 16  ;;  %v2337_v57 = vor.u32 %v2336_v47, %v2332_v44  ;;  %v7433_v35 = vld [vmem:[%s7174_s14 + $0x64] sm:$0xf] }
  0x4f   : > { %6482 = vmatprep.subr.bf16.mxu0 %v7395_v6  ;;  %v438_v40 = vor.u32 %v437_v18, %v433_v16  ;;  %6411 = vmatmul.mubr.bf16.gmra.mrb[8].mxu0 %v5651_v38  ;;  %v434_v53 = vsel %vm7206_vm2, %v429_v39, %v433_v16  ;;  %v2342_v58 = vrot.slane %v2340_v49, 5  ;;  %v459_v5 = vshrl.u32 %v225_v43, 16  ;;  %v266_v43 = vld [vmem:[%s7174_s14 + $0x68] sm:$0x1] }
  0x50   : > { %6219 = vmatmul.mubr.bf16.gmra.mrb[8].mxu1 %v5411_v12  ;;  %v2327_v56 = vor.u32 %v2326_v31, %v2323_v42  ;;  %v451_v1 = vrot.slane %v449_v48, 5  ;;  %v2338_v7 = vrot.slane %v2337_v57, 4  ;;  %v457_v9 = vrot.slane %v455_v59, 5 }
  0x51   : > { %v439_v54 = vrot.slane %v438_v40, 4  ;;  %v461_v11 = vrot.slane %v459_v5, 4  ;;  %v465_v12 = vshll.u32 %v265_v50, 16  ;;  %v2345_v13 = vshrl.u32 %v5603_v52, 16  ;;  %v5670_v50 = vld [vmem:[%s7174_s14 + $0xc] sm:$0xe] }
  0x52   : > { %v2328_v3 = vrot.slane %v2327_v56, 4  ;;  %v452_v10 = vor.u32 %v451_v1, %v448_v63  ;;  %v2343_v16 = vsel %vm7206_vm2, %v2338_v7, %v2342_v58  ;;  %v2348_v18 = vshll.u32 %v5603_v52, 16  ;;  %v7448_v5 = vld [vmem:[%s7174_s14 + $0x6c] sm:$0xf] }
  0x53   : > { %v444_v61 = vsel %vm7206_vm2, %v439_v54, %v443_v21  ;;  %v2354_v21 = vshll.u32 %v7417_v60, 16  ;;  %v462_v30 = vor.u32 %v461_v11, %v457_v9  ;;  %v467_v34 = vrot.slane %v465_v12, 5 }
  0x54   : > { %v5412_v2 = vcombine.low %v434_v53, %v444_v61  ;;  %v2333_v15 = vsel %vm7206_vm2, %v2328_v3, %v2332_v44  ;;  %v453_v29 = vrot.slane %v452_v10, 4  ;;  %v2347_v38 = vrot.slane %v2345_v13, 4 }
  0x55   : > { %v5652_v26 = vcombine.low %v2333_v15, %v2343_v16  ;;  %v2350_v39 = vrot.slane %v2348_v18, 5  ;;  %v2356_v40 = vrot.slane %v2354_v21, 5  ;;  %v2358_v42 = vshrl.u32 %v7417_v60, 16  ;;  %v7460_v21 = vld [vmem:[%s7174_s14 + $0x70] sm:$0xf] }
  0x56   : > { %6222 = vmatprep.mubr.bf16.mxu1 %v5412_v2  ;;  %v458_v31 = vsel %vm7206_vm2, %v453_v29, %v457_v9  ;;  %v463_v44 = vrot.slane %v462_v30, 4  ;;  %v2364_v47 = vshll.u32 %v7426_v17, 16  ;;  %v470_v49 = vshrl.u32 %v7430_v25, 16  ;;  %v7025_v9 = vld [vmem:[%s7174_s14 + $0xb4] sm:$0xff]  }
  0x57   : > { %6414 = vmatprep.mubr.bf16.mxu0 %v5652_v26  ;;  %v2351_v52 = vor.u32 %v2350_v39, %v2347_v38  ;;  %v2360_v53 = vrot.slane %v2358_v42, 4  ;;  %v473_v54 = vshll.u32 %v7430_v25, 16  ;;  %v479_v55 = vshll.u32 %v7433_v35, 16 }
  0x58   : > { %v468_v48 = vsel %vm7206_vm2, %v463_v44, %v467_v34  ;;  %v2366_v56 = vrot.slane %v2364_v47, 5  ;;  %v472_v57 = vrot.slane %v470_v49, 4  ;;  %v483_v58 = vshrl.u32 %v7433_v35, 16  ;;  %v7471_v47 = vld [vmem:[%s7174_s14 + $0x78] sm:$0xf] }
  0x59   : > { %v5413_v59 = vcombine.low %v458_v31, %v468_v48  ;;  %v2352_v61 = vrot.slane %v2351_v52, 4  ;;  %v2361_v63 = vor.u32 %v2360_v53, %v2356_v40  ;;  %v475_v1 = vrot.slane %v473_v54, 5  ;;  %v7482_v54 = vld [vmem:[%s7174_s14 + $0x7c] sm:$0xf] }
  0x5a   : > { %v481_v2 = vrot.slane %v479_v55, 5  ;;  %v485_v3 = vrot.slane %v483_v58, 4  ;;  %v489_v7 = vshll.u32 %v266_v43, 16  ;;  %v5686_v10 = vrot.slane %v5670_v50, 9  ;;  %v268_v58 = vld [vmem:[%s7174_s14 + $0x80] sm:$0x1] }
  0x5b   : > { %6223 = vmatmul.mubr.bf16.gmra.mrb[12].mxu1 %v5413_v59  ;;  %v2357_v11 = vsel %vm7206_vm2, %v2352_v61, %v2356_v40  ;;  %v2362_v12 = vrot.slane %v2361_v63, 4  ;;  %v476_v13 = vor.u32 %v475_v1, %v472_v57  ;;  %v2948_v15 = vrot.slane %v7187_v23, 5  ;;  %v267_v40 = vld [vmem:[%s7174_s14 + $0x74] sm:$0x1]  ;;  %v5671_v23 = vld [vmem:[%s7174_s14 + $0x18] sm:$0xe] }
  0x5c   : > { %v486_v16 = vor.u32 %v485_v3, %v481_v2  ;;  %v491_v18 = vrot.slane %v489_v7, 5  ;;  %v494_v26 = vshrl.u32 %v7448_v5, 16  ;;  %v497_v29 = vshll.u32 %v7448_v5, 16 }
  0x5d   : > { %v2367_v30 = vsel %vm7206_vm2, %v2362_v12, %v2366_v56  ;;  %v477_v34 = vrot.slane %v476_v13, 4  ;;  %v2949_v38 = vsel %vm7452_vm5, %v5686_v10, %v2948_v15  ;;  %v2950_v39 = vrot.slane %v2948_v15, 4  ;;  %v5672_v13 = vld [vmem:[%s7174_s14 + $0x24] sm:$0xe] }
  0x5e   : > { %v5653_v42 = vcombine.low %v2357_v11, %v2367_v30  ;;  %v487_v43 = vrot.slane %v486_v16, 4  ;;  %v496_v31 = vrot.slane %v494_v26, 4  ;;  %v499_v44 = vrot.slane %v497_v29, 5  ;;  %v7504_v16 = vld [vmem:[%s7174_s14 + $0x84] sm:$0xf]  ;;  %v6938_v29 = vld [vmem:[%s9010_s1 + $0x188] sm:$0xff]  }
  0x5f   : > { %v482_v49 = vsel %vm7206_vm2, %v477_v34, %v481_v2  ;;  %v2952_v50 = vsel %vm7452_vm5, %v2950_v39, %v2951_v41  ;;  %v503_v52 = vshll.u32 %v7460_v21, 16  ;;  %v507_v53 = vshrl.u32 %v7460_v21, 16 }
  0x60   : > { %6415 = vmatmul.mubr.bf16.gmra.mrb[12].mxu0 %v5653_v42  ;;  %v492_v55 = vsel %vm7206_vm2, %v487_v43, %v491_v18  ;;  %v5718_v48 = vcombine.low %v2949_v38, %v2952_v50  ;;  %v500_v56 = vor.u32 %v499_v44, %v496_v31  ;;  %v513_v57 = vshll.u32 %v267_v40, 16  ;;  %v7512_v40 = vld [vmem:[%s7174_s14 + $0x88] sm:$0xf]  ;;  %v269_v31 = vld [vmem:[%s7174_s14 + $0x8c] sm:$0x1] }
  0x61   : > { %v5414_v59 = vcombine.low %v482_v49, %v492_v55  ;;  %v505_v24 = vrot.slane %v503_v52, 5  ;;  %v509_v61 = vrot.slane %v507_v53, 4  ;;  %v5687_v63 = vrot.slane %v5671_v23, 9 }
  0x62   : > { %6450 = vmatprep.mubr.bf16.mxu0 %v5718_v48  ;;  %v501_v41 = vrot.slane %v500_v56, 4  ;;  %v515_v1 = vrot.slane %v513_v57, 5  ;;  %v2959_v2 = vsel %vm7452_vm5, %v7255_v36, %v2958_v32  ;;  %v518_v3 = vshrl.u32 %v7471_v47, 16 }
  0x63   : > { %6226 = vmatprep.mubr.bf16.mxu1 %v5414_v59  ;;  %v510_v7 = vor.u32 %v509_v61, %v505_v24  ;;  %v2956_v10 = vsel %vm7452_vm5, %v5687_v63, %v2955_v27  ;;  %v521_v11 = vshll.u32 %v7471_v47, 16  ;;  %v527_v12 = vshll.u32 %v7482_v54, 16 }
  0x64   : > { %v506_v8 = vsel %vm7206_vm2, %v501_v41, %v505_v24  ;;  %v5719_v15 = vcombine.low %v2956_v10, %v2959_v2  ;;  %v520_v32 = vrot.slane %v518_v3, 4  ;;  %v531_v36 = vshrl.u32 %v7482_v54, 16  ;;  %v7533_v2 = vld [vmem:[%s7174_s14 + $0x90] sm:$0xf]  ;;  %v7536_v3 = vld [vmem:[%s7174_s14 + $0x94] sm:$0xf] }
  0x65   : > { %v511_v62 = vrot.slane %v510_v7, 4  ;;  %v523_v18 = vrot.slane %v521_v11, 5  ;;  %v529_v26 = vrot.slane %v527_v12, 5  ;;  %v537_v27 = vshll.u32 %v268_v58, 16 }
  0x66   : > { %v533_v30 = vrot.slane %v531_v36, 4  ;;  %v5688_v34 = vrot.slane %v5672_v13, 9  ;;  %v2962_v38 = vrot.slane %v7259_v45, 5  ;;  %v2965_v39 = vrot.slane %v7265_v51, 5  ;;  %v5673_v45 = vld [vmem:[%s7174_s14 + $0x30] sm:$0xe] }
  0x67   : > { %v516_v23 = vsel %vm7206_vm2, %v511_v62, %v515_v1  ;;  %v524_v42 = vor.u32 %v523_v18, %v520_v32  ;;  %v539_v43 = vrot.slane %v537_v27, 5  ;;  %v542_v44 = vshrl.u32 %v7504_v16, 16  ;;  %v270_v62 = vld [vmem:[%s7174_s14 + $0x98] sm:$0x1] }
  0x68   : > { %v5415_v49 = vcombine.low %v506_v8, %v516_v23  ;;  %6451 = vmatmul.mubr.bf16.vlgmr.msra.gmra.mrb[0].mxu0 %v5719_v15  ;;  %v534_v50 = vor.u32 %v533_v30, %v529_v26  ;;  %v2963_v52 = vsel %vm7452_vm5, %v5688_v34, %v2962_v38  ;;  %v2964_v53 = vrot.slane %v2962_v38, 4  ;;  %v6942_v30 = vld [vmem:[%s9010_s1 + $0x198] sm:$0xff]  }
  0x69   : > { %6483 = vmatpush3.bf16.msra.mxu0 %v7395_v6  ;;  %v525_v51 = vrot.slane %v524_v42, 4  ;;  %v544_v55 = vrot.slane %v542_v44, 4  ;;  %v545_v48 = vshll.u32 %v7504_v16, 16  ;;  %v551_v56 = vshll.u32 %v7512_v40, 16  ;;  %v6940_v6 = vld [vmem:[%s9010_s1 + $0x190] sm:$0xff]  }
  0x6a   : > { %6227 = vmatmul.mubr.bf16.gmra.mrb[16].mxu1 %v5415_v49  ;;  %v535_v57 = vrot.slane %v534_v50, 4  ;;  %v2966_v58 = vsel %vm7452_vm5, %v2964_v53, %v2965_v39  ;;  %v555_v59 = vshrl.u32 %v7512_v40, 16  ;;  %v561_v24 = vshll.u32 %v269_v31, 16  ;;  %6484 = vmatprep.subr.bf16.mxu0 %v6938_v29  ;;  %v5674_v38 = vld [vmem:[%s7174_s14 + $0x3c] sm:$0xe] }
  0x6b   : > { %v530_v61 = vsel %vm7206_vm2, %v525_v51, %v529_v26  ;;  %v5720_v63 = vcombine.low %v2963_v52, %v2966_v58  ;;  %v547_v41 = vrot.slane %v545_v48, 5  ;;  %v553_v1 = vrot.slane %v551_v56, 5  ;;  %v7554_v31 = vld [vmem:[%s7174_s14 + $0x9c] sm:$0xf]  ;;  %v7563_v48 = vld [vmem:[%s7174_s14 + $0xa0] sm:$0xf] }
  0x6c   : > { %v540_v7 = vsel %vm7206_vm2, %v535_v57, %v539_v43  ;;  %v557_v10 = vrot.slane %v555_v59, 4  ;;  %v563_v11 = vrot.slane %v561_v24, 5  ;;  %v5689_v12 = vrot.slane %v5673_v45, 9  ;;  %v6946_v56 = vld [vmem:[%s9010_s1 + $0x1a0] sm:$0xff]  }
  0x6d   : > { %v5416_v13 = vcombine.low %v530_v61, %v540_v7  ;;  %6454 = vmatprep.mubr.bf16.mxu0 %v5720_v63  ;;  %v548_v8 = vor.u32 %v547_v41, %v544_v55  ;;  %v2969_v15 = vrot.slane %v7290_v33, 5  ;;  %v2972_v32 = vrot.slane %v7301_v46, 5  ;;  %6485 = vmatpush3.bf16.msra.mxu0 %v6938_v29  ;;  %v271_v61 = vld [vmem:[%s7174_s14 + $0xa4] sm:$0x1] }
  0x6e   : > { %v558_v36 = vor.u32 %v557_v10, %v553_v1  ;;  %v566_v18 = vshrl.u32 %v7533_v2, 16  ;;  %v569_v26 = vshll.u32 %v7533_v2, 16  ;;  %v575_v27 = vshll.u32 %v7536_v3, 16  ;;  %6486 = vmatprep.subr.bf16.mxu0 %v6940_v6 }
  0x6f   : > { %6230 = vmatprep.mubr.bf16.mxu1 %v5416_v13  ;;  %v549_v34 = vrot.slane %v548_v8, 4  ;;  %v2970_v33 = vsel %vm7452_vm5, %v5689_v12, %v2969_v15  ;;  %v2971_v46 = vrot.slane %v2969_v15, 4  ;;  %v579_v29 = vshrl.u32 %v7536_v3, 16  ;;  %v5675_v15 = vld [vmem:[%s7174_s14 + $0x48] sm:$0xe] }
  0x70   : > { %v559_v39 = vrot.slane %v558_v36, 4  ;;  %v568_v23 = vrot.slane %v566_v18, 4  ;;  %v571_v42 = vrot.slane %v569_v26, 5  ;;  %v577_v43 = vrot.slane %v575_v27, 5  ;;  %v7588_v27 = vld [vmem:[%s7174_s14 + $0xa8] sm:$0xf] }
  0x71   : > { %v554_v44 = vsel %vm7206_vm2, %v549_v34, %v553_v1  ;;  %v2973_v49 = vsel %vm7452_vm5, %v2971_v46, %v2972_v32  ;;  %v581_v50 = vrot.slane %v579_v29, 4  ;;  %v585_v52 = vshll.u32 %v270_v62, 16  ;;  %6487 = vmatpush3.bf16.msra.mxu0 %v6940_v6  ;;  %v6950_v32 = vld [vmem:[%s9010_s1 + $0x1a8] sm:$0xff]  }
  0x72   : > { %v564_v53 = vsel %vm7206_vm2, %v559_v39, %v563_v11  ;;  %v5721_v45 = vcombine.low %v2970_v33, %v2973_v49  ;;  %v572_v51 = vor.u32 %v571_v42, %v568_v23  ;;  %v5690_v55 = vrot.slane %v5674_v38, 9  ;;  %6488 = vmatprep.subr.bf16.mxu0 %v6942_v30  ;;  %v7591_v29 = vld [vmem:[%s7174_s14 + $0xac] sm:$0xf] }
  0x73   : > { %v5417_v57 = vcombine.low %v554_v44, %v564_v53  ;;  %v582_v58 = vor.u32 %v581_v50, %v577_v43  ;;  %v587_v59 = vrot.slane %v585_v52, 5  ;;  %v2976_v24 = vrot.slane %v7324_v19, 5  ;;  %v5676_v53 = vld [vmem:[%s7174_s14 + $0x54] sm:$0xe] }
  0x74   : > { %6455 = vmatmul.mubr.bf16.gmra.mrb[4].mxu0 %v5721_v45  ;;  %v573_v6 = vrot.slane %v572_v51, 4  ;;  %v2979_v63 = vrot.slane %v7332_v28, 5  ;;  %v590_v41 = vshrl.u32 %v7554_v31, 16  ;;  %v593_v1 = vshll.u32 %v7554_v31, 16  ;;  %v6954_v45 = vld [vmem:[%s9010_s1 + $0x1b0] sm:$0xff]  }
  0x75   : > { %6231 = vmatmul.mubr.bf16.gmra.mrb[20].mxu1 %v5417_v57  ;;  %v583_v7 = vrot.slane %v582_v58, 4  ;;  %v2977_v10 = vsel %vm7452_vm5, %v5690_v55, %v2976_v24  ;;  %v2978_v11 = vrot.slane %v2976_v24, 4  ;;  %v599_v12 = vshll.u32 %v7563_v48, 16  ;;  %6489 = vmatpush3.bf16.msra.mxu0 %v6942_v30 }
  0x76   : > { %v578_v19 = vsel %vm7206_vm2, %v573_v6, %v577_v43  ;;  %v592_v13 = vrot.slane %v590_v41, 4  ;;  %v595_v28 = vrot.slane %v593_v1, 5  ;;  %v603_v8 = vshrl.u32 %v7563_v48, 16  ;;  %6490 = vmatprep.subr.bf16.mxu0 %v6946_v56  ;;  %v272_v43 = vld [vmem:[%s7174_s14 + $0xb0] sm:$0x1] }
  0x77   : > { %v588_v36 = vsel %vm7206_vm2, %v583_v7, %v587_v59  ;;  %v2980_v62 = vsel %vm7452_vm5, %v2978_v11, %v2979_v63  ;;  %v601_v18 = vrot.slane %v599_v12, 5  ;;  %v609_v26 = vshll.u32 %v271_v61, 16  ;;  %v7611_v41 = vld [vmem:[%s7174_s14 + $0xb4] sm:$0xf]  ;;  %v7616_v12 = vld [vmem:[%s7174_s14 + $0xb8] sm:$0xf] }
  0x78   : > { %v5418_v30 = vcombine.low %v578_v19, %v588_v36  ;;  %v5722_v34 = vcombine.low %v2977_v10, %v2980_v62  ;;  %v596_v33 = vor.u32 %v595_v28, %v592_v13  ;;  %v605_v46 = vrot.slane %v603_v8, 4  ;;  %v273_v19 = vld [vmem:[%s7174_s14 + $0xbc] sm:$0x1] }
  0x79   : > { %v611_v38 = vrot.slane %v609_v26, 5  ;;  %v5691_v39 = vrot.slane %v5675_v15, 9  ;;  %v2983_v23 = vrot.slane %v7359_v14, 5  ;;  %v2986_v42 = vrot.slane %v7365_v22, 5  ;;  %6491 = vmatpush3.bf16.msra.mxu0 %v6946_v56  ;;  %v6958_v13 = vld [vmem:[%s9010_s1 + $0x1b8] sm:$0xff]  }
  0x7a   : > { %6234 = vmatprep.mubr.bf16.mxu1 %v5418_v30  ;;  %6458 = vmatprep.mubr.bf16.mxu0 %v5722_v34  ;;  %v597_v44 = vrot.slane %v596_v33, 4  ;;  %v606_v49 = vor.u32 %v605_v46, %v601_v18  ;;  %v614_v50 = vshrl.u32 %v7588_v27, 16  ;;  %v617_v52 = vshll.u32 %v7588_v27, 16  ;;  %v5677_v30 = vld [vmem:[%s7174_s14 + $0x60] sm:$0xe] }
  0x7b   : > { %v2984_v14 = vsel %vm7452_vm5, %v5691_v39, %v2983_v23  ;;  %v2985_v22 = vrot.slane %v2983_v23, 4  ;;  %v623_v51 = vshll.u32 %v7591_v29, 16  ;;  %v627_v55 = vshrl.u32 %v7591_v29, 16  ;;  %6492 = vmatprep.subr.bf16.mxu0 %v6950_v32  ;;  %v5607_v39 = vld [vmem:[%s7174_s14 + $0x70] sm:$0xf] }
  0x7c   : > { %v602_v56 = vsel %vm7206_vm2, %v597_v44, %v601_v18  ;;  %v607_v57 = vrot.slane %v606_v49, 4  ;;  %v616_v58 = vrot.slane %v614_v50, 4  ;;  %v619_v59 = vrot.slane %v617_v52, 5  ;;  %v7638_v44 = vld [vmem:[%s9010_s1 + $0x1c0] sm:$0xff]  }
  0x7d   : > { %v2987_v24 = vsel %vm7452_vm5, %v2985_v22, %v2986_v42  ;;  %v625_v61 = vrot.slane %v623_v51, 5  ;;  %v629_v6 = vrot.slane %v627_v55, 4  ;;  %v633_v63 = vshll.u32 %v272_v43, 16  ;;  %6493 = vmatpush3.bf16.msra.mxu0 %v6950_v32  ;;  %v5678_v43 = vld [vmem:[%s7174_s14 + $0x6c] sm:$0xe] }
  0x7e   : > { %v612_v1 = vsel %vm7206_vm2, %v607_v57, %v611_v38  ;;  %v5723_v7 = vcombine.low %v2984_v14, %v2987_v24  ;;  %v620_v10 = vor.u32 %v619_v59, %v616_v58  ;;  %v5692_v11 = vrot.slane %v5676_v53, 9  ;;  %6494 = vmatprep.subr.bf16.mxu0 %v6954_v45  ;;  %v5608_v55 = vld [vmem:[%s7174_s14 + $0x74] sm:$0x1]  ;;  %v5679_v24 = vld [vmem:[%s7174_s14 + $0x78] sm:$0xe] }
  0x7f   : > { %v5419_v28 = vcombine.low %v602_v56, %v612_v1  ;;  %v630_v8 = vor.u32 %v629_v6, %v625_v61  ;;  %v635_v15 = vrot.slane %v633_v63, 5  ;;  %v2990_v32 = vrot.slane %v7390_v0, 5 }
  0x80   : > { %6459 = vmatmul.mubr.bf16.gmra.mrb[8].mxu0 %v5723_v7  ;;  %v621_v36 = vrot.slane %v620_v10, 4  ;;  %v2993_v62 = vrot.slane %v7402_v20, 5  ;;  %v638_v18 = vshrl.u32 %v7611_v41, 16  ;;  %v641_v26 = vshll.u32 %v7611_v41, 16 }
  0x81   : > { %6235 = vmatmul.mubr.bf16.gmra.mrb[24].mxu1 %v5419_v28  ;;  %v631_v34 = vrot.slane %v630_v8, 4  ;;  %v2991_v33 = vsel %vm7452_vm5, %v5692_v11, %v2990_v32  ;;  %v2992_v46 = vrot.slane %v2990_v32, 4  ;;  %v647_v38 = vshll.u32 %v7616_v12, 16  ;;  %6495 = vmatpush3.bf16.msra.mxu0 %v6954_v45  ;;  %v7651_v11 = vld [vmem:[%s7174_s14 + $0x7c] sm:$0xf] }
  0x82   : > { %v626_v0 = vsel %vm7206_vm2, %v621_v36, %v625_v61  ;;  %v640_v20 = vrot.slane %v638_v18, 4  ;;  %v643_v23 = vrot.slane %v641_v26, 5  ;;  %v651_v42 = vshrl.u32 %v7616_v12, 16  ;;  %6496 = vmatprep.subr.bf16.mxu0 %v6958_v13  ;;  %v7027_v36 = vld [vmem:[%s7174_s14] sm:$0xf] }
  0x83   : > { %v636_v49 = vsel %vm7206_vm2, %v631_v34, %v635_v15  ;;  %v2994_v50 = vsel %vm7452_vm5, %v2992_v46, %v2993_v62  ;;  %v649_v52 = vrot.slane %v647_v38, 5  ;;  %v657_v53 = vshll.u32 %v273_v19, 16  ;;  %v5613_v15 = vld [vmem:[%s7174_s14 + $0x88] sm:$0xf]  ;;  %v7666_v62 = vld [vmem:[%s7174_s14 + $0x4] sm:$0xf] }
  0x84   : > { %v5420_v45 = vcombine.low %v626_v0, %v636_v49  ;;  %v5724_v14 = vcombine.low %v2991_v33, %v2994_v50  ;;  %v644_v22 = vor.u32 %v643_v23, %v640_v20  ;;  %v653_v51 = vrot.slane %v651_v42, 4  ;;  %v5614_v26 = vld [vmem:[%s7174_s14 + $0x8c] sm:$0x1]  ;;  %v5617_v23 = vld [vmem:[%s7174_s14 + $0x98] sm:$0x1] }
  0x85   : > { %v659_v56 = vrot.slane %v657_v53, 5  ;;  %v5693_v57 = vrot.slane %v5677_v30, 9  ;;  %v2997_v58 = vrot.slane %v7417_v60, 5  ;;  %v3000_v59 = vrot.slane %v7426_v17, 5  ;;  %6497 = vmatpush3.bf16.msra.mxu0 %v6958_v13  ;;  %v7654_v17 = vld [vmem:[%s7174_s14 + $0x80] sm:$0x1] }
  0x86   : > { %6238 = vmatprep.mubr.bf16.mxu1 %v5420_v45  ;;  %6462 = vmatprep.mubr.bf16.mxu0 %v5724_v14  ;;  %v645_v61 = vrot.slane %v644_v22, 4  ;;  %v654_v6 = vor.u32 %v653_v51, %v649_v52  ;;  %v5694_v63 = vrot.slane %v5678_v43, 9  ;;  %v3004_v1 = vrot.slane %v5607_v39, 5  ;;  %v5680_v30 = vld [vmem:[%s7174_s14 + $0x84] sm:$0xe] }
  0x87   : > { %v2998_v7 = vsel %vm7452_vm5, %v5693_v57, %v2997_v58  ;;  %v2999_v10 = vrot.slane %v2997_v58, 4  ;;  %v3007_v60 = vrot.slane %v5608_v55, 5  ;;  %6530 = vmatprep.subr.bf16.mxu0 %v7638_v44  ;;  %v5430_v18 = vcombine.low %v7027_v36, %v7666_v62  ;;  %v5616_v39 = vld [vmem:[%s7174_s14 + $0x94] sm:$0xf]  ;;  %v5681_v42 = vld [vmem:[%s7174_s14 + $0x90] sm:$0xe] }
  0x88   : > { %v650_v19 = vsel %vm7206_vm2, %v645_v61, %v649_v52  ;;  %v655_v13 = vrot.slane %v654_v6, 4  ;;  %v3005_v28 = vsel %vm7452_vm5, %v5694_v63, %v3004_v1  ;;  %v3006_v8 = vrot.slane %v3004_v1, 4  ;;  %v5682_v50 = vld [vmem:[%s7174_s14 + $0x9c] sm:$0xe]  ;;  %v5619_v14 = vld [vmem:[%s7174_s14 + $0xa0] sm:$0xf] }
  0x89   : > { %v3001_v32 = vsel %vm7452_vm5, %v2999_v10, %v3000_v59  ;;  %v5695_v38 = vrot.slane %v5679_v24, 9  ;;  %v3011_v43 = vrot.slane %v7651_v11, 5  ;;  %v3014_v49 = vrot.slane %v7654_v17, 5  ;;  %v5620_v22 = vld [vmem:[%s7174_s14 + $0xa4] sm:$0x1] }
  0x8a   : > { %v660_v34 = vsel %vm7206_vm2, %v655_v13, %v659_v56  ;;  %v5725_v33 = vcombine.low %v2998_v7, %v3001_v32  ;;  %v3008_v46 = vsel %vm7452_vm5, %v3006_v8, %v3007_v60  ;;  %v5696_v52 = vrot.slane %v5680_v30, 9  ;;  %v5622_v59 = vld [vmem:[%s7174_s14 + $0xac] sm:$0xf]  ;;  %v7690_v61 = vld [vmem:[%s7174_s14 + $0x10] sm:$0xf] }
  0x8b   : > { %v5421_v0 = vcombine.low %v650_v19, %v660_v34  ;;  %v5726_v20 = vcombine.low %v3005_v28, %v3008_v46  ;;  %v3018_v53 = vrot.slane %v5613_v15, 5  ;;  %v3021_v45 = vrot.slane %v5614_v26, 5  ;;  %v7029_v24 = vld [vmem:[%s7174_s14 + $0xc] sm:$0xf]  ;;  %v7031_v8 = vld [vmem:[%s7174_s14 + $0x18] sm:$0xf] }
  0x8c   : > { %6463 = vmatmul.mubr.bf16.gmra.mrb[12].mxu0 %v5725_v33  ;;  %v3012_v51 = vsel %vm7452_vm5, %v5695_v38, %v3011_v43  ;;  %v3013_v55 = vrot.slane %v3011_v43, 4  ;;  %v3025_v58 = vrot.slane %v5616_v39, 5  ;;  %v5431_v6 = vcombine.low %v7029_v24, %v7690_v61  ;;  %v6949_v19 = vld [vmem:[%s9010_s1 + $0x88] sm:$0xff]   ;;  %v7702_v15 = vld [vmem:[%s7174_s14 + $0x1c] sm:$0xf] }
  0x8d   : > { %6239 = vmatmul.mubr.bf16.gmra.mrb[28].mxu1 %v5421_v0  ;;  %6466 = vmatprep.mubr.bf16.mxu0 %v5726_v20  ;;  %v3019_v56 = vsel %vm7452_vm5, %v5696_v52, %v3018_v53  ;;  %v3020_v57 = vrot.slane %v3018_v53, 4  ;;  %v5697_v1 = vrot.slane %v5681_v42, 9  ;;  %v3028_v7 = vrot.slane %v5617_v23, 5  ;;  %v5623_v30 = vld [vmem:[%s7174_s14 + $0xb0] sm:$0x1] }
  0x8e   : > { %6258 = vmatprep.mubr.bf16.mxu1 %v5430_v18  ;;  %v3015_v63 = vsel %vm7452_vm5, %v3013_v55, %v3014_v49  ;;  %v3027_v13 = vrot.slane %v3025_v58, 4  ;;  %v5698_v28 = vrot.slane %v5682_v50, 9  ;;  %v5432_v32 = vcombine.low %v7031_v8, %v7702_v15  ;;  %v5683_v34 = vld [vmem:[%s7174_s14 + $0xa8] sm:$0xe]  ;;  %v5625_v33 = vld [vmem:[%s7174_s14 + $0xb8] sm:$0xf] }
  0x8f   : > { %v5727_v10 = vcombine.low %v3012_v51, %v3015_v63  ;;  %v3022_v60 = vsel %vm7452_vm5, %v3020_v57, %v3021_v45  ;;  %v3032_v18 = vrot.slane %v5619_v14, 5  ;;  %v3035_v26 = vrot.slane %v5620_v22, 5  ;;  %v5626_v20 = vld [vmem:[%s7174_s14 + $0xbc] sm:$0x1]  ;;  %v5684_v23 = vld [vmem:[%s7174_s14 + $0xb4] sm:$0xe] }
  0x90   : > { %v5728_v36 = vcombine.low %v3019_v56, %v3022_v60  ;;  %v3039_v38 = vrot.slane %v5622_v59, 5  ;;  %v3026_v39 = vsel %vm7452_vm5, %v5697_v1, %v3025_v58  ;;  %v3029_v0 = vsel %vm7452_vm5, %v3027_v13, %v3028_v7  ;;  %v6953_v50 = vld [vmem:[%s9010_s1 + $0x90] sm:$0xff]   ;;  %v5628_v53 = vld [vmem:[%s7174_s14 + $0xc4] sm:$0xf]  ;;  %v7725_v51 = vld [vmem:[%s7174_s14 + $0x28] sm:$0xf] }
  0x91   : > { %v3034_v46 = vrot.slane %v3032_v18, 4  ;;  %v3033_v42 = vsel %vm7452_vm5, %v5698_v28, %v3032_v18  ;;  %v3046_v49 = vrot.slane %v5625_v33, 5  ;;  %v5699_v52 = vrot.slane %v5683_v34, 9  ;;  %v7033_v22 = vld [vmem:[%s7174_s14 + $0x24] sm:$0xf]  ;;  %v6957_v1 = vld [vmem:[%s9010_s1 + $0x98] sm:$0xff]  }
  0x92   : > { %v5729_v45 = vcombine.low %v3026_v39, %v3029_v0  ;;  %v3041_v14 = vrot.slane %v3039_v38, 4  ;;  %v5433_v55 = vcombine.low %v7033_v22, %v7725_v51  ;;  %v7035_v57 = vld [vmem:[%s7174_s14 + $0x30] sm:$0xf]  ;;  %v7730_v58 = vld [vmem:[%s7174_s14 + $0x34] sm:$0xf]  ;;  %v5700_v24 = vrot.slane %v5684_v23, 9 }
  0x93   : > { %v3036_v43 = vsel %vm7452_vm5, %v3034_v46, %v3035_v26  ;;  %v5434_v59 = vcombine.low %v7035_v57, %v7730_v58  ;;  %v3049_v63 = vrot.slane %v5626_v20, 5  ;;  %v5685_v7 = vld [vmem:[%s7174_s14 + $0xc0] sm:$0xe]  ;;  %v3040_v60 = vsel %vm7452_vm5, %v5699_v52, %v3039_v38  ;;  %v5629_v8 = vld [vmem:[%s7174_s14 + $0xc8] sm:$0x1]  ;;  %v6960_v22 = vld [vmem:[%s7174_s14 + $0x18] sm:$0xff]  }
  0x94   : > { %6467 = vmatmul.mubr.bf16.gmra.mrb[16].mxu0 %v5727_v10  ;;  %v5730_v56 = vcombine.low %v3033_v42, %v3036_v43  ;;  %v3053_v10 = vrot.slane %v5628_v53, 5  ;;  %v3047_v13 = vsel %vm7452_vm5, %v5700_v24, %v3046_v49  ;;  %v5701_v18 = vrot.slane %v5685_v7, 9  ;;  %v7037_v26 = vld [vmem:[%s7174_s14 + $0x3c] sm:$0xf]  ;;  %v7039_v39 = vld [vmem:[%s7174_s14 + $0x48] sm:$0xf] }
  0x95   : > { %6259 = vmatmul.mubr.bf16.vlgmr.msra.gmra.mrb[0].mxu1 %v5431_v6  ;;  %6470 = vmatprep.mubr.bf16.mxu0 %v5728_v36  ;;  %v3048_v6 = vrot.slane %v3046_v49, 4  ;;  %v3056_v38 = vrot.slane %v5629_v8, 5  ;;  %v7756_v0 = vld [vmem:[%s7174_s14 + $0x4c] sm:$0xf]  ;;  %v6974_v49 = vld [vmem:[%s9010_s1 + $0xb0] sm:$0xff]   ;;  %v2406_v52 = vshrl.u32 %v7651_v11, 16 }
  0x96   : > { %6291 = vmatpush3.bf16.msra.mxu1 %v7376_v4  ;;  %6262 = vmatprep.mubr.bf16.mxu1 %v5432_v32  ;;  %v3042_v4 = vrot.slane %v5623_v30, 5  ;;  %v6962_v32 = vld [vmem:[%s9010_s1 + $0xa0] sm:$0xff]   ;;  %v3055_v46 = vrot.slane %v3053_v10, 4  ;;  %v5436_v20 = vcombine.low %v7039_v39, %v7756_v0  ;;  %v6968_v23 = vld [vmem:[%s9010_s1 + $0xa8] sm:$0xff]   ;;  %v3054_v42 = vsel %vm7452_vm5, %v5701_v18, %v3053_v10  ;;  %v6966_v18 = vld [vmem:[%s7174_s14 + $0x30] sm:$0xff]  }
  0x97   : > { %6292 = vmatprep.subr.bf16.mxu1 %v6949_v19  ;;  %v3050_v28 = vsel %vm7452_vm5, %v3048_v6, %v3049_v63  ;;  %v7751_v30 = vld [vmem:[%s7174_s14 + $0x40] sm:$0xf]  ;;  %v7784_v57 = vrot.slane %v2406_v52, 4  ;;  %v6963_v6 = vld [vmem:[%s7174_s14 + $0x24] sm:$0xff]   ;;  %v1316_v7 = vrot.slane %v7690_v61, 5  ;;  %v2412_v8 = vshll.u32 %v7654_v17, 16 }
  0x98   : > { %v5435_v34 = vcombine.low %v7037_v26, %v7751_v30  ;;  %v5732_v33 = vcombine.low %v3047_v13, %v3050_v28  ;;  %v3057_v43 = vsel %vm7452_vm5, %v3055_v46, %v3056_v38  ;;  %v1256_v63 = vld [vmem:[%s7174_s14] sm:$0xe]  ;;  %v1257_v10 = vld [vmem:[%s7174_s14 + $0xc] sm:$0xe]  ;;  %v1323_v13 = vrot.slane %v7702_v15, 5 }
  0x99   : > { %v5733_v53 = vcombine.low %v3054_v42, %v3057_v43  ;;  %v1259_v61 = vld [vmem:[%s7174_s14 + $0x24] sm:$0xe]  ;;  %v5441_v15 = vcombine.low %v7504_v16, %v7512_v40  ;;  %v5442_v26 = vcombine.low %v7533_v2, %v7536_v3  ;;  %v5454_v17 = vrot.slane %v1256_v63, 9  ;;  %v7045_v38 = vld [vmem:[%s7174_s14 + $0x20] sm:$0x1]  ;;  %v6975_v2 = vld [vmem:[%s7174_s14 + $0x54] sm:$0xff]  }
  0x9a   : > { %6293 = vmatpush3.bf16.msra.mxu1 %v6949_v19  ;;  %v3043_v19 = vsel %vm7452_vm5, %v3041_v14, %v3042_v4  ;;  %v7773_v14 = vld [vmem:[%s7174_s14 + $0x58] sm:$0xf]  ;;  %v1325_v46 = vrot.slane %v1323_v13, 4  ;;  %v1326_v39 = vrot.slane %v7045_v38, 5  ;;  %v7046_v43 = vld [vmem:[%s7174_s14 + $0x2c] sm:$0x1] }
  0x9b   : > { %6294 = vmatprep.subr.bf16.mxu1 %v6953_v50  ;;  %v5731_v36 = vcombine.low %v3040_v60, %v3043_v19  ;;  %v7799_v60 = vld [vmem:[%s9010_s1 + $0xc0] sm:$0xff]   ;;  %v1258_v19 = vld [vmem:[%s7174_s14 + $0x18] sm:$0xe]  ;;  %v7049_v38 = vld [vmem:[%s7174_s14 + $0x50] sm:$0x1]  ;;  %v1358_v16 = vrot.slane %v7773_v14, 5 }
  0x9c   : > { %6471 = vmatmul.mubr.bf16.gmra.mrb[20].mxu0 %v5729_v45  ;;  %v7041_v45 = vld [vmem:[%s7174_s14 + $0x54] sm:$0xf]  ;;  %v7922_v40 = vld [vmem:[%s7174_s14 + $0x64] sm:$0xf] }
  0x9d   : > { %6263 = vmatmul.mubr.bf16.gmra.mrb[4].mxu1 %v5433_v55  ;;  %6474 = vmatprep.mubr.bf16.mxu0 %v5730_v56  ;;  %v5437_v4 = vcombine.low %v7041_v45, %v7773_v14  ;;  %v5438_v55 = vcombine.low %v7430_v25, %v7433_v35  ;;  %v6980_v56 = vld [vmem:[%s9010_s1 + $0xb8] sm:$0xff]   ;;  %v7044_v25 = vld [vmem:[%s7174_s14 + $0x14] sm:$0x1]  ;;  %v6978_v3 = vld [vmem:[%s7174_s14 + $0x60] sm:$0xff]  }
  0x9e   : > { %6266 = vmatprep.mubr.bf16.mxu1 %v5434_v59  ;;  %6295 = vmatpush3.bf16.msra.mxu1 %v6953_v50  ;;  %v2402_v50 = vshll.u32 %v7651_v11, 16  ;;  %v7787_v59 = vld [vmem:[%s7174_s14 + $0x8] sm:$0x1]  ;;  %v1319_v35 = vrot.slane %v7044_v25, 5 }
  0x9f   : > { %6296 = vmatprep.subr.bf16.mxu1 %v6957_v1  ;;  %v1312_v24 = vrot.slane %v7787_v59, 5 }
  0xa0   : > { %v7782_v11 = vrot.slane %v2402_v50, 5 }
  0xa2   : > { %6297 = vmatpush3.bf16.msra.mxu1 %v6957_v1  ;;  %v1309_v1 = vrot.slane %v7666_v62, 5  ;;  %v5439_v62 = vcombine.low %v7448_v5, %v7460_v21  ;;  %v5455_v21 = vrot.slane %v1257_v10, 9  ;;  %v5814_v10 = vld [vmem:[%s7174_s14 + $0x18] sm:$0xf] }
  0xa3   : > { %6298 = vmatprep.subr.bf16.mxu1 %v6962_v32 }
  0xa4   : > { %6475 = vmatmul.mubr.bf16.gmra.mrb[24].mxu0 %v5731_v36  ;;  %v5440_v36 = vcombine.low %v7471_v47, %v7482_v54  ;;  %v1311_v5 = vrot.slane %v1309_v1, 4  ;;  %v6970_v47 = vld [vmem:[%s9010_s1 + $0x1c8] sm:$0xff]   ;;  %v5456_v54 = vrot.slane %v1258_v19, 9  ;;  %v7842_v59 = vsel %vm7452_vm5, %v5454_v17, %v1309_v1  ;;  %v5815_v19 = vld [vmem:[%s7174_s14 + $0x1c] sm:$0xf] }
  0xa5   : > { %6267 = vmatmul.mubr.bf16.gmra.mrb[8].mxu1 %v5435_v34  ;;  %6478 = vmatprep.mubr.bf16.mxu0 %v5732_v33  ;;  %v1337_v34 = vrot.slane %v7730_v58, 5  ;;  %v1318_v33 = vrot.slane %v1316_v7, 4  ;;  %v5457_v58 = vrot.slane %v1259_v61, 9  ;;  %v1351_v1 = vrot.slane %v7756_v0, 5  ;;  %v6972_v0 = vld [vmem:[%s7174_s14 + $0x48] sm:$0xff]  }
  0xa6   : > { %6270 = vmatprep.mubr.bf16.mxu1 %v5436_v20  ;;  %6299 = vmatpush3.bf16.msra.mxu1 %v6962_v32  ;;  %v1330_v32 = vrot.slane %v7725_v51, 5  ;;  %v1260_v51 = vld [vmem:[%s7174_s14 + $0x30] sm:$0xe]  ;;  %v5443_v20 = vcombine.low %v7554_v31, %v7563_v48  ;;  %v7850_v25 = vsel %vm7452_vm5, %v1311_v5, %v1312_v24  ;;  %v7858_v63 = vsel %vm7452_vm5, %v5456_v54, %v1323_v13  ;;  %v1262_v13 = vld [vmem:[%s7174_s14 + $0x48] sm:$0xe] }
  0xa7   : > { %6300 = vmatprep.subr.bf16.mxu1 %v6968_v23  ;;  %v5458_v50 = vrot.slane %v1260_v51, 9  ;;  %v1339_v52 = vrot.slane %v1337_v34, 4  ;;  %v3816_v5 = vshrl.u32 %v5814_v10, 16  ;;  %v3829_v51 = vshrl.u32 %v5815_v19, 16  ;;  %v6981_v48 = vld [vmem:[%s7174_s14 + $0x6c] sm:$0xff]  }
  0xa8   : > { %v1332_v42 = vrot.slane %v1330_v32, 4  ;;  %v7870_v24 = vsel %vm7452_vm5, %v5457_v58, %v1330_v32  ;;  %v7048_v32 = vld [vmem:[%s7174_s14 + $0x44] sm:$0x1]  ;;  %v5460_v54 = vrot.slane %v1262_v13, 9  ;;  %v5818_v13 = vld [vmem:[%s7174_s14 + $0x28] sm:$0xf] }
  0xa9   : > { %v7880_v61 = vsel %vm7452_vm5, %v5458_v50, %v1337_v34  ;;  %v1347_v17 = vrot.slane %v7048_v32, 5  ;;  %v5816_v50 = vld [vmem:[%s7174_s14 + $0x20] sm:$0x1]  ;;  %v1264_v32 = vld [vmem:[%s7174_s14 + $0x60] sm:$0xe] }
  0xaa   : > { %6301 = vmatpush3.bf16.msra.mxu1 %v6968_v23  ;;  %v5444_v23 = vcombine.low %v7588_v27, %v7591_v29 }
  0xab   : > { %6302 = vmatprep.subr.bf16.mxu1 %v6974_v49 }
  0xac   : > { %6479 = vmatmul.mubr.bf16.gmra.mrb[28].mxu0 %v5733_v53  ;;  %v7047_v53 = vld [vmem:[%s7174_s14 + $0x38] sm:$0x1] }
  0xad   : > { %6271 = vmatmul.mubr.bf16.gmra.mrb[12].mxu1 %v5437_v4  ;;  %6498 = vmatprep.mubr.bf16.mxu0 %v6960_v22  ;;  %v1340_v45 = vrot.slane %v7047_v53, 5  ;;  %v1261_v4 = vld [vmem:[%s7174_s14 + $0x3c] sm:$0xe]  ;;  %v1344_v22 = vrot.slane %v7751_v30, 5  ;;  %v7846_v30 = vsel %vm7452_vm5, %v5455_v21, %v1316_v7  ;;  %v3819_v21 = vshll.u32 %v5814_v10, 16  ;;  %v6986_v53 = vld [vmem:[%s9010_s1 + $0x1e0] sm:$0xff]  }
  0xae   : > { %6274 = vmatprep.mubr.bf16.mxu1 %v5438_v55  ;;  %6303 = vmatpush3.bf16.msra.mxu1 %v6974_v49  ;;  %v1333_v49 = vrot.slane %v7046_v43, 5  ;;  %v7833_v55 = vrot.slane %v2412_v8, 5  ;;  %v6969_v7 = vld [vmem:[%s7174_s14 + $0x3c] sm:$0xff]   ;;  %v7866_v8 = vsel %vm7452_vm5, %v1325_v46, %v1326_v39  ;;  %v1353_v46 = vrot.slane %v1351_v1, 4  ;;  %v5820_v43 = vld [vmem:[%s7174_s14 + $0x30] sm:$0xf] }
  0xaf   : > { %6304 = vmatprep.subr.bf16.mxu1 %v6980_v56  ;;  %v1354_v39 = vrot.slane %v7049_v38, 5  ;;  %v3818_v10 = vrot.slane %v3816_v5, 4 }
  0xb0   : > { %9032 = vst [vmem:[#allocation2_spill] sm:$0xff] %v7833_v55 }
  0xb2   : > { %6305 = vmatpush3.bf16.msra.mxu1 %v6980_v56  ;;  %v6976_v56 = vld [vmem:[%s9010_s1 + $0x1d0] sm:$0xff]  }
  0xb3   : > { %6338 = vmatprep.subr.bf16.mxu1 %v7799_v60 }
  0xb4   : > { %6499 = vmatmul.mubr.bf16.vlgmr.msra.gmra.mrb[0].mxu0 %v6963_v6  ;;  %v7854_v6 = vsel %vm7452_vm5, %v1318_v33, %v1319_v35  ;;  %v7874_v35 = vsel %vm7452_vm5, %v1332_v42, %v1333_v49  ;;  %v3825_v33 = vshll.u32 %v5815_v19, 16  ;;  %v3821_v19 = vrot.slane %v3819_v21, 5  ;;  %v1265_v21 = vld [vmem:[%s7174_s14 + $0x6c] sm:$0xe] }
  0xb5   : > { %6275 = vmatmul.mubr.bf16.gmra.mrb[16].mxu1 %v5439_v62  ;;  %6531 = vmatpush3.bf16.msra.mxu0 %v7638_v44  ;;  %v5459_v62 = vrot.slane %v1261_v4, 9  ;;  %v5463_v58 = vrot.slane %v1265_v21, 9 }
  0xb6   : > { %6278 = vmatprep.mubr.bf16.mxu1 %v5440_v36  ;;  %6502 = vmatprep.mubr.bf16.mxu0 %v6966_v18  ;;  %v7884_v36 = vsel %vm7452_vm5, %v1339_v52, %v1340_v45  ;;  %v1346_v18 = vrot.slane %v1344_v22, 4  ;;  %v5817_v52 = vld [vmem:[%s7174_s14 + $0x24] sm:$0xf]  ;;  %v3853_v45 = vshrl.u32 %v5818_v13, 16 }
  0xb7   : > { %6532 = vmatprep.subr.bf16.mxu0 %v6970_v47  ;;  %v7901_v49 = vsel %vm7452_vm5, %v5459_v62, %v1344_v22  ;;  %v7918_v22 = vld [vmem:[%s7174_s14 + $0x54] sm:$0xe]  ;;  %v3831_v62 = vrot.slane %v3829_v51, 4  ;;  %v3840_v38 = vshrl.u32 %v5817_v52, 16  ;;  %v3843_v28 = vshll.u32 %v5817_v52, 16 }
  0xb8   : > { %v7915_v4 = vsel %vm7452_vm5, %v1346_v18, %v1347_v17  ;;  %v3835_v17 = vshll.u32 %v5816_v50, 16  ;;  %v5461_v5 = vrot.slane %v7918_v22, 9  ;;  %v6990_v50 = vld [vmem:[%s9010_s1 + $0x1e8] sm:$0xff]   ;;  %v1360_v52 = vrot.slane %v1358_v16, 4 }
  0xb9   : > { %6533 = vmatpush3.bf16.msra.mxu0 %v6970_v47  ;;  %v6982_v47 = vld [vmem:[%s9010_s1 + $0x1d8] sm:$0xff]   ;;  %v3822_v22 = vor.u32 %v3821_v19, %v3818_v10  ;;  %v3842_v34 = vrot.slane %v3840_v38, 4  ;;  %v3845_v44 = vrot.slane %v3843_v28, 5  ;;  %v7054_v10 = vld [vmem:[%s7174_s14 + $0x74] sm:$0x1]  ;;  %v3855_v28 = vrot.slane %v3853_v45, 4 }
  0xba   : > { %6534 = vmatprep.subr.bf16.mxu0 %v6976_v56  ;;  %v7956_v42 = vrot.slane %v3835_v17, 5  ;;  %v1375_v19 = vrot.slane %v7054_v10, 5  ;;  %v3864_v38 = vshrl.u32 %v5820_v43, 16  ;;  %v7981_v27 = vsel %vm7452_vm5, %v5461_v5, %v1358_v16 }
  0xbb   : > { %v3823_v21 = vrot.slane %v3822_v22, 4 }
  0xbc   : > { %6503 = vmatmul.mubr.bf16.gmra.mrb[4].mxu0 %v6969_v7  ;;  %v7928_v7 = vrot.slane %v3825_v33, 5  ;;  %v7052_v33 = vld [vmem:[%s7174_s14 + $0x70] sm:$0xf] }
  0xbd   : > { %6279 = vmatmul.mubr.bf16.gmra.mrb[20].mxu1 %v5441_v15  ;;  %6506 = vmatprep.mubr.bf16.mxu0 %v6972_v0  ;;  %v1365_v15 = vrot.slane %v7922_v40, 5  ;;  %v7051_v0 = vld [vmem:[%s7174_s14 + $0x5c] sm:$0x1]  ;;  %v1372_v51 = vrot.slane %v7052_v33, 5 }
  0xbe   : > { %6282 = vmatprep.mubr.bf16.mxu1 %v5442_v26  ;;  %6535 = vmatpush3.bf16.msra.mxu0 %v6976_v56  ;;  %v1361_v18 = vrot.slane %v7051_v0, 5  ;;  %v7937_v26 = vsel %vm7452_vm5, %v5460_v54, %v1351_v1  ;;  %v7941_v56 = vsel %vm7452_vm5, %v1353_v46, %v1354_v39  ;;  %v7053_v1 = vld [vmem:[%s7174_s14 + $0x68] sm:$0x1]  ;;  %v3849_v0 = vshll.u32 %v5818_v13, 16  ;;  %v6998_v40 = vld [vmem:[%s9010_s1 + $0x1f8] sm:$0xff]  }
  0xbf   : > { %6536 = vmatprep.subr.bf16.mxu0 %v6982_v47  ;;  %v1368_v54 = vrot.slane %v7053_v1, 5  ;;  %v5462_v46 = vrot.slane %v1264_v32, 9  ;;  %v1367_v39 = vrot.slane %v1365_v15, 4  ;;  %v3832_v33 = vor.u32 %v3831_v62, %v7928_v7  ;;  %v5821_v1 = vld [vmem:[%s7174_s14 + $0x34] sm:$0xf] }
  0xc0   : > { %v1374_v32 = vrot.slane %v1372_v51, 4  ;;  %v5819_v62 = vld [vmem:[%s7174_s14 + $0x2c] sm:$0x1]  ;;  %v7968_v17 = vrot.slane %v3849_v0, 5  ;;  %v3873_v13 = vshll.u32 %v5821_v1, 16  ;;  %v3877_v31 = vshrl.u32 %v5821_v1, 16 }
  0xc1   : > { %v3833_v10 = vrot.slane %v3832_v33, 4  ;;  %v7985_v29 = vsel %vm7452_vm5, %v1360_v52, %v1361_v18  ;;  %v7992_v45 = vsel %vm7452_vm5, %v5462_v46, %v1365_v15  ;;  %v7996_v14 = vsel %vm7452_vm5, %v1367_v39, %v1368_v54  ;;  %v1266_v18 = vld [vmem:[%s7174_s14 + $0x78] sm:$0xe] }
  0xc2   : > { %6537 = vmatpush3.bf16.msra.mxu0 %v6982_v47  ;;  %v8000_v16 = vsel %vm7452_vm5, %v5463_v58, %v1372_v51  ;;  %v8010_v15 = vsel %vm7452_vm5, %v1374_v32, %v1375_v19  ;;  %v3856_v5 = vor.u32 %v3855_v28, %v7968_v17  ;;  %v3866_v52 = vrot.slane %v3864_v38, 4  ;;  %v5823_v58 = vld [vmem:[%s7174_s14 + $0x3c] sm:$0xf]  ;;  %v5824_v51 = vld [vmem:[%s7174_s14 + $0x40] sm:$0xf] }
  0xc3   : > { %6538 = vmatprep.subr.bf16.mxu0 %v6986_v53  ;;  %v3828_v0 = vsel %vm7206_vm2, %v3823_v21, %v7928_v7  ;;  %v3838_v46 = vsel %vm7206_vm2, %v3833_v10, %v7956_v42  ;;  %v8021_v39 = vrot.slane %v3873_v13, 5  ;;  %v3879_v22 = vrot.slane %v3877_v31, 4  ;;  %v7056_v19 = vld [vmem:[%s7174_s14 + $0x80] sm:$0x1]  ;;  %v8180_v47 = vld [vmem:[%s7174_s14 + $0x68] sm:$0x1] }
  0xc4   : > { %6507 = vmatmul.mubr.bf16.gmra.mrb[8].mxu0 %v6975_v2  ;;  %v3867_v2 = vshll.u32 %v5820_v43, 16  ;;  %v3859_v43 = vshll.u32 %v5819_v62, 16  ;;  %v5464_v32 = vrot.slane %v1266_v18, 9  ;;  %v1267_v62 = vld [vmem:[%s7174_s14 + $0x84] sm:$0xe]  ;;  %v3888_v28 = vshrl.u32 %v5823_v58, 16 }
  0xc5   : > { %6283 = vmatmul.mubr.bf16.gmra.mrb[24].mxu1 %v5443_v20  ;;  %6510 = vmatprep.mubr.bf16.mxu0 %v6978_v3  ;;  %v6994_v20 = vld [vmem:[%s9010_s1 + $0x1f0] sm:$0xff]   ;;  %v7055_v3 = vld [vmem:[%s7174_s14 + $0x7c] sm:$0xf]  ;;  %v3891_v7 = vshll.u32 %v5823_v58, 16  ;;  %v3897_v38 = vshll.u32 %v5824_v51, 16  ;;  %v9033_v42 = vcombine.low %v7611_v41, %v7616_v12  ;;  %v8032_v13 = vrot.slane %v3856_v5, 4 }
  0xc6   : > { %6286 = vmatprep.mubr.bf16.mxu1 %v5444_v23  ;;  %6539 = vmatpush3.bf16.msra.mxu0 %v6986_v53  ;;  %v3846_v23 = vor.u32 %v3845_v44, %v3842_v34  ;;  %v6983_v53 = vld [vmem:[%s7174_s14 + $0x78] sm:$0xff]   ;;  %v1379_v44 = vrot.slane %v7055_v3, 5  ;;  %v3869_v54 = vrot.slane %v3867_v2, 5  ;;  %v8025_v1 = vrot.slane %v3859_v43, 5  ;;  %v8037_v21 = vld [vmem:[%s9010_s1 + $0x200] sm:$0xff]   ;;  %9041 = vst [vmem:[#allocation5_spill] sm:$0xff] %v8180_v47 }
  0xc7   : > { %6540 = vmatprep.subr.bf16.mxu0 %v6990_v50  ;;  %v5822_v34 = vld [vmem:[%s7174_s14 + $0x38] sm:$0x1]  ;;  %v3901_v2 = vshrl.u32 %v5824_v51, 16  ;;  %v6985_v43 = vld [vmem:[%s7174_s14 + $0x84] sm:$0xff]   ;;  %v3880_v12 = vor.u32 %v3879_v22, %v8021_v39  ;;  %v3893_v58 = vrot.slane %v3891_v7, 5  ;;  %v8059_v51 = vrot.slane %v3897_v38, 5 }
  0xc8   : > { %v8023_v33 = vrot.slane %v3846_v23, 4  ;;  %v1381_v10 = vrot.slane %v1379_v44, 4  ;;  %v3870_v31 = vor.u32 %v3869_v54, %v3866_v52  ;;  %v9034_v23 = vcombine.low %v7842_v59, %v7850_v25  ;;  %v7057_v18 = vld [vmem:[%s7174_s14 + $0x88] sm:$0xf]  ;;  %v5825_v5 = vld [vmem:[%s7174_s14 + $0x44] sm:$0x1] }
  0xc9   : > { %v1386_v3 = vrot.slane %v7057_v18, 5  ;;  %v8050_v59 = vcombine.low %v3828_v0, %v3838_v46  ;;  %v5826_v52 = vld [vmem:[%s7174_s14 + $0x48] sm:$0xf]  ;;  %v3890_v54 = vrot.slane %v3888_v28, 4  ;;  %v3903_v22 = vrot.slane %v3901_v2, 4 }
  0xca   : > { %6541 = vmatpush3.bf16.msra.mxu0 %v6990_v50  ;;  %v1382_v50 = vrot.slane %v7056_v19, 5  ;;  %v6987_v19 = vld [vmem:[%s7174_s14 + $0x90] sm:$0xff]   ;;  %v3852_v0 = vsel %vm7206_vm2, %v8023_v33, %v7968_v17  ;;  %v3871_v46 = vrot.slane %v3870_v31, 4  ;;  %v3862_v28 = vsel %vm7206_vm2, %v8032_v13, %v8025_v1  ;;  %v8081_v33 = vld [vmem:[%s7174_s14 + $0x58] sm:$0xf]  ;;  %v6988_v31 = vld [vmem:[%s9010_s1 + $0xc8] sm:$0xff]  }
  0xcb   : > { %6542 = vmatprep.subr.bf16.mxu0 %v6994_v20  ;;  %v3881_v38 = vrot.slane %v3880_v12, 4  ;;  %v1388_v2 = vrot.slane %v1386_v3, 4  ;;  %v5829_v17 = vld [vmem:[%s7174_s14 + $0x54] sm:$0xf]  ;;  %v3907_v1 = vshll.u32 %v5825_v5, 16  ;;  %v3912_v13 = vshrl.u32 %v5826_v52, 16 }
  0xcc   : > { %6511 = vmatmul.mubr.bf16.gmra.mrb[12].mxu0 %v6981_v48  ;;  %v3883_v48 = vshll.u32 %v5822_v34, 16  ;;  %v8077_v7 = vsel %vm7452_vm5, %v1381_v10, %v1382_v50  ;;  %v3915_v50 = vshll.u32 %v5826_v52, 16  ;;  %v3894_v10 = vor.u32 %v3893_v58, %v3890_v54  ;;  %v6989_v54 = vld [vmem:[%s7174_s14 + $0x9c] sm:$0xff]   ;;  %v7063_v41 = vld [vmem:[%s7174_s14 + $0xac] sm:$0xf] }
  0xcd   : > { %6287 = vmatmul.mubr.bf16.gmra.mrb[28].mxu1 %v9033_v42  ;;  %6514 = vmatprep.mubr.bf16.mxu0 %v6983_v53  ;;  %v5465_v53 = vrot.slane %v1267_v62, 9  ;;  %v7058_v42 = vld [vmem:[%s7174_s14 + $0x8c] sm:$0x1]  ;;  %v3945_v5 = vshll.u32 %v8081_v33, 16  ;;  %v9036_v52 = vcombine.low %v7858_v63, %v7866_v8  ;;  %v8117_v63 = vld [vmem:[%s7174_s14 + $0x50] sm:$0x1] }
  0xce   : > { %6306 = vmatprep.mubr.bf16.mxu1 %v9034_v23  ;;  %6543 = vmatpush3.bf16.msra.mxu0 %v6994_v20  ;;  %v8056_v20 = vsel %vm7452_vm5, %v5464_v32, %v1379_v44  ;;  %v3885_v62 = vrot.slane %v3883_v48, 5  ;;  %v1389_v23 = vrot.slane %v7058_v42, 5  ;;  %v1268_v44 = vld [vmem:[%s7174_s14 + $0x90] sm:$0xe]  ;;  %v8069_v32 = vld [vmem:[%s7174_s14 + $0x4c] sm:$0xf]  ;;  %v3904_v48 = vor.u32 %v3903_v22, %v8059_v51 }
  0xcf   : > { %6544 = vmatprep.subr.bf16.mxu0 %v6998_v40  ;;  %v3921_v12 = vshll.u32 %v8069_v32, 16  ;;  %v3925_v18 = vshrl.u32 %v8069_v32, 16  ;;  %v9035_v42 = vcombine.low %v7846_v30, %v7854_v6  ;;  %v6992_v30 = vld [vmem:[%s9010_s1 + $0xd0] sm:$0xff]   ;;  %v3876_v6 = vsel %vm7206_vm2, %v3871_v46, %v8021_v39  ;;  %v6991_v8 = vld [vmem:[%s7174_s14 + $0xa8] sm:$0xff]   ;;  %v8124_v39 = vld [vmem:[%s7174_s14 + $0x5c] sm:$0x1] }
  0xd0   : > { %v3886_v58 = vsel %vm7206_vm2, %v3881_v38, %v3885_v62  ;;  %v5466_v22 = vrot.slane %v1268_v44, 9  ;;  %v3917_v25 = vrot.slane %v3915_v50, 5  ;;  %9037 = vst [vmem:[#allocation3_spill] sm:$0xff] %v8124_v39  ;;  %v3895_v46 = vrot.slane %v3894_v10, 4 }
  0xd1   : > { %v3905_v62 = vrot.slane %v3904_v48, 4  ;;  %v8126_v38 = vrot.slane %v3921_v12, 5  ;;  %v8128_v34 = vrot.slane %v3945_v5, 5  ;;  %v8133_v50 = vcombine.low %v3852_v0, %v3862_v28  ;;  %v5832_v28 = vld [vmem:[%s7174_s14 + $0x60] sm:$0xf] }
  0xd2   : > { %6545 = vmatpush3.bf16.msra.mxu0 %v6998_v40  ;;  %v8089_v40 = vsel %vm7452_vm5, %v5465_v53, %v1386_v3  ;;  %v3936_v53 = vshrl.u32 %v5829_v17, 16  ;;  %v3939_v3 = vshll.u32 %v5829_v17, 16  ;;  %v7059_v17 = vld [vmem:[%s7174_s14 + $0x94] sm:$0xf]  ;;  %v8137_v48 = vcombine.low %v3876_v6, %v3886_v58 }
  0xd3   : > { %6578 = vmatprep.subr.bf16.mxu0 %v8037_v21  ;;  %v3931_v0 = vshll.u32 %v8117_v63, 16  ;;  %v3900_v6 = vsel %vm7206_vm2, %v3895_v46, %v8059_v51  ;;  %v9040_v46 = vcombine.low %v7880_v61, %v7884_v36 }
  0xd4   : > { %6515 = vmatmul.mubr.bf16.gmra.mrb[16].mxu0 %v6985_v43  ;;  %v3949_v43 = vshrl.u32 %v8081_v33, 16  ;;  %v3938_v44 = vrot.slane %v3936_v53, 4  ;;  %v7060_v53 = vld [vmem:[%s7174_s14 + $0x98] sm:$0x1] }
  0xd5   : > { %6307 = vmatmul.mubr.bf16.vlgmr.msra.gmra.mrb[0].mxu1 %v9035_v42  ;;  %6518 = vmatprep.mubr.bf16.mxu0 %v6987_v19  ;;  %v8120_v19 = vrot.slane %v3907_v1, 5  ;;  %v1393_v42 = vrot.slane %v7059_v17, 5  ;;  %v7061_v17 = vld [vmem:[%s7174_s14 + $0xa0] sm:$0xf]  ;;  %v3933_v36 = vrot.slane %v3931_v0, 5 }
  0xd6   : > { %6339 = vmatpush3.bf16.msra.mxu1 %v7799_v60  ;;  %6310 = vmatprep.mubr.bf16.mxu1 %v9036_v52  ;;  %v8114_v60 = vsel %vm7452_vm5, %v1388_v2, %v1389_v23  ;;  %v3914_v52 = vrot.slane %v3912_v13, 4  ;;  %v3927_v23 = vrot.slane %v3925_v18, 4  ;;  %v3941_v2 = vrot.slane %v3939_v3, 5  ;;  %v6996_v13 = vld [vmem:[%s9010_s1 + $0xd8] sm:$0xff]  }
  0xd7   : > { %6340 = vmatprep.subr.bf16.mxu1 %v6988_v31  ;;  %v3951_v1 = vrot.slane %v3949_v43, 4  ;;  %v1269_v18 = vld [vmem:[%s7174_s14 + $0x9c] sm:$0xe]  ;;  %v1396_v3 = vrot.slane %v7060_v53, 5  ;;  %v8150_v43 = vld [vmem:[%s7174_s14 + $0x64] sm:$0xf] }
  0xd8   : > { %v3918_v5 = vor.u32 %v3917_v25, %v3914_v52  ;;  %9038 = vst [vmem:[#allocation4_spill] sm:$0xff] %v8150_v43  ;;  %v3928_v58 = vor.u32 %v3927_v23, %v8126_v38  ;;  %v1400_v12 = vrot.slane %v7061_v17, 5  ;;  %v9039_v25 = vcombine.low %v7870_v24, %v7874_v35  ;;  %v6993_v23 = vld [vmem:[%s7174_s14 + $0xb4] sm:$0xff]   ;;  %v6999_v24 = vld [vmem:[%s9010_s1 + $0xe0] sm:$0xff]   ;;  %v5835_v17 = vld [vmem:[%s7174_s14 + $0x6c] sm:$0xf] }
  0xd9   : > { %v1395_v52 = vrot.slane %v1393_v42, 4  ;;  %v3942_v53 = vor.u32 %v3941_v2, %v3938_v44  ;;  %v3952_v51 = vor.u32 %v3951_v1, %v8128_v34  ;;  %v3960_v35 = vshrl.u32 %v5832_v28, 16  ;;  %v7062_v2 = vld [vmem:[%s7174_s14 + $0xa4] sm:$0x1] }
  0xda   : > { %6341 = vmatpush3.bf16.msra.mxu1 %v6988_v31  ;;  %v8144_v31 = vsel %vm7452_vm5, %v5466_v22, %v1393_v42  ;;  %v3955_v22 = vshll.u32 %v8124_v39, 16  ;;  %v3973_v42 = vshrl.u32 %v8150_v43, 16  ;;  %v3919_v61 = vrot.slane %v3918_v5, 4  ;;  %v8319_v39 = vld [vmem:[%s7174_s14 + $0x98] sm:$0x1] }
  0xdb   : > { %6342 = vmatprep.subr.bf16.mxu1 %v6992_v30  ;;  %v5467_v44 = vrot.slane %v1269_v18, 9  ;;  %v1403_v1 = vrot.slane %v7062_v2, 5  ;;  %v3943_v5 = vrot.slane %v3942_v53, 4  ;;  %v3953_v18 = vrot.slane %v3952_v51, 4  ;;  %9054 = vst [vmem:[#allocation14_spill] sm:$0xff] %v8319_v39 }
  0xdc   : > { %6519 = vmatmul.mubr.bf16.gmra.mrb[20].mxu0 %v6989_v54  ;;  %v3910_v54 = vsel %vm7206_vm2, %v3905_v62, %v8120_v19  ;;  %v3969_v19 = vshll.u32 %v8150_v43, 16  ;;  %v6995_v62 = vld [vmem:[%s7174_s14 + $0xc0] sm:$0xff]   ;;  %v3957_v10 = vrot.slane %v3955_v22, 5  ;;  %v8186_v43 = vsel %vm7452_vm5, %v1395_v52, %v1396_v3 }
  0xdd   : > { %6311 = vmatmul.mubr.bf16.gmra.mrb[4].mxu1 %v9039_v25  ;;  %6522 = vmatprep.mubr.bf16.mxu0 %v6991_v8  ;;  %v3963_v8 = vshll.u32 %v5832_v28, 16  ;;  %v3929_v25 = vrot.slane %v3928_v58, 4  ;;  %v1407_v28 = vrot.slane %v7063_v41, 5  ;;  %v8182_v55 = vcombine.low %v3900_v6, %v3910_v54  ;;  %v7001_v41 = vld [vmem:[%s9010_s1 + $0xe8] sm:$0xff]  }
  0xde   : > { %6314 = vmatprep.mubr.bf16.mxu1 %v9040_v46  ;;  %6343 = vmatpush3.bf16.msra.mxu1 %v6992_v30  ;;  %v1270_v30 = vld [vmem:[%s7174_s14 + $0xa8] sm:$0xe]  ;;  %v1402_v46 = vrot.slane %v1400_v12, 4  ;;  %v3962_v0 = vrot.slane %v3960_v35, 4  ;;  %v8188_v58 = vrot.slane %v3969_v19, 5  ;;  %v3975_v22 = vrot.slane %v3973_v42, 4 }
  0xdf   : > { %6344 = vmatprep.subr.bf16.mxu1 %v6996_v13  ;;  %v3965_v2 = vrot.slane %v3963_v8, 5  ;;  %v3924_v3 = vsel %vm7206_vm2, %v3919_v61, %v8126_v38  ;;  %v8198_v6 = vsel %vm7452_vm5, %v5467_v44, %v1400_v12  ;;  %v3984_v54 = vshrl.u32 %v5835_v17, 16  ;;  %v7064_v38 = vld [vmem:[%s7174_s14 + $0xb0] sm:$0x1]  ;;  %v1271_v19 = vld [vmem:[%s7174_s14 + $0xb4] sm:$0xe] }
  0xe0   : > { %v3987_v52 = vshll.u32 %v5835_v17, 16  ;;  %v3934_v53 = vsel %vm7206_vm2, %v3929_v25, %v3933_v36  ;;  %v8207_v51 = vsel %vm7452_vm5, %v1402_v46, %v1403_v1  ;;  %v5468_v35 = vrot.slane %v1270_v30, 9  ;;  %v8229_v30 = vld [vmem:[%s7174_s14 + $0x74] sm:$0x1]  ;;  %v7065_v25 = vld [vmem:[%s7174_s14 + $0xb8] sm:$0xf] }
  0xe1   : > { %v1410_v8 = vrot.slane %v7064_v38, 5  ;;  %v9043_v12 = vcombine.low %v7901_v49, %v7915_v4  ;;  %v3948_v42 = vsel %vm7206_vm2, %v3943_v5, %v8128_v34  ;;  %v3958_v61 = vsel %vm7206_vm2, %v3953_v18, %v3957_v10  ;;  %v6997_v4 = vld [vmem:[%s7174_s14 + $0xcc] sm:$0xff]   ;;  %9045 = vst [vmem:[#allocation7_spill] sm:$0xff] %v8229_v30  ;;  %v5841_v38 = vld [vmem:[%s7174_s14 + $0x84] sm:$0xf] }
  0xe2   : > { %6345 = vmatpush3.bf16.msra.mxu1 %v6996_v13  ;;  %v8201_v13 = vld [vmem:[%s7174_s14 + $0x70] sm:$0xf]  ;;  %v1409_v36 = vrot.slane %v1407_v28, 4  ;;  %v3979_v44 = vshll.u32 %v8180_v47, 16  ;;  %v9044_v49 = vcombine.low %v7937_v26, %v7941_v56  ;;  %v3976_v1 = vor.u32 %v3975_v22, %v8188_v58  ;;  %v8246_v22 = vld [vmem:[%s7174_s14 + $0x7c] sm:$0xf] }
  0xe3   : > { %6346 = vmatprep.subr.bf16.mxu1 %v6999_v24  ;;  %9042 = vst [vmem:[#allocation6_spill] sm:$0xff] %v8201_v13  ;;  %v3993_v34 = vshll.u32 %v8201_v13, 16  ;;  %v3997_v10 = vshrl.u32 %v8201_v13, 16  ;;  %v5469_v17 = vrot.slane %v1271_v19, 9  ;;  %v1414_v46 = vrot.slane %v7065_v25, 5  ;;  %9046 = vst [vmem:[#allocation8_spill] sm:$0xff] %v8246_v22 }
  0xe4   : > { %6523 = vmatmul.mubr.bf16.gmra.mrb[24].mxu0 %v6993_v23  ;;  %v7003_v23 = vld [vmem:[%s9010_s1 + $0xf0] sm:$0xff]   ;;  %v3986_v26 = vrot.slane %v3984_v54, 4  ;;  %v3989_v56 = vrot.slane %v3987_v52, 5  ;;  %v8237_v18 = vcombine.low %v3924_v3, %v3934_v53  ;;  %v8249_v19 = vcombine.low %v3948_v42, %v3958_v61  ;;  %v7066_v3 = vld [vmem:[%s7174_s14 + $0xbc] sm:$0x1] }
  0xe5   : > { %6315 = vmatmul.mubr.bf16.gmra.mrb[8].mxu1 %v9043_v12  ;;  %6526 = vmatprep.mubr.bf16.mxu0 %v6995_v62  ;;  %v3966_v62 = vor.u32 %v3965_v2, %v3962_v0  ;;  %v8243_v2 = vsel %vm7452_vm5, %v5468_v35, %v1407_v28  ;;  %v8253_v54 = vsel %vm7452_vm5, %v1409_v36, %v1410_v8  ;;  %v8255_v52 = vrot.slane %v3979_v44, 5  ;;  %v7005_v12 = vld [vmem:[%s9010_s1 + $0xf8] sm:$0xff]   ;;  %v8262_v28 = vld [vmem:[%s7174_s14 + $0x88] sm:$0xf] }
  0xe6   : > { %6318 = vmatprep.mubr.bf16.mxu1 %v9044_v49  ;;  %6347 = vmatpush3.bf16.msra.mxu1 %v6999_v24  ;;  %v5838_v24 = vld [vmem:[%s7174_s14 + $0x78] sm:$0xf]  ;;  %v1417_v53 = vrot.slane %v7066_v3, 5  ;;  %9047 = vst [vmem:[#allocation9_spill] sm:$0xff] %v8262_v28  ;;  %v8266_v42 = vrot.slane %v3976_v1, 4  ;;  %v8268_v61 = vrot.slane %v3993_v34, 5  ;;  %v8272_v36 = vsel %vm7452_vm5, %v5469_v17, %v1414_v46 }
  0xe7   : > { %6348 = vmatprep.subr.bf16.mxu1 %v7001_v41  ;;  %v8264_v35 = vrot.slane %v3966_v62, 4  ;;  %v3999_v8 = vrot.slane %v3997_v10, 4  ;;  %v1416_v44 = vrot.slane %v1414_v46, 4  ;;  %v3990_v49 = vor.u32 %v3989_v56, %v3986_v26  ;;  %v5844_v3 = vld [vmem:[%s7174_s14 + $0x90] sm:$0xf] }
  0xe8   : > { %v4003_v25 = vshll.u32 %v8229_v30, 16  ;;  %v4011_v0 = vshll.u32 %v5838_v24, 16  ;;  %v4017_v62 = vshll.u32 %v8246_v22, 16  ;;  %v4021_v1 = vshrl.u32 %v8246_v22, 16  ;;  %v8279_v34 = vld [vmem:[%s7174_s14 + $0x94] sm:$0xf] }
  0xe9   : > { %9048 = vst [vmem:[#allocation10_spill] sm:$0xff] %v8279_v34  ;;  %v9049_v10 = vcombine.low %v7981_v27, %v7985_v29  ;;  %v4032_v17 = vshrl.u32 %v5841_v38, 16  ;;  %v4035_v46 = vshll.u32 %v5841_v38, 16  ;;  %v4045_v26 = vshrl.u32 %v8262_v28, 16  ;;  %v5847_v38 = vld [vmem:[%s7174_s14 + $0x9c] sm:$0xf] }
  0xea   : > { %6349 = vmatpush3.bf16.msra.mxu1 %v7001_v41  ;;  %v4008_v41 = vshrl.u32 %v5838_v24, 16  ;;  %v9050_v56 = vcombine.low %v7992_v45, %v7996_v14  ;;  %v4000_v29 = vor.u32 %v3999_v8, %v8268_v61  ;;  %v4059_v24 = vshll.u32 %v5844_v3, 16  ;;  %v8301_v45 = vld [vmem:[%s7174_s14 + $0x80] sm:$0x1] }
  0xeb   : > { %6350 = vmatprep.subr.bf16.mxu1 %v7003_v23  ;;  %v8298_v5 = vrot.slane %v4003_v25, 5  ;;  %9051 = vst [vmem:[#allocation11_spill] sm:$0xff] %v8301_v45  ;;  %v4065_v14 = vshll.u32 %v8279_v34, 16  ;;  %v4013_v27 = vrot.slane %v4011_v0, 5  ;;  %v4023_v8 = vrot.slane %v4021_v1, 4 }
  0xec   : > { %6527 = vmatmul.mubr.bf16.gmra.mrb[28].mxu0 %v6997_v4  ;;  %v4041_v4 = vshll.u32 %v8262_v28, 16  ;;  %v8305_v28 = vrot.slane %v4017_v62, 5  ;;  %v8311_v22 = vld [vmem:[%s7174_s14 + $0xa0] sm:$0xf]  ;;  %v4034_v25 = vrot.slane %v4032_v17, 4  ;;  %v4037_v30 = vrot.slane %v4035_v46, 5 }
  0xed   : > { %6319 = vmatmul.mubr.bf16.gmra.mrb[12].mxu1 %v9049_v10  ;;  %6546 = vmatprep.mubr.bf16.mxu0 %v8050_v59  ;;  %v4056_v59 = vshrl.u32 %v5844_v3, 16  ;;  %v8296_v10 = vrot.slane %v3990_v49, 4  ;;  %v8308_v3 = vld [vmem:[%s7174_s14 + $0x8c] sm:$0x1]  ;;  %9053 = vst [vmem:[#allocation13_spill] sm:$0xff] %v8311_v22  ;;  %v4047_v47 = vrot.slane %v4045_v26, 4  ;;  %v8328_v62 = vsel %vm7452_vm5, %v1416_v44, %v1417_v53 }
  0xee   : > { %6322 = vmatprep.mubr.bf16.mxu1 %v9050_v56  ;;  %6351 = vmatpush3.bf16.msra.mxu1 %v7003_v23  ;;  %v4069_v23 = vshrl.u32 %v8279_v34, 16  ;;  %v4010_v56 = vrot.slane %v4008_v41, 4  ;;  %9052 = vst [vmem:[#allocation12_spill] sm:$0xff] %v8308_v3  ;;  %v7002_v49 = vld [vmem:[%s9010_s1 + $0x208] sm:$0xff]   ;;  %v8316_v13 = vrot.slane %v4041_v4, 5  ;;  %v4061_v34 = vrot.slane %v4059_v24, 5 }
  0xef   : > { %6352 = vmatprep.subr.bf16.mxu1 %v7005_v12  ;;  %v5850_v41 = vld [vmem:[%s7174_s14 + $0xa8] sm:$0xf]  ;;  %v4058_v1 = vrot.slane %v4056_v59, 4  ;;  %v8333_v17 = vld [vmem:[%s9010_s1 + $0x100] sm:$0xff]   ;;  %v8336_v46 = vrot.slane %v4065_v14, 5  ;;  %v4080_v26 = vshrl.u32 %v5847_v38, 16  ;;  %v9056_v24 = vcombine.low %v8000_v16, %v8010_v15 }
  0xf0   : > { %9055 = vst [vmem:[#allocation15_spill] sm:$0xff] %v8333_v17  ;;  %v4071_v4 = vrot.slane %v4069_v23, 4  ;;  %v4083_v0 = vshll.u32 %v5847_v38, 16  ;;  %v8339_v53 = vrot.slane %v4000_v29, 4  ;;  %v4089_v44 = vshll.u32 %v8311_v22, 16  ;;  %v7004_v16 = vld [vmem:[%s9010_s1 + $0x210] sm:$0xff]  }
  0xf1   : > { %v4093_v59 = vshrl.u32 %v8311_v22, 16  ;;  %v4014_v14 = vor.u32 %v4013_v27, %v4010_v56  ;;  %v4024_v38 = vor.u32 %v4023_v8, %v8305_v28  ;;  %v4038_v23 = vor.u32 %v4037_v30, %v4034_v25  ;;  %v8351_v29 = vld [vmem:[%s7174_s14 + $0xac] sm:$0xf]  ;;  %v8364_v25 = vld [vmem:[%s7174_s14 + $0xa4] sm:$0x1] }
  0xf2   : > { %6353 = vmatpush3.bf16.msra.mxu1 %v7005_v12  ;;  %v4027_v12 = vshll.u32 %v8301_v45, 16  ;;  %9057 = vst [vmem:[#allocation16_spill] sm:$0xff] %v8351_v29  ;;  %v4048_v15 = vor.u32 %v4047_v47, %v8316_v13  ;;  %v4104_v27 = vshrl.u32 %v5850_v41, 16  ;;  %v4107_v30 = vshll.u32 %v5850_v41, 16 }
  0xf3   : > { %6626 = vmatprep.subr.bf16.mxu1 %v8333_v17  ;;  %v9058_v17 = vcombine.low %v8056_v20, %v8077_v7  ;;  %v4062_v56 = vor.u32 %v4061_v34, %v4058_v1  ;;  %v4072_v8 = vor.u32 %v4071_v4, %v8336_v46  ;;  %v4082_v20 = vrot.slane %v4080_v26, 4 }
  0xf4   : > { %6547 = vmatmul.mubr.bf16.vlgmr.msra.gmra.mrb[0].mxu0 %v8133_v50  ;;  %v4051_v50 = vshll.u32 %v8308_v3, 16  ;;  %v4085_v7 = vrot.slane %v4083_v0, 5  ;;  %v4117_v22 = vshrl.u32 %v8351_v29, 16  ;;  %v4015_v47 = vrot.slane %v4014_v14, 4  ;;  %v7006_v0 = vld [vmem:[%s9010_s1 + $0x218] sm:$0xff]  }
  0xf5   : > { %6323 = vmatmul.mubr.bf16.gmra.mrb[16].mxu1 %v9056_v24  ;;  %6579 = vmatpush3.bf16.msra.mxu0 %v8037_v21  ;;  %v4075_v21 = vshll.u32 %v8319_v39, 16  ;;  %v4113_v24 = vshll.u32 %v8351_v29, 16  ;;  %v4025_v39 = vrot.slane %v4024_v38, 4  ;;  %v4029_v3 = vrot.slane %v4027_v12, 5 }
  0xf6   : > { %6326 = vmatprep.mubr.bf16.mxu1 %v9058_v17  ;;  %6550 = vmatprep.mubr.bf16.mxu0 %v8137_v48  ;;  %v8366_v17 = vrot.slane %v4089_v44, 5  ;;  %v4095_v48 = vrot.slane %v4093_v59, 4  ;;  %v4053_v41 = vrot.slane %v4051_v50, 5  ;;  %v4039_v34 = vrot.slane %v4038_v23, 4 }
  0xf7   : > { %6580 = vmatprep.subr.bf16.mxu0 %v7002_v49  ;;  %v4049_v1 = vrot.slane %v4048_v15, 4  ;;  %v4106_v4 = vrot.slane %v4104_v27, 4  ;;  %v4109_v45 = vrot.slane %v4107_v30, 5  ;;  %v4063_v26 = vrot.slane %v4062_v56, 4  ;;  %v8432_v27 = vld [vmem:[%s7174_s14 + $0xbc] sm:$0x1] }
  0xf8   : > { %v4077_v44 = vrot.slane %v4075_v21, 5  ;;  %v4086_v59 = vor.u32 %v4085_v7, %v4082_v20  ;;  %v4099_v29 = vshll.u32 %v8364_v25, 16  ;;  %v4096_v12 = vor.u32 %v4095_v48, %v8366_v17  ;;  %v8399_v21 = vld [vmem:[%s7174_s14 + $0xb0] sm:$0x1] }
  0xf9   : > { %6581 = vmatpush3.bf16.msra.mxu0 %v7002_v49  ;;  %v4073_v49 = vrot.slane %v4072_v8, 4  ;;  %v8376_v14 = vrot.slane %v4113_v24, 5  ;;  %v4119_v38 = vrot.slane %v4117_v22, 4  ;;  %v9059_v23 = vor.u32 %v7784_v57, %v7782_v11 }
  0xfa   : > { %6582 = vmatprep.subr.bf16.mxu0 %v7004_v16  ;;  %v9060_v15 = vcombine.low %v8089_v40, %v8114_v60  ;;  %v4006_v22 = vsel %vm7206_vm2, %v8339_v53, %v8298_v5  ;;  %v4020_v57 = vsel %vm7206_vm2, %v4015_v47, %v8305_v28  ;;  %v9061_v40 = vcombine.low %v8144_v31, %v8186_v43  ;;  %v7009_v31 = vld [vmem:[%s9010_s1 + $0x220] sm:$0xff]  }
  0xfb   : > { %v8381_v50 = vrot.slane %v9059_v23, 4  ;;  %v4030_v60 = vsel %vm7206_vm2, %v4025_v39, %v4029_v3  ;;  %v4110_v5 = vor.u32 %v4109_v45, %v4106_v4  ;;  %v4054_v28 = vsel %vm7206_vm2, %v4049_v1, %v4053_v41  ;;  %v5906_v41 = vld [vmem:[%s7174_s14 + $0x48] sm:$0xe] }
  0xfc   : > { %6551 = vmatmul.mubr.bf16.gmra.mrb[4].mxu0 %v8182_v55  ;;  %v3996_v55 = vsel %vm7206_vm2, %v8296_v10, %v8268_v61  ;;  %v5853_v61 = vld [vmem:[%s7174_s14 + $0xb4] sm:$0xf]  ;;  %v8411_v10 = vld [vmem:[%s7174_s14 + $0xb8] sm:$0xf]  ;;  %v4068_v39 = vsel %vm7206_vm2, %v4063_v26, %v8336_v46  ;;  %v8421_v43 = vrot.slane %v4086_v59, 4  ;;  %v8423_v3 = vrot.slane %v4099_v29, 5 }
  0xfd   : > { %6327 = vmatmul.mubr.bf16.gmra.mrb[20].mxu1 %v9060_v15  ;;  %6554 = vmatprep.mubr.bf16.mxu0 %v8237_v18  ;;  %v4044_v18 = vsel %vm7206_vm2, %v4039_v34, %v8316_v13  ;;  %v4078_v13 = vsel %vm7206_vm2, %v4073_v49, %v4077_v44  ;;  %v8427_v45 = vrot.slane %v4096_v12, 4  ;;  %v4120_v53 = vor.u32 %v4119_v38, %v8376_v14  ;;  %v5907_v26 = vld [vmem:[%s7174_s14 + $0x54] sm:$0xe] }
  0xfe   : > { %6330 = vmatprep.mubr.bf16.mxu1 %v9061_v40  ;;  %6583 = vmatpush3.bf16.msra.mxu0 %v7004_v16  ;;  %v4123_v16 = vshll.u32 %v8399_v21, 16  ;;  %v9062_v46 = vsel %vm7206_vm2, %v8266_v42, %v8255_v52  ;;  %v9063_v29 = vsel %vm7206_vm2, %v8264_v35, %v8188_v58  ;;  %v4128_v56 = vshrl.u32 %v5853_v61, 16 }
  0xff   : > { %6584 = vmatprep.subr.bf16.mxu0 %v7006_v0  ;;  %v5884_v30 = vcombine.low %v9063_v29, %v9062_v46  ;;  %v4131_v8 = vshll.u32 %v5853_v61, 16  ;;  %v4137_v20 = vshll.u32 %v8411_v10, 16  ;;  %v5500_v7 = vcombine.low %v8243_v2, %v8253_v54  ;;  %v7012_v2 = vld [vmem:[%s9010_s1 + $0x228] sm:$0xff]   ;;  %v5856_v54 = vld [vmem:[%s7174_s14 + $0xc0] sm:$0xf]  ;;  %v9067_v29 = vld [vmem:[#allocation5_spill] sm:$0xff] }
 0x100   : > { %v5501_v48 = vcombine.low %v8272_v36, %v8328_v62  ;;  %v5885_v24 = vcombine.low %v3996_v55, %v4006_v22  ;;  %v8449_v52 = vrot.slane %v4110_v5, 4  ;;  %v5886_v42 = vcombine.low %v4020_v57, %v4030_v60 }
 0x101   : > { %v8451_v58 = vcombine.low %v4044_v18, %v4054_v28  ;;  %v8453_v35 = vcombine.low %v4068_v39, %v4078_v13  ;;  %v4092_v47 = vsel %vm7206_vm2, %v8421_v43, %v8366_v17  ;;  %v4102_v34 = vsel %vm7206_vm2, %v8427_v45, %v8423_v3  ;;  %v5909_v28 = vld [vmem:[%s7174_s14 + $0x6c] sm:$0xe] }
 0x102   : > { %6585 = vmatpush3.bf16.msra.mxu0 %v7006_v0  ;;  %v8469_v1 = vrot.slane %v4120_v53, 4  ;;  %v8471_v4 = vrot.slane %v4123_v16, 5  ;;  %v4141_v0 = vshrl.u32 %v8411_v10, 16  ;;  %v9064_v44 = vcombine.low %v8198_v6, %v8207_v51  ;;  %v7015_v6 = vld [vmem:[%s9010_s1 + $0x230] sm:$0xff]   ;;  %v8493_v51 = vld [vmem:[%s7174_s14 + $0xc4] sm:$0xf] }
 0x103   : > { %6586 = vmatprep.subr.bf16.mxu0 %v7009_v31  ;;  %v8478_v59 = vrot.slane %v4128_v56, 4  ;;  %v8482_v49 = vrot.slane %v4137_v20, 5  ;;  %v4147_v12 = vshll.u32 %v8432_v27, 16  ;;  %v4116_v38 = vsel %vm7206_vm2, %v8449_v52, %v8376_v14  ;;  %v5908_v14 = vld [vmem:[%s7174_s14 + $0x60] sm:$0xe]  ;;  %v9065_v39 = vld [vmem:[#allocation3_spill] sm:$0xff] }
 0x104   : > { %6555 = vmatmul.mubr.bf16.gmra.mrb[8].mxu0 %v8249_v19  ;;  %v8480_v19 = vrot.slane %v4131_v8, 5  ;;  %v4152_v23 = vshrl.u32 %v5856_v54, 16  ;;  %v5922_v15 = vrot.slane %v5906_v41, 9  ;;  %v4615_v55 = vrot.slane %v8069_v32, 5  ;;  %v7007_v13 = vld [vmem:[%s7174_s14 + $0xc] sm:$0xff]   ;;  %v7018_v56 = vld [vmem:[%s9010_s1 + $0x238] sm:$0xff]  }
 0x105   : > { %6331 = vmatmul.mubr.bf16.gmra.mrb[24].mxu1 %v9064_v44  ;;  %6558 = vmatprep.mubr.bf16.mxu0 %v5884_v30  ;;  %v4155_v22 = vshll.u32 %v5856_v54, 16  ;;  %v4618_v57 = vrot.slane %v8117_v63, 5  ;;  %v5923_v40 = vrot.slane %v5907_v26, 9  ;;  %v4622_v60 = vrot.slane %v8081_v33, 5  ;;  %v9066_v16 = vld [vmem:[#allocation4_spill] sm:$0xff]  ;;  %v9068_v52 = vld [vmem:[#allocation6_spill] sm:$0xff] }
 0x106   : > { %6334 = vmatprep.mubr.bf16.mxu1 %v5500_v7  ;;  %6587 = vmatpush3.bf16.msra.mxu0 %v7009_v31  ;;  %v4126_v18 = vsel %vm7206_vm2, %v8469_v1, %v8471_v4  ;;  %v8503_v5 = vrot.slane %v4141_v0, 4  ;;  %v8507_v61 = vsel %vm7452_vm5, %v5922_v15, %v4615_v55  ;;  %v4617_v32 = vrot.slane %v4615_v55, 4  ;;  %v9069_v4 = vld [vmem:[#allocation7_spill] sm:$0xff] }
 0x107   : > { %6588 = vmatprep.subr.bf16.mxu0 %v7012_v2  ;;  %v4161_v31 = vshll.u32 %v8493_v51, 16  ;;  %v8513_v63 = vsel %vm7452_vm5, %v5923_v40, %v4622_v60  ;;  %v4624_v33 = vrot.slane %v4622_v60, 4  ;;  %v4625_v3 = vrot.slane %v9065_v39, 5  ;;  %v8544_v26 = vld [vmem:[%s7174_s14 + $0xc8] sm:$0x1]  ;;  %v7008_v40 = vld [vmem:[%s7174_s14 + $0x18] sm:$0xff]  }
 0x108   : > { %v8519_v45 = vsel %vm7452_vm5, %v4617_v32, %v4618_v57  ;;  %v5924_v53 = vrot.slane %v5908_v14, 9  ;;  %v4629_v46 = vrot.slane %v9066_v16, 5  ;;  %v4632_v30 = vrot.slane %v9067_v29, 5  ;;  %v7010_v39 = vld [vmem:[%s7174_s14 + $0x24] sm:$0xff]  }
 0x109   : > { %v5954_v8 = vcombine.low %v8507_v61, %v8519_v45  ;;  %v8530_v20 = vsel %vm7452_vm5, %v4624_v33, %v4625_v3  ;;  %v5925_v7 = vrot.slane %v5909_v28, 9  ;;  %v4639_v0 = vrot.slane %v9069_v4, 5  ;;  %v9071_v28 = vld [vmem:[#allocation11_spill] sm:$0xff]  ;;  %v5615_v61 = vld [vmem:[%s7174_s14 + $0x90] sm:$0xf] }
 0x10a   : > { %6589 = vmatpush3.bf16.msra.mxu0 %v7012_v2  ;;  %v4636_v2 = vrot.slane %v9068_v52, 5  ;;  %v5955_v54 = vcombine.low %v8513_v63, %v8530_v20  ;;  %v8537_v41 = vsel %vm7452_vm5, %v5924_v53, %v4629_v46  ;;  %v4631_v1 = vrot.slane %v4629_v46, 4  ;;  %v9072_v53 = vld [vmem:[#allocation2_spill] sm:$0xff]  ;;  %v7024_v45 = vld [vmem:[%s7174_s14 + $0xa8] sm:$0xff]  }
 0x10b   : > { %6590 = vmatprep.subr.bf16.mxu0 %v7015_v6  ;;  %v8546_v44 = vrot.slane %v4152_v23, 4  ;;  %v8559_v36 = vcombine.low %v4092_v47, %v4102_v34  ;;  %v4134_v62 = vor.u32 %v8480_v19, %v8478_v59  ;;  %v5910_v23 = vld [vmem:[%s7174_s14 + $0x78] sm:$0xe]  ;;  %v8571_v57 = vrot.slane %v4147_v12, 5  ;;  %v5859_v12 = vld [vmem:[%s7174_s14 + $0xcc] sm:$0xf] }
 0x10c   : > { %6559 = vmatmul.mubr.bf16.gmra.mrb[12].mxu0 %v5885_v24  ;;  %v8548_v24 = vrot.slane %v4155_v22, 5  ;;  %v8552_v15 = vsel %vm7452_vm5, %v5925_v7, %v4636_v2  ;;  %v4638_v55 = vrot.slane %v4636_v2, 4  ;;  %v8569_v22 = vcombine.low %v4116_v38, %v4126_v18  ;;  %v5609_v47 = vld [vmem:[%s7174_s14 + $0x78] sm:$0xf]  ;;  %v9070_v18 = vld [vmem:[#allocation8_spill] sm:$0xff] }
 0x10d   : > { %6335 = vmatmul.mubr.bf16.gmra.mrb[28].mxu1 %v5501_v48  ;;  %6562 = vmatprep.mubr.bf16.mxu0 %v5886_v42  ;;  %v4165_v48 = vshrl.u32 %v8493_v51, 16  ;;  %v8566_v42 = vsel %vm7452_vm5, %v4631_v1, %v4632_v30  ;;  %v4144_v34 = vor.u32 %v8503_v5, %v8482_v49  ;;  %v8582_v59 = vrot.slane %v4161_v31, 5  ;;  %v8596_v31 = vld [vmem:[%s7174_s14 + $0xd0] sm:$0xf]  ;;  %v9073_v1 = vld [vmem:[#allocation9_spill] sm:$0xff] }
 0x10e   : > { %6354 = vmatprep.mubr.bf16.mxu1 %v7007_v13  ;;  %6591 = vmatpush3.bf16.msra.mxu0 %v7015_v6  ;;  %v5956_v17 = vcombine.low %v8537_v41, %v8566_v42  ;;  %v8577_v43 = vsel %vm7452_vm5, %v4638_v55, %v4639_v0  ;;  %v4171_v19 = vshll.u32 %v8544_v26, 16  ;;  %v5911_v6 = vld [vmem:[%s7174_s14 + $0x84] sm:$0xe]  ;;  %v4158_v60 = vor.u32 %v8548_v24, %v8546_v44  ;;  %v9074_v24 = vld [vmem:[#allocation12_spill] sm:$0xff]  ;;  %v7088_v63 = vld [vmem:[%s7174_s14 + $0x8c] sm:$0x1] }
 0x10f   : > { %6592 = vmatprep.subr.bf16.mxu0 %v7018_v56  ;;  %v5957_v38 = vcombine.low %v8552_v15, %v8577_v43  ;;  %v5926_v14 = vrot.slane %v5910_v23, 9  ;;  %v4643_v32 = vrot.slane %v9070_v18, 5  ;;  %v4646_v33 = vrot.slane %v9071_v28, 5 }
 0x110   : > { %v4167_v5 = vrot.slane %v4165_v48, 4  ;;  %v2393_v3 = vshrl.u32 %v5609_v47, 16  ;;  %v2396_v13 = vshll.u32 %v5609_v47, 16  ;;  %v2415_v16 = vsel %vm7206_vm2, %v8381_v50, %v9072_v53 }
 0x111   : > { %v4176_v46 = vshrl.u32 %v5859_v12, 16  ;;  %v8604_v29 = vsel %vm7452_vm5, %v5926_v14, %v4643_v32  ;;  %v4645_v30 = vrot.slane %v4643_v32, 4  ;;  %v5927_v7 = vrot.slane %v5911_v6, 9  ;;  %v7068_v6 = vld [vmem:[%s9010_s1 + $0x108] sm:$0xff]  }
 0x112   : > { %6593 = vmatpush3.bf16.msra.mxu0 %v7018_v56  ;;  %v4179_v52 = vshll.u32 %v5859_v12, 16  ;;  %v2395_v2 = vrot.slane %v2393_v3, 4  ;;  %v2398_v56 = vrot.slane %v2396_v13, 5  ;;  %v4650_v4 = vrot.slane %v9073_v1, 5  ;;  %v5912_v12 = vld [vmem:[%s7174_s14 + $0x90] sm:$0xe] }
 0x113   : > { %v4185_v50 = vshll.u32 %v8596_v31, 16  ;;  %v4189_v0 = vshrl.u32 %v8596_v31, 16  ;;  %v8613_v44 = vsel %vm7452_vm5, %v4645_v30, %v4646_v33  ;;  %v4653_v55 = vrot.slane %v9074_v24, 5  ;;  %v7011_v3 = vld [vmem:[%s7174_s14 + $0x30] sm:$0xff]  }
 0x114   : > { %6563 = vmatmul.mubr.bf16.gmra.mrb[16].mxu0 %v8451_v58  ;;  %v9075_v58 = vld [vmem:[#allocation15_spill] sm:$0xff]  ;;  %v4168_v48 = vor.u32 %v4167_v5, %v8582_v59  ;;  %v2399_v23 = vor.u32 %v2398_v56, %v2395_v2  ;;  %v4652_v47 = vrot.slane %v4650_v4, 4  ;;  %v4145_v14 = vrot.slane %v4144_v34, 4  ;;  %v8634_v13 = vld [vmem:[%s7174_s14 + $0xd4] sm:$0x1]  ;;  %v9076_v2 = vld [vmem:[#allocation10_spill] sm:$0xff] }
 0x115   : > { %6355 = vmatmul.mubr.bf16.vlgmr.msra.gmra.mrb[0].mxu1 %v7008_v40  ;;  %6566 = vmatprep.mubr.bf16.mxu0 %v8453_v35  ;;  %v5958_v35 = vcombine.low %v8604_v29, %v8613_v44  ;;  %v4135_v40 = vrot.slane %v4134_v62, 4  ;;  %v4173_v18 = vrot.slane %v4171_v19, 5  ;;  %v8626_v32 = vsel %vm7452_vm5, %v5927_v7, %v4650_v4  ;;  %v7013_v19 = vld [vmem:[%s7174_s14 + $0x3c] sm:$0xff]   ;;  %v7069_v1 = vld [vmem:[%s9010_s1 + $0x110] sm:$0xff]  }
 0x116   : > { %6634 = vmatpush3.bf16.msra.mxu1 %v9075_v58  ;;  %6358 = vmatprep.mubr.bf16.mxu1 %v7010_v39  ;;  %v4178_v28 = vrot.slane %v4176_v46, 4  ;;  %v4181_v33 = vrot.slane %v4179_v52, 5  ;;  %v2400_v39 = vrot.slane %v2399_v23, 4  ;;  %v8630_v5 = vsel %vm7452_vm5, %v4652_v47, %v4653_v55  ;;  %v7070_v47 = vld [vmem:[%s7174_s14 + $0x1c] sm:$0xf] }
 0x117   : > { %6627 = vmatprep.subr.bf16.mxu1 %v7068_v6  ;;  %v8636_v53 = vrot.slane %v4185_v50, 5  ;;  %v4191_v30 = vrot.slane %v4189_v0, 4  ;;  %v5959_v62 = vcombine.low %v8626_v32, %v8630_v5  ;;  %v5928_v34 = vrot.slane %v5912_v12, 9 }
 0x118   : > { %v4159_v7 = vrot.slane %v4158_v60, 4  ;;  %v4169_v46 = vrot.slane %v4168_v48, 4  ;;  %v2405_v52 = vsel %vm7206_vm2, %v2400_v39, %v7782_v11  ;;  %v4657_v56 = vrot.slane %v9076_v2, 5  ;;  %v9077_v11 = vld [vmem:[#allocation14_spill] sm:$0xff]  ;;  %v7014_v39 = vld [vmem:[%s7174_s14 + $0x48] sm:$0xff]  }
 0x119   : > { %v4140_v4 = vsel %vm7206_vm2, %v4135_v40, %v8482_v49  ;;  %v4150_v60 = vsel %vm7206_vm2, %v4145_v14, %v8571_v57  ;;  %v8654_v50 = vcombine.low %v2405_v52, %v2415_v16  ;;  %v4660_v0 = vrot.slane %v9077_v11, 5  ;;  %v5902_v57 = vld [vmem:[%s7174_s14 + $0x18] sm:$0xe]  ;;  %v5913_v16 = vld [vmem:[%s7174_s14 + $0x9c] sm:$0xe] }
 0x11a   : > { %6635 = vmatpush3.bf16.msra.mxu1 %v7068_v6  ;;  %v4182_v24 = vor.u32 %v4181_v33, %v4178_v28  ;;  %v4195_v55 = vshll.u32 %v8634_v13, 16  ;;  %v8661_v58 = vsel %vm7452_vm5, %v5928_v34, %v4657_v56  ;;  %v4659_v48 = vrot.slane %v4657_v56, 4  ;;  %v7071_v40 = vld [vmem:[%s9010_s1 + $0x118] sm:$0xff]   ;;  %v7072_v2 = vld [vmem:[%s7174_s14 + $0x20] sm:$0x1] }
 0x11b   : > { %6628 = vmatprep.subr.bf16.mxu1 %v7069_v1  ;;  %v4192_v49 = vor.u32 %v4191_v30, %v8636_v53  ;;  %v4174_v23 = vsel %vm7206_vm2, %v4169_v46, %v4173_v18  ;;  %v4587_v12 = vrot.slane %v7070_v47, 5  ;;  %v5891_v6 = vcombine.low %v4140_v4, %v4150_v60  ;;  %v9078_v34 = vld [vmem:[#allocation13_spill] sm:$0xff]  ;;  %v5914_v11 = vld [vmem:[%s7174_s14 + $0xa8] sm:$0xe] }
 0x11c   : > { %6567 = vmatmul.mubr.bf16.gmra.mrb[20].mxu0 %v8559_v36  ;;  %v4164_v36 = vsel %vm7206_vm2, %v4159_v7, %v8582_v59  ;;  %v4183_v14 = vrot.slane %v4182_v24, 4  ;;  %v4197_v28 = vrot.slane %v4195_v55, 5  ;;  %v5918_v18 = vrot.slane %v5902_v57, 9  ;;  %v7016_v46 = vld [vmem:[%s7174_s14 + $0x54] sm:$0xff]   ;;  %v5903_v55 = vld [vmem:[%s7174_s14 + $0x24] sm:$0xe] }
 0x11d   : > { %6359 = vmatmul.mubr.bf16.gmra.mrb[4].mxu1 %v7011_v3  ;;  %6570 = vmatprep.mubr.bf16.mxu0 %v8569_v22  ;;  %v8675_v22 = vsel %vm7452_vm5, %v4659_v48, %v4660_v0  ;;  %v5929_v33 = vrot.slane %v5913_v16, 9  ;;  %v5892_v3 = vcombine.low %v4164_v36, %v4174_v23  ;;  %v4193_v30 = vrot.slane %v4192_v49, 4  ;;  %v7074_v48 = vld [vmem:[%s7174_s14 + $0x28] sm:$0xf]  ;;  %v7075_v36 = vld [vmem:[%s7174_s14 + $0x34] sm:$0xf] }
 0x11e   : > { %6362 = vmatprep.mubr.bf16.mxu1 %v7013_v19  ;;  %6636 = vmatpush3.bf16.msra.mxu1 %v7069_v1  ;;  %v5960_v59 = vcombine.low %v8661_v58, %v8675_v22  ;;  %v4664_v19 = vrot.slane %v9078_v34, 5  ;;  %v4667_v7 = vrot.slane %v8364_v25, 5  ;;  %v4589_v52 = vrot.slane %v4587_v12, 4  ;;  %v7073_v1 = vld [vmem:[%s9010_s1 + $0x120] sm:$0xff]  }
 0x11f   : > { %6629 = vmatprep.subr.bf16.mxu1 %v7071_v40  ;;  %v4590_v56 = vrot.slane %v7072_v2, 5  ;;  %v4588_v25 = vsel %vm7452_vm5, %v5918_v18, %v4587_v12  ;;  %v4188_v0 = vsel %vm7206_vm2, %v4183_v14, %v8636_v53  ;;  %v4198_v24 = vsel %vm7206_vm2, %v4193_v30, %v4197_v28  ;;  %v5904_v12 = vld [vmem:[%s7174_s14 + $0x30] sm:$0xe]  ;;  %v7017_v30 = vld [vmem:[%s7174_s14 + $0x60] sm:$0xff]  }
 0x120   : > { %v8692_v4 = vsel %vm7452_vm5, %v5929_v33, %v4664_v19  ;;  %v4666_v60 = vrot.slane %v4664_v19, 4  ;;  %v4594_v49 = vrot.slane %v7074_v48, 5  ;;  %v4601_v23 = vrot.slane %v7075_v36, 5  ;;  %v7077_v33 = vld [vmem:[%s7174_s14 + $0x2c] sm:$0x1] }
 0x121   : > { %v4591_v16 = vsel %vm7452_vm5, %v4589_v52, %v4590_v56  ;;  %v5930_v47 = vrot.slane %v5914_v11, 9  ;;  %v5893_v28 = vcombine.low %v4188_v0, %v4198_v24  ;;  %v5919_v18 = vrot.slane %v5903_v55, 9  ;;  %v7019_v52 = vld [vmem:[%s7174_s14 + $0x6c] sm:$0xff]   ;;  %v5915_v11 = vld [vmem:[%s7174_s14 + $0xb4] sm:$0xe] }
 0x122   : > { %6637 = vmatpush3.bf16.msra.mxu1 %v7071_v40  ;;  %v8706_v57 = vsel %vm7452_vm5, %v4666_v60, %v4667_v7  ;;  %v9079_v40 = vld [vmem:[#allocation16_spill] sm:$0xff]  ;;  %v5950_v34 = vcombine.low %v4588_v25, %v4591_v16  ;;  %v4596_v19 = vrot.slane %v4594_v49, 4  ;;  %v5920_v2 = vrot.slane %v5904_v12, 9  ;;  %v5905_v0 = vld [vmem:[%s7174_s14 + $0x3c] sm:$0xe] }
 0x123   : > { %6630 = vmatprep.subr.bf16.mxu1 %v7073_v1  ;;  %v5961_v53 = vcombine.low %v8692_v4, %v8706_v57  ;;  %v4671_v14 = vrot.slane %v9079_v40, 5  ;;  %v4603_v56 = vrot.slane %v4601_v23, 4  ;;  %v7079_v24 = vld [vmem:[%s7174_s14 + $0x40] sm:$0xf]  ;;  %v4595_v48 = vsel %vm7452_vm5, %v5919_v18, %v4594_v49  ;;  %v7081_v18 = vld [vmem:[%s7174_s14 + $0x44] sm:$0x1] }
 0x124   : > { %6571 = vmatmul.mubr.bf16.gmra.mrb[24].mxu0 %v5891_v6  ;;  %v7076_v6 = vld [vmem:[%s9010_s1 + $0x128] sm:$0xff]   ;;  %v4608_v55 = vrot.slane %v7079_v24, 5  ;;  %v4678_v12 = vrot.slane %v8411_v10, 5  ;;  %v4602_v49 = vsel %vm7452_vm5, %v5920_v2, %v4601_v23  ;;  %v7082_v10 = vld [vmem:[%s9010_s1 + $0x138] sm:$0xff]   ;;  %v5916_v23 = vld [vmem:[%s7174_s14 + $0xc0] sm:$0xe] }
 0x125   : > { %6363 = vmatmul.mubr.bf16.gmra.mrb[8].mxu1 %v7014_v39  ;;  %6574 = vmatprep.mubr.bf16.mxu0 %v5892_v3  ;;  %v4597_v39 = vrot.slane %v7077_v33, 5  ;;  %v4674_v3 = vrot.slane %v8399_v21, 5  ;;  %v8723_v7 = vsel %vm7452_vm5, %v5930_v47, %v4671_v14  ;;  %v7080_v21 = vld [vmem:[%s9010_s1 + $0x130] sm:$0xff]   ;;  %v5931_v47 = vrot.slane %v5915_v11, 9 }
 0x126   : > { %6366 = vmatprep.mubr.bf16.mxu1 %v7016_v46  ;;  %6638 = vmatpush3.bf16.msra.mxu1 %v7073_v1  ;;  %v4673_v46 = vrot.slane %v4671_v14, 4  ;;  %v7078_v1 = vld [vmem:[%s7174_s14 + $0x38] sm:$0x1]  ;;  %v5921_v14 = vrot.slane %v5905_v0, 9  ;;  %v4611_v33 = vrot.slane %v7081_v18, 5  ;;  %v4685_v11 = vrot.slane %v8493_v51, 5 }
 0x127   : > { %6631 = vmatprep.subr.bf16.mxu1 %v7076_v6  ;;  %v4604_v60 = vrot.slane %v7078_v1, 5  ;;  %v4598_v36 = vsel %vm7452_vm5, %v4596_v19, %v4597_v39  ;;  %v4680_v39 = vrot.slane %v4678_v12, 4  ;;  %v5606_v19 = vld [vmem:[%s7174_s14 + $0x6c] sm:$0xf]  ;;  %v7022_v18 = vld [vmem:[%s7174_s14 + $0x90] sm:$0xff]   ;;  %v2436_v20 = vshll.u32 %v7088_v63, 16 }
 0x128   : > { %v8735_v25 = vsel %vm7452_vm5, %v4673_v46, %v4674_v3  ;;  %v5951_v3 = vcombine.low %v4595_v48, %v4598_v36  ;;  %v4609_v1 = vsel %vm7452_vm5, %v5921_v14, %v4608_v55  ;;  %v2369_v0 = vshrl.u32 %v5606_v19, 16  ;;  %v5917_v51 = vld [vmem:[%s7174_s14 + $0xcc] sm:$0xe] }
 0x129   : > { %v5962_v16 = vcombine.low %v8723_v7, %v8735_v25  ;;  %v4605_v40 = vsel %vm7452_vm5, %v4603_v56, %v4604_v60  ;;  %v5932_v56 = vrot.slane %v5916_v23, 9  ;;  %v2372_v24 = vshll.u32 %v5606_v19, 16 }
 0x12a   : > { %6639 = vmatpush3.bf16.msra.mxu1 %v7076_v6  ;;  %v4681_v6 = vrot.slane %v8432_v27, 5  ;;  %v8755_v27 = vsel %vm7452_vm5, %v5931_v47, %v4678_v12  ;;  %v4688_v36 = vrot.slane %v8544_v26, 5  ;;  %v4687_v12 = vrot.slane %v4685_v11, 4 }
 0x12b   : > { %6632 = vmatprep.subr.bf16.mxu1 %v7080_v21  ;;  %v2374_v26 = vrot.slane %v2372_v24, 5  ;;  %v4695_v23 = vrot.slane %v8634_v13, 5 }
 0x12c   : > { %6575 = vmatmul.mubr.bf16.gmra.mrb[28].mxu0 %v5893_v28  ;;  %v4610_v28 = vrot.slane %v4608_v55, 4  ;;  %v8762_v46 = vsel %vm7452_vm5, %v4680_v39, %v4681_v6  ;;  %v8776_v55 = vsel %vm7452_vm5, %v5932_v56, %v4685_v11  ;;  %v4692_v39 = vrot.slane %v8596_v31, 5  ;;  %v7084_v56 = vld [vmem:[%s7174_s14 + $0x74] sm:$0x1] }
 0x12d   : > { %6367 = vmatmul.mubr.bf16.gmra.mrb[12].mxu1 %v7017_v30  ;;  %6594 = vmatprep.mubr.bf16.mxu0 %v5950_v34  ;;  %v7020_v30 = vld [vmem:[%s7174_s14 + $0x78] sm:$0xff]   ;;  %v5952_v34 = vcombine.low %v4602_v49, %v4605_v40  ;;  %v5963_v2 = vcombine.low %v8755_v27, %v8762_v46  ;;  %v8781_v49 = vsel %vm7452_vm5, %v4687_v12, %v4688_v36  ;;  %v2371_v40 = vrot.slane %v2369_v0, 4  ;;  %v7085_v0 = vld [vmem:[%s7174_s14 + $0x88] sm:$0xf] }
 0x12e   : > { %6370 = vmatprep.mubr.bf16.mxu1 %v7019_v52  ;;  %6640 = vmatpush3.bf16.msra.mxu1 %v7080_v21  ;;  %v7021_v52 = vld [vmem:[%s7174_s14 + $0x84] sm:$0xff]   ;;  %v4612_v60 = vsel %vm7452_vm5, %v4610_v28, %v4611_v33  ;;  %v7083_v21 = vld [vmem:[%s7174_s14 + $0x70] sm:$0xf]  ;;  %v5964_v28 = vcombine.low %v8776_v55, %v8781_v49  ;;  %v4694_v19 = vrot.slane %v4692_v39, 4  ;;  %v2426_v24 = vshll.u32 %v7085_v0, 16 }
 0x12f   : > { %6633 = vmatprep.subr.bf16.mxu1 %v7082_v10  ;;  %v2378_v48 = vshll.u32 %v7083_v21, 16  ;;  %v2382_v47 = vshrl.u32 %v7083_v21, 16  ;;  %v5953_v6 = vcombine.low %v4609_v1, %v4612_v60  ;;  %v2388_v1 = vshll.u32 %v7084_v56, 16 }
 0x130   : > { %v8803_v11 = vsel %vm7452_vm5, %v4694_v19, %v4695_v23  ;;  %v2430_v21 = vshrl.u32 %v7085_v0, 16  ;;  %v7087_v19 = vld [vmem:[%s7174_s14 + $0xa0] sm:$0xf] }
 0x131   : > { %v8783_v14 = vrot.slane %v2378_v48, 5  ;;  %v2384_v33 = vrot.slane %v2382_v47, 4  ;;  %v2478_v56 = vshrl.u32 %v7087_v19, 16 }
 0x132   : > { %6641 = vmatpush3.bf16.msra.mxu1 %v7082_v10  ;;  %v5933_v10 = vrot.slane %v5917_v51, 9 }
 0x133   : > { %v2385_v31 = vor.u32 %v2384_v33, %v8783_v14  ;;  %v2444_v33 = vshll.u32 %v5615_v61, 16 }
 0x134   : > { %6595 = vmatmul.mubr.bf16.vlgmr.msra.gmra.mrb[0].mxu0 %v5951_v3  ;;  %v7023_v3 = vld [vmem:[%s7174_s14 + $0x9c] sm:$0xff]  }
 0x135   : > { %6371 = vmatmul.mubr.bf16.gmra.mrb[16].mxu1 %v7020_v30  ;;  %6598 = vmatprep.mubr.bf16.mxu0 %v5952_v34  ;;  %v5612_v30 = vld [vmem:[%s7174_s14 + $0x84] sm:$0xf]  ;;  %v8794_v34 = vsel %vm7452_vm5, %v5933_v10, %v4692_v39  ;;  %v2386_v47 = vrot.slane %v2385_v31, 4  ;;  %v7086_v10 = vld [vmem:[%s7174_s14 + $0x94] sm:$0xf]  ;;  %v2446_v0 = vrot.slane %v2444_v33, 5 }
 0x136   : > { %6374 = vmatprep.mubr.bf16.mxu1 %v7021_v52  ;;  %v2375_v52 = vor.u32 %v2374_v26, %v2371_v40  ;;  %v2417_v13 = vshrl.u32 %v5612_v30, 16  ;;  %v2420_v60 = vshll.u32 %v5612_v30, 16  ;;  %v5965_v48 = vcombine.low %v8794_v34, %v8803_v11 }
 0x137   : > { %v8812_v40 = vrot.slane %v2426_v24, 5  ;;  %v2432_v26 = vrot.slane %v2430_v21, 4  ;;  %v2450_v39 = vshll.u32 %v7086_v10, 16  ;;  %v2454_v23 = vshrl.u32 %v7086_v10, 16  ;;  %v7090_v10 = vld [vmem:[%s7174_s14 + $0xa4] sm:$0x1] }
 0x138   : > { %v2376_v36 = vrot.slane %v2375_v52, 4  ;;  %v2419_v12 = vrot.slane %v2417_v13, 4  ;;  %v2422_v51 = vrot.slane %v2420_v60, 5  ;;  %v2474_v52 = vshll.u32 %v7087_v19, 16  ;;  %v7091_v19 = vld [vmem:[%s7174_s14 + $0xac] sm:$0xf] }
 0x139   : > { %v2433_v13 = vor.u32 %v2432_v26, %v8812_v40  ;;  %v8829_v41 = vrot.slane %v2450_v39, 5  ;;  %v2456_v42 = vrot.slane %v2454_v23, 4  ;;  %v2480_v21 = vrot.slane %v2478_v56, 4  ;;  %v5624_v23 = vld [vmem:[%s7174_s14 + $0xb4] sm:$0xf] }
 0x13a   : > { %v2484_v39 = vshll.u32 %v7090_v10, 16  ;;  %v2502_v15 = vshrl.u32 %v7091_v19, 16  ;;  %v2516_v63 = vshll.u32 %v5624_v23, 16 }
 0x13b   : > { %v2457_v26 = vor.u32 %v2456_v42, %v8829_v41 }
 0x13c   : > { %6599 = vmatmul.mubr.bf16.gmra.mrb[4].mxu0 %v5953_v6  ;;  %v5618_v6 = vld [vmem:[%s7174_s14 + $0x9c] sm:$0xf] }
 0x13d   : > { %6375 = vmatmul.mubr.bf16.gmra.mrb[20].mxu1 %v7022_v18  ;;  %6602 = vmatprep.mubr.bf16.mxu0 %v5954_v8  ;;  %v2390_v8 = vrot.slane %v2388_v1, 5  ;;  %v2441_v18 = vshrl.u32 %v5615_v61, 16  ;;  %v2468_v30 = vshll.u32 %v5618_v6, 16  ;;  %v2381_v1 = vsel %vm7206_vm2, %v2376_v36, %v8783_v14  ;;  %v7026_v61 = vld [vmem:[%s7174_s14 + $0xc0] sm:$0xff]  }
 0x13e   : > { %6378 = vmatprep.mubr.bf16.mxu1 %v7023_v3  ;;  %v2465_v3 = vshrl.u32 %v5618_v6, 16  ;;  %v8831_v14 = vrot.slane %v2474_v52, 5  ;;  %v2498_v52 = vshll.u32 %v7091_v19, 16 }
 0x13f   : > { %v2391_v31 = vsel %vm7206_vm2, %v2386_v47, %v2390_v8  ;;  %v2443_v60 = vrot.slane %v2441_v18, 4  ;;  %v2470_v24 = vrot.slane %v2468_v30, 5  ;;  %v2438_v8 = vrot.slane %v2436_v20, 5  ;;  %v7092_v20 = vld [vmem:[%s7174_s14 + $0xb8] sm:$0xf] }
 0x140   : > { %v2434_v47 = vrot.slane %v2433_v13, 4  ;;  %v2481_v33 = vor.u32 %v2480_v21, %v8831_v14  ;;  %v2522_v29 = vshll.u32 %v7092_v20, 16  ;;  %v2526_v44 = vshrl.u32 %v7092_v20, 16 }
 0x142   : > { %v2482_v13 = vrot.slane %v2481_v33, 4 }
 0x144   : > { %6603 = vmatmul.mubr.bf16.gmra.mrb[8].mxu0 %v5955_v54  ;;  %v2423_v54 = vor.u32 %v2422_v51, %v2419_v12  ;;  %v2447_v12 = vor.u32 %v2446_v0, %v2443_v60  ;;  %v7089_v51 = vld [vmem:[%s7174_s14 + $0x98] sm:$0x1]  ;;  %v2486_v60 = vrot.slane %v2484_v39, 5 }
 0x145   : > { %6379 = vmatmul.mubr.bf16.gmra.mrb[24].mxu1 %v7024_v45  ;;  %6606 = vmatprep.mubr.bf16.mxu0 %v5956_v17  ;;  %v2467_v17 = vrot.slane %v2465_v3, 4  ;;  %v5654_v45 = vcombine.low %v2381_v1, %v2391_v31  ;;  %v2460_v6 = vshll.u32 %v7089_v51, 16  ;;  %v2513_v31 = vshrl.u32 %v5624_v23, 16 }
 0x146   : > { %6382 = vmatprep.mubr.bf16.mxu1 %v7025_v9  ;;  %v2424_v36 = vrot.slane %v2423_v54, 4  ;;  %v5621_v9 = vld [vmem:[%s7174_s14 + $0xa8] sm:$0xf]  ;;  %v2448_v56 = vrot.slane %v2447_v12, 4  ;;  %v2487_v32 = vsel %vm7206_vm2, %v2482_v13, %v2486_v60 }
 0x147   : > { %v2471_v18 = vor.u32 %v2470_v24, %v2467_v17  ;;  %v2489_v3 = vshrl.u32 %v5621_v9, 16  ;;  %v2492_v30 = vshll.u32 %v5621_v9, 16  ;;  %v2462_v1 = vrot.slane %v2460_v6, 5 }
 0x148   : > { %v2429_v43 = vsel %vm7206_vm2, %v2424_v36, %v8812_v40  ;;  %v2500_v17 = vrot.slane %v2498_v52, 5  ;;  %v2504_v24 = vrot.slane %v2502_v15, 4  ;;  %v2515_v21 = vrot.slane %v2513_v31, 4  ;;  %v5627_v36 = vld [vmem:[%s7174_s14 + $0xc0] sm:$0xf] }
 0x149   : > { %v2472_v54 = vrot.slane %v2471_v18, 4  ;;  %v2491_v0 = vrot.slane %v2489_v3, 4  ;;  %v2494_v42 = vrot.slane %v2492_v30, 5  ;;  %v2537_v9 = vshrl.u32 %v5627_v36, 16  ;;  %v7094_v18 = vld [vmem:[%s7174_s14 + $0xc4] sm:$0xf] }
 0x14a   : > { %v2546_v33 = vshll.u32 %v7094_v18, 16 }
 0x14b   : > { %v2477_v51 = vsel %vm7206_vm2, %v2472_v54, %v8831_v14  ;;  %v2495_v5 = vor.u32 %v2494_v42, %v2491_v0  ;;  %v2550_v14 = vshrl.u32 %v7094_v18, 16  ;;  %v2539_v19 = vrot.slane %v2537_v9, 4 }
 0x14c   : > { %6607 = vmatmul.mubr.bf16.gmra.mrb[12].mxu0 %v5957_v38  ;;  %v2439_v38 = vsel %vm7206_vm2, %v2434_v47, %v2438_v8  ;;  %v2528_v8 = vrot.slane %v2526_v44, 4  ;;  %v2453_v47 = vsel %vm7206_vm2, %v2448_v56, %v8829_v41  ;;  %v7093_v41 = vld [vmem:[%s7174_s14 + $0xb0] sm:$0x1]  ;;  %v5658_v58 = vcombine.low %v2477_v51, %v2487_v32  ;;  %v7096_v44 = vld [vmem:[%s7174_s14 + $0xc8] sm:$0x1] }
 0x14d   : > { %6383 = vmatmul.mubr.bf16.gmra.mrb[28].mxu1 %v7026_v61  ;;  %6610 = vmatprep.mubr.bf16.mxu0 %v5958_v35  ;;  %v2458_v35 = vrot.slane %v2457_v26, 4  ;;  %v5656_v40 = vcombine.low %v2429_v43, %v2439_v38  ;;  %v2518_v61 = vrot.slane %v2516_v63, 5  ;;  %v2508_v6 = vshll.u32 %v7093_v41, 16 }
 0x14e   : > { %6418 = vmatprep.mubr.bf16.mxu1 %v5654_v45  ;;  %v2524_v45 = vrot.slane %v2522_v29, 5  ;;  %v2540_v26 = vshll.u32 %v5627_v36, 16  ;;  %v2496_v22 = vrot.slane %v2495_v5, 4  ;;  %v2548_v15 = vrot.slane %v2546_v33, 5 }
 0x14f   : > { %v2463_v12 = vsel %vm7206_vm2, %v2458_v35, %v2462_v1  ;;  %v2519_v10 = vor.u32 %v2518_v61, %v2515_v21  ;;  %v2510_v30 = vrot.slane %v2508_v6, 5  ;;  %v2552_v43 = vrot.slane %v2550_v14, 4 }
 0x150   : > { %v2529_v39 = vor.u32 %v2528_v8, %v2524_v45  ;;  %v5657_v3 = vcombine.low %v2453_v47, %v2463_v12  ;;  %v2542_v52 = vrot.slane %v2540_v26, 5  ;;  %v2501_v31 = vsel %vm7206_vm2, %v2496_v22, %v2500_v17  ;;  %v8921_v8 = vld [vmem:[%s9011_s2] ss:$0 sm:$0xff] }
 0x151   : > { %v2520_v38 = vrot.slane %v2519_v10, 4  ;;  %v2553_v29 = vor.u32 %v2552_v43, %v2548_v15  ;;  %v2556_v35 = vshll.u32 %v7096_v44, 16 }
 0x152   : > { %v2530_v56 = vrot.slane %v2529_v39, 4  ;;  %v2543_v20 = vor.u32 %v2542_v52, %v2539_v19 }
 0x153   : > { %v2525_v4 = vsel %vm7206_vm2, %v2520_v38, %v2524_v45  ;;  %v2558_v54 = vrot.slane %v2556_v35, 5 }
 0x154   : > { %6611 = vmatmul.mubr.bf16.gmra.mrb[16].mxu0 %v5959_v62  ;;  %v2505_v62 = vor.u32 %v2504_v24, %v2500_v17  ;;  %v2544_v25 = vrot.slane %v2543_v20, 4 }
 0x155   : > { %6419 = vmatmul.mubr.bf16.vlgmr.msra.gmra.mrb[16].mxu1 %v8654_v50  ;;  %6614 = vmatprep.mubr.bf16.mxu0 %v5960_v59  ;;  %v7095_v50 = vld [vmem:[%s7174_s14 + $0xbc] sm:$0x1] }
 0x156   : > { %6422 = vmatprep.mubr.bf16.mxu1 %v5656_v40  ;;  %v2532_v23 = vshll.u32 %v7095_v50, 16  ;;  %v2506_v59 = vrot.slane %v2505_v62, 4  ;;  %v2549_v13 = vsel %vm7206_vm2, %v2544_v25, %v2548_v15 }
 0x158   : > { %v2534_v1 = vrot.slane %v2532_v23, 5  ;;  %v2511_v63 = vsel %vm7206_vm2, %v2506_v59, %v2510_v30 }
 0x15a   : > { %v2535_v57 = vsel %vm7206_vm2, %v2530_v56, %v2534_v1 }
 0x15b   : > { %v5660_v7 = vcombine.low %v2525_v4, %v2535_v57 }
 0x15c   : > { %6615 = vmatmul.mubr.bf16.gmra.mrb[20].mxu0 %v5961_v53  ;;  %v5659_v53 = vcombine.low %v2501_v31, %v2511_v63 }
 0x15d   : > { %6423 = vmatmul.mubr.bf16.gmra.mrb[20].mxu1 %v5657_v3  ;;  %6618 = vmatprep.mubr.bf16.mxu0 %v5962_v16  ;;  %v2554_v16 = vrot.slane %v2553_v29, 4 }
 0x15e   : > { %6426 = vmatprep.mubr.bf16.mxu1 %v5658_v58 }
 0x15f   : > { %v2559_v60 = vsel %vm7206_vm2, %v2554_v16, %v2558_v54 }
 0x160   : > { %v5661_v0 = vcombine.low %v2549_v13, %v2559_v60 }
 0x164   : > { %6619 = vmatmul.mubr.bf16.gmra.mrb[24].mxu0 %v5963_v2 }
 0x165   : > { %6427 = vmatmul.mubr.bf16.gmra.mrb[24].mxu1 %v5659_v53  ;;  %6622 = vmatprep.mubr.bf16.mxu0 %v5964_v28 }
 0x166   : > { %6430 = vmatprep.mubr.bf16.mxu1 %v5660_v7 }
 0x16c   : > { %6623 = vmatmul.mubr.bf16.gmra.mrb[28].mxu0 %v5965_v48 }
 0x16d   : > { %6431 = vmatmul.mubr.bf16.gmra.mrb[28].mxu1 %v5661_v0 }
 0x1e8   : > { %v6356_v27 = vpop.f32.mrb[0].mxu1 }
 0x1e9   : > { %v1969_v46 = vpop.f32.mrb[1].mxu1 }
 0x1ea   : > { %v6357_v2 = vpop.f32.mrb[2].mxu1 }
 0x1eb   : > { %v1972_v42 = vpop.f32.mrb[3].mxu1 }
 0x1f0   : > { %v6360_v17 = vpop.f32.mrb[4].mxu1 }
 0x1f1   : > { %v1985_v55 = vpop.f32.mrb[5].mxu1 }
 0x1f2   : > { %v6361_v49 = vpop.f32.mrb[6].mxu1 }
 0x1f3   : > { %v1988_v28 = vpop.f32.mrb[7].mxu1 }
 0x1f8   : > { %v8902_v24 = vpop.f32.mrb[8].mxu1 }
 0x1f9   : > { %v8904_v40 = vpop.f32.mrb[9].mxu1 }
 0x1fa   : > { %v8906_v37 = vpop.f32.mrb[10].mxu1 }
 0x1fb   : > { %v8908_v21 = vpop.f32.mrb[11].mxu1 }
 0x200   : > { %v8910_v34 = vpop.f32.mrb[12].mxu1 }
 0x201   : > { %v8912_v11 = vpop.f32.mrb[13].mxu1 }
 0x202   : > { %v8914_v48 = vpop.f32.mrb[14].mxu1 }
 0x203   : > { %v8916_v61 = vpop.f32.mrb[15].mxu1 }
 0x207   : > { %v6596_v45 = vpop.f32.mrb[0].mxu0 }
 0x208   : > { %v6642_v36 = vadd.f32 %v6596_v45, %v6356_v27  ;;  %v4860_v47 = vpop.f32.mrb[1].mxu0 }
 0x209   : > { %v6643_v12 = vadd.f32 %v4860_v47, %v1969_v46  ;;  %v6597_v51 = vpop.f32.mrb[2].mxu0 }
 0x20a   : > { %v5028_v32 = vadd.f32 %v6642_v36, %v8921_v8  ;;  %v6644_v5 = vadd.f32 %v6597_v51, %v6357_v2  ;;  %v4863_v62 = vpop.f32.mrb[3].mxu0 }
 0x20b   : > { %v5026_v41 = vadd.f32 %v6643_v12, %v8921_v8  ;;  %v6645_v6 = vadd.f32 %v4863_v62, %v1972_v42 }
 0x20c   : > { %vm5060_vm6 = vcmp.gt.f32.partialorder %v5028_v32, 0.0  ;;  %v5092_v9 = vmul.f32 0.018, %v5028_v32  ;;  %v5029_v26 = vadd.f32 %v6644_v5, %v8921_v8 }
 0x20d   : > { %vm5058_vm7 = vcmp.gt.f32.partialorder %v5026_v41, 0.0  ;;  %v5090_v18 = vmul.f32 0.018, %v5026_v41  ;;  %v5027_v33 = vadd.f32 %v6645_v6, %v8921_v8 }
 0x20e   : > { %v5124_v14 = vsel %vm5060_vm6, %v5028_v32, %v5092_v9  ;;  %vm5061_vm8 = vcmp.gt.f32.partialorder %v5029_v26, 0.0  ;;  %v5093_v10 = vmul.f32 0.018, %v5029_v26 }
 0x20f   : > { %5156 = vst [vmem:[%s8929_s23 + $0x10] sm:$0xff] %v5124_v14  ;;  %v5122_v39 = vsel %vm5058_vm7, %v5026_v41, %v5090_v18  ;;  %vm5059_vm9 = vcmp.gt.f32.partialorder %v5027_v33, 0.0  ;;  %v5091_v50 = vmul.f32 0.018, %v5027_v33  ;;  %v6600_v23 = vpop.f32.mrb[4].mxu0  ;;  %v5225_v31 = vmul.f32 %v5124_v14, %v5124_v14 }
 0x210   : > { %5154 = vst [vmem:[%s8929_s23] sm:$0xff] %v5122_v39  ;;  %v5125_v3 = vsel %vm5061_vm8, %v5029_v26, %v5093_v10  ;;  %v6646_v58 = vadd.f32 %v6600_v23, %v6360_v17  ;;  %v4876_v22 = vpop.f32.mrb[5].mxu0  ;;  %v5223_v59 = vmul.f32 %v5122_v39, %v5122_v39 }
 0x211   : > { %5157 = vst [vmem:[%s8929_s23 + $0x18] sm:$0xff] %v5125_v3  ;;  %v5123_v30 = vsel %vm5059_vm9, %v5027_v33, %v5091_v50  ;;  %v6647_v19 = vadd.f32 %v4876_v22, %v1985_v55  ;;  %v6601_v52 = vpop.f32.mrb[6].mxu0  ;;  %v5226_v7 = vmul.f32 %v5125_v3, %v5125_v3 }
 0x212   : > { %5155 = vst [vmem:[%s8929_s23 + $0x8] sm:$0xff] %v5123_v30  ;;  %v5186_v15 = vadd.f32 %v5123_v30, %v5122_v39  ;;  %v5224_v43 = vmul.f32 %v5123_v30, %v5123_v30  ;;  %v5032_v38 = vadd.f32 %v6646_v58, %v8921_v8  ;;  %v6648_v56 = vadd.f32 %v6601_v52, %v6361_v49  ;;  %v4879_v1 = vpop.f32.mrb[7].mxu0 }
 0x213   : > { %v5030_v63 = vadd.f32 %v6647_v19, %v8921_v8  ;;  %v6649_v20 = vadd.f32 %v4879_v1, %v1988_v28 }
 0x214   : > { %v5187_v29 = vadd.f32 %v5186_v15, %v5124_v14  ;;  %v5255_v44 = vadd.f32 %v5224_v43, %v5223_v59  ;;  %vm5064_vm10 = vcmp.gt.f32.partialorder %v5032_v38, 0.0  ;;  %v5096_v35 = vmul.f32 0.018, %v5032_v38 }
 0x215   : > { %vm5062_vm11 = vcmp.gt.f32.partialorder %v5030_v63, 0.0  ;;  %v5094_v4 = vmul.f32 0.018, %v5030_v63  ;;  %v5033_v57 = vadd.f32 %v6648_v56, %v8921_v8  ;;  %v5031_v53 = vadd.f32 %v6649_v20, %v8921_v8 }
 0x216   : > { %v5256_v25 = vadd.f32 %v5255_v44, %v5225_v31  ;;  %v5128_v16 = vsel %vm5064_vm10, %v5032_v38, %v5096_v35  ;;  %v5188_v54 = vadd.f32 %v5187_v29, %v5125_v3 }
 0x217   : > { %5160 = vst [vmem:[%s8929_s23 + $0x30] sm:$0xff] %v5128_v16  ;;  %v5126_v13 = vsel %vm5062_vm11, %v5030_v63, %v5094_v4  ;;  %vm5065_vm12 = vcmp.gt.f32.partialorder %v5033_v57, 0.0  ;;  %v5097_v60 = vmul.f32 0.018, %v5033_v57  ;;  %v6604_v0 = vpop.f32.mrb[8].mxu0  ;;  %vm5063_vm13 = vcmp.gt.f32.partialorder %v5031_v53, 0.0 }
 0x218   : > { %5158 = vst [vmem:[%s8929_s23 + $0x20] sm:$0xff] %v5126_v13  ;;  %v5189_v27 = vadd.f32 %v5188_v54, %v5126_v13  ;;  %v5227_v46 = vmul.f32 %v5126_v13, %v5126_v13  ;;  %v5257_v2 = vadd.f32 %v5256_v25, %v5226_v7  ;;  %v4892_v42 = vpop.f32.mrb[9].mxu0  ;;  %v5095_v55 = vmul.f32 0.018, %v5031_v53 }
 0x219   : > { %v5129_v17 = vsel %vm5065_vm12, %v5033_v57, %v5097_v60  ;;  %v6650_v49 = vadd.f32 %v6604_v0, %v8902_v24  ;;  %v6651_v28 = vadd.f32 %v4892_v42, %v8904_v40  ;;  %v6605_v45 = vpop.f32.mrb[10].mxu0  ;;  %v5229_v41 = vmul.f32 %v5128_v16, %v5128_v16 }
 0x21a   : > { %v5258_v36 = vadd.f32 %v5257_v2, %v5227_v46  ;;  %5161 = vst [vmem:[%s8929_s23 + $0x38] sm:$0xff] %v5129_v17  ;;  %v6652_v47 = vadd.f32 %v6605_v45, %v8906_v37  ;;  %v4895_v12 = vpop.f32.mrb[11].mxu0  ;;  %v5127_v51 = vsel %vm5063_vm13, %v5031_v53, %v5095_v55  ;;  %v5230_v50 = vmul.f32 %v5129_v17, %v5129_v17 }
 0x21b   : > { %v5036_v32 = vadd.f32 %v6650_v49, %v8921_v8  ;;  %v5034_v5 = vadd.f32 %v6651_v28, %v8921_v8  ;;  %v6653_v62 = vadd.f32 %v4895_v12, %v8908_v21  ;;  %5159 = vst [vmem:[%s8929_s23 + $0x28] sm:$0xff] %v5127_v51  ;;  %v5190_v6 = vadd.f32 %v5189_v27, %v5127_v51 }
 0x21c   : > { %v5228_v9 = vmul.f32 %v5127_v51, %v5127_v51  ;;  %v5037_v24 = vadd.f32 %v6652_v47, %v8921_v8 }
 0x21d   : > { %vm5068_vm14 = vcmp.gt.f32.partialorder %v5036_v32, 0.0  ;;  %v5100_v40 = vmul.f32 0.018, %v5036_v32  ;;  %vm5066_vm15 = vcmp.gt.f32.partialorder %v5034_v5, 0.0  ;;  %v5098_v37 = vmul.f32 0.018, %v5034_v5 }
 0x21e   : > { %v5191_v26 = vadd.f32 %v5190_v6, %v5128_v16  ;;  %v5259_v18 = vadd.f32 %v5258_v36, %v5228_v9  ;;  %vm5069_vm0 = vcmp.gt.f32.partialorder %v5037_v24, 0.0  ;;  %v5101_v33 = vmul.f32 0.018, %v5037_v24 }
 0x21f   : > { %v5132_v14 = vsel %vm5068_vm14, %v5036_v32, %v5100_v40  ;;  %v5130_v10 = vsel %vm5066_vm15, %v5034_v5, %v5098_v37  ;;  %v5035_v21 = vadd.f32 %v6653_v62, %v8921_v8  ;;  %v6608_v39 = vpop.f32.mrb[12].mxu0 }
 0x220   : > { %v5260_v23 = vadd.f32 %v5259_v18, %v5229_v41  ;;  %5164 = vst [vmem:[%s8929_s23 + $0x50] sm:$0xff] %v5132_v14  ;;  %5162 = vst [vmem:[%s8929_s23 + $0x40] sm:$0xff] %v5130_v10  ;;  %v5192_v3 = vadd.f32 %v5191_v26, %v5129_v17  ;;  %v5231_v58 = vmul.f32 %v5130_v10, %v5130_v10  ;;  %v4908_v22 = vpop.f32.mrb[13].mxu0 }
 0x221   : > { %v5133_v59 = vsel %vm5069_vm0, %v5037_v24, %v5101_v33  ;;  %vm5067_vm1 = vcmp.gt.f32.partialorder %v5035_v21, 0.0  ;;  %v5099_v30 = vmul.f32 0.018, %v5035_v21  ;;  %v6654_v19 = vadd.f32 %v6608_v39, %v8910_v34  ;;  %v6609_v52 = vpop.f32.mrb[14].mxu0 }
 0x222   : > { %v5233_v15 = vmul.f32 %v5132_v14, %v5132_v14  ;;  %v5193_v43 = vadd.f32 %v5192_v3, %v5130_v10  ;;  %v5261_v38 = vadd.f32 %v5260_v23, %v5230_v50  ;;  %5165 = vst [vmem:[%s8929_s23 + $0x58] sm:$0xff] %v5133_v59  ;;  %v6655_v56 = vadd.f32 %v4908_v22, %v8912_v11  ;;  %v4911_v1 = vpop.f32.mrb[15].mxu0 }
 0x223   : > { %v5131_v31 = vsel %vm5067_vm1, %v5035_v21, %v5099_v30  ;;  %v5040_v63 = vadd.f32 %v6654_v19, %v8921_v8  ;;  %v6656_v20 = vadd.f32 %v6609_v52, %v8914_v48  ;;  %v6657_v29 = vadd.f32 %v4911_v1, %v8916_v61 }
 0x224   : > { %v5262_v44 = vadd.f32 %v5261_v38, %v5231_v58  ;;  %5163 = vst [vmem:[%s8929_s23 + $0x48] sm:$0xff] %v5131_v31  ;;  %v5194_v35 = vadd.f32 %v5193_v43, %v5131_v31  ;;  %v5232_v4 = vmul.f32 %v5131_v31, %v5131_v31  ;;  %v5038_v34 = vadd.f32 %v6655_v56, %v8921_v8 }
 0x225   : > { %vm5072_vm2 = vcmp.gt.f32.partialorder %v5040_v63, 0.0  ;;  %v5104_v57 = vmul.f32 0.018, %v5040_v63  ;;  %v5041_v53 = vadd.f32 %v6656_v20, %v8921_v8  ;;  %v5039_v11 = vadd.f32 %v6657_v29, %v8921_v8 }
 0x226   : > { %v5195_v7 = vadd.f32 %v5194_v35, %v5132_v14  ;;  %v5263_v25 = vadd.f32 %v5262_v44, %v5232_v4  ;;  %vm5070_vm3 = vcmp.gt.f32.partialorder %v5038_v34, 0.0  ;;  %v5102_v48 = vmul.f32 0.018, %v5038_v34 }
 0x227   : > { %v5234_v16 = vmul.f32 %v5133_v59, %v5133_v59  ;;  %v5136_v61 = vsel %vm5072_vm2, %v5040_v63, %v5104_v57  ;;  %vm5073_vm4 = vcmp.gt.f32.partialorder %v5041_v53, 0.0  ;;  %v5105_v54 = vmul.f32 0.018, %v5041_v53  ;;  %v6612_v13 = vpop.f32.mrb[16].mxu0 }
 0x228   : > { %v5264_v60 = vadd.f32 %v5263_v25, %v5233_v15  ;;  %5168 = vst [vmem:[%s8929_s23 + $0x70] sm:$0xff] %v5136_v61  ;;  %v5134_v0 = vsel %vm5070_vm3, %v5038_v34, %v5102_v48  ;;  %v5196_v27 = vadd.f32 %v5195_v7, %v5133_v59  ;;  %vm5071_vm5 = vcmp.gt.f32.partialorder %v5039_v11, 0.0  ;;  %v6420_v46 = vpop.f32.mrb[16].mxu1  ;;  %v4924_v2 = vpop.f32.mrb[17].mxu0 }
 0x229   : > { %5166 = vst [vmem:[%s8929_s23 + $0x60] sm:$0xff] %v5134_v0  ;;  %v5235_v42 = vmul.f32 %v5134_v0, %v5134_v0  ;;  %v5137_v17 = vsel %vm5073_vm4, %v5041_v53, %v5105_v54  ;;  %v5103_v55 = vmul.f32 0.018, %v5039_v11  ;;  %v6658_v49 = vadd.f32 %v6612_v13, %v6420_v46  ;;  %v2787_v28 = vpop.f32.mrb[17].mxu1  ;;  %v6613_v45 = vpop.f32.mrb[18].mxu0 }
 0x22a   : > { %v5197_v36 = vadd.f32 %v5196_v27, %v5134_v0  ;;  %v5265_v47 = vadd.f32 %v5264_v60, %v5234_v16  ;;  %5169 = vst [vmem:[%s8929_s23 + $0x78] sm:$0xff] %v5137_v17  ;;  %v6659_v12 = vadd.f32 %v4924_v2, %v2787_v28  ;;  %v6421_v51 = vpop.f32.mrb[18].mxu1  ;;  %v4927_v32 = vpop.f32.mrb[19].mxu0  ;;  %v5237_v5 = vmul.f32 %v5136_v61, %v5136_v61 }
 0x22b   : > { %v5135_v62 = vsel %vm5071_vm5, %v5039_v11, %v5103_v55  ;;  %v5044_v41 = vadd.f32 %v6658_v49, %v8921_v8  ;;  %v6660_v6 = vadd.f32 %v6613_v45, %v6421_v51  ;;  %v2790_v9 = vpop.f32.mrb[19].mxu1  ;;  %v5238_v22 = vmul.f32 %v5137_v17, %v5137_v17 }
 0x22c   : > { %v5266_v24 = vadd.f32 %v5265_v47, %v5235_v42  ;;  %5167 = vst [vmem:[%s8929_s23 + $0x68] sm:$0xff] %v5135_v62  ;;  %v5198_v40 = vadd.f32 %v5197_v36, %v5135_v62  ;;  %v5236_v37 = vmul.f32 %v5135_v62, %v5135_v62  ;;  %v5042_v26 = vadd.f32 %v6659_v12, %v8921_v8 }
 0x22d   : > { %vm5076_vm6 = vcmp.gt.f32.partialorder %v5044_v41, 0.0  ;;  %v5108_v18 = vmul.f32 0.018, %v5044_v41  ;;  %v5045_v33 = vadd.f32 %v6660_v6, %v8921_v8  ;;  %v6661_v14 = vadd.f32 %v4927_v32, %v2790_v9 }
 0x22e   : > { %v5199_v10 = vadd.f32 %v5198_v40, %v5136_v61  ;;  %v5267_v21 = vadd.f32 %v5266_v24, %v5236_v37  ;;  %vm5074_vm7 = vcmp.gt.f32.partialorder %v5042_v26, 0.0  ;;  %v5106_v39 = vmul.f32 0.018, %v5042_v26 }
 0x22f   : > { %v5140_v50 = vsel %vm5076_vm6, %v5044_v41, %v5108_v18  ;;  %vm5077_vm8 = vcmp.gt.f32.partialorder %v5045_v33, 0.0  ;;  %v5109_v23 = vmul.f32 0.018, %v5045_v33  ;;  %v5043_v3 = vadd.f32 %v6661_v14, %v8921_v8  ;;  %v6616_v58 = vpop.f32.mrb[20].mxu0 }
 0x230   : > { %v5268_v59 = vadd.f32 %v5267_v21, %v5237_v5  ;;  %5172 = vst [vmem:[%s8929_s23 + $0x90] sm:$0xff] %v5140_v50  ;;  %v5138_v30 = vsel %vm5074_vm7, %v5042_v26, %v5106_v39  ;;  %v5200_v19 = vadd.f32 %v5199_v10, %v5137_v17  ;;  %v6424_v52 = vpop.f32.mrb[20].mxu1  ;;  %v4940_v15 = vpop.f32.mrb[21].mxu0  ;;  %v5241_v4 = vmul.f32 %v5140_v50, %v5140_v50 }
 0x231   : > { %5170 = vst [vmem:[%s8929_s23 + $0x80] sm:$0xff] %v5138_v30  ;;  %v5239_v43 = vmul.f32 %v5138_v30, %v5138_v30  ;;  %v5141_v38 = vsel %vm5077_vm8, %v5045_v33, %v5109_v23  ;;  %vm5075_vm9 = vcmp.gt.f32.partialorder %v5043_v3, 0.0  ;;  %v5107_v56 = vmul.f32 0.018, %v5043_v3  ;;  %v2803_v1 = vpop.f32.mrb[21].mxu1  ;;  %v6617_v31 = vpop.f32.mrb[22].mxu0 }
 0x232   : > { %v5201_v63 = vadd.f32 %v5200_v19, %v5138_v30  ;;  %v5269_v20 = vadd.f32 %v5268_v59, %v5238_v22  ;;  %5173 = vst [vmem:[%s8929_s23 + $0x98] sm:$0xff] %v5141_v38  ;;  %v6662_v29 = vadd.f32 %v6616_v58, %v6424_v52  ;;  %v6425_v44 = vpop.f32.mrb[22].mxu1  ;;  %v4943_v35 = vpop.f32.mrb[23].mxu0  ;;  %v6663_v57 = vadd.f32 %v4940_v15, %v2803_v1 }
 0x233   : > { %v5139_v34 = vsel %vm5075_vm9, %v5043_v3, %v5107_v56  ;;  %v6664_v53 = vadd.f32 %v6617_v31, %v6425_v44  ;;  %v2806_v11 = vpop.f32.mrb[23].mxu1  ;;  %v5242_v61 = vmul.f32 %v5141_v38, %v5141_v38  ;;  %vm5292_vm6 = vcmask 1040384  }
 0x234   : > { %v5270_v7 = vadd.f32 %v5269_v20, %v5239_v43  ;;  %5171 = vst [vmem:[%s8929_s23 + $0x88] sm:$0xff] %v5139_v34  ;;  %v5202_v25 = vadd.f32 %v5201_v63, %v5139_v34  ;;  %v5240_v48 = vmul.f32 %v5139_v34, %v5139_v34  ;;  %v5048_v16 = vadd.f32 %v6662_v29, %v8921_v8 }
 0x235   : > { %v5046_v54 = vadd.f32 %v6663_v57, %v8921_v8  ;;  %v5049_v13 = vadd.f32 %v6664_v53, %v8921_v8  ;;  %v6665_v60 = vadd.f32 %v4943_v35, %v2806_v11 }
 0x236   : > { %v5203_v0 = vadd.f32 %v5202_v25, %v5140_v50  ;;  %v5271_v27 = vadd.f32 %v5270_v7, %v5240_v48  ;;  %vm5080_vm10 = vcmp.gt.f32.partialorder %v5048_v16, 0.0  ;;  %v5112_v46 = vmul.f32 0.018, %v5048_v16 }
 0x237   : > { %vm5078_vm11 = vcmp.gt.f32.partialorder %v5046_v54, 0.0  ;;  %v5110_v2 = vmul.f32 0.018, %v5046_v54  ;;  %vm5081_vm12 = vcmp.gt.f32.partialorder %v5049_v13, 0.0  ;;  %v5113_v42 = vmul.f32 0.018, %v5049_v13 }
 0x238   : > { %v5272_v17 = vadd.f32 %v5271_v27, %v5241_v4  ;;  %v5144_v55 = vsel %vm5080_vm10, %v5048_v16, %v5112_v46  ;;  %v5204_v49 = vadd.f32 %v5203_v0, %v5141_v38  ;;  %v5047_v28 = vadd.f32 %v6665_v60, %v8921_v8  ;;  %v6428_v45 = vpop.f32.mrb[24].mxu1  ;;  %v6620_v36 = vpop.f32.mrb[24].mxu0 }
 0x239   : > { %5176 = vst [vmem:[%s8929_s23 + $0xb0] sm:$0xff] %v5144_v55  ;;  %v5142_v47 = vsel %vm5078_vm11, %v5046_v54, %v5110_v2  ;;  %v5145_v12 = vsel %vm5081_vm12, %v5049_v13, %v5113_v42  ;;  %v6666_v51 = vadd.f32 %v6620_v36, %v6428_v45  ;;  %v2819_v32 = vpop.f32.mrb[25].mxu1  ;;  %v4956_v5 = vpop.f32.mrb[25].mxu0  ;;  %v5245_v30 = vmul.f32 %v5144_v55, %v5144_v55 }
 0x23a   : > { %5174 = vst [vmem:[%s8929_s23 + $0xa0] sm:$0xff] %v5142_v47  ;;  %v5205_v62 = vadd.f32 %v5204_v49, %v5142_v47  ;;  %v5243_v41 = vmul.f32 %v5142_v47, %v5142_v47  ;;  %v5273_v6 = vadd.f32 %v5272_v17, %v5242_v61  ;;  %5177 = vst [vmem:[%s8929_s23 + $0xb8] sm:$0xff] %v5145_v12  ;;  %v6429_v9 = vpop.f32.mrb[26].mxu1  ;;  %v6621_v24 = vpop.f32.mrb[26].mxu0  ;;  %vm5079_vm13 = vcmp.gt.f32.partialorder %v5047_v28, 0.0 }
 0x23b   : > { %v5111_v40 = vmul.f32 0.018, %v5047_v28  ;;  %v5052_v37 = vadd.f32 %v6666_v51, %v8921_v8  ;;  %v6667_v26 = vadd.f32 %v4956_v5, %v2819_v32  ;;  %v2822_v18 = vpop.f32.mrb[27].mxu1  ;;  %v4959_v33 = vpop.f32.mrb[27].mxu0  ;;  %v6668_v10 = vadd.f32 %v6621_v24, %v6429_v9 }
 0x23c   : > { %v5274_v14 = vadd.f32 %v5273_v6, %v5243_v41  ;;  %v6669_v21 = vadd.f32 %v4959_v33, %v2822_v18  ;;  %v5246_v43 = vmul.f32 %v5145_v12, %v5145_v12 }
 0x23d   : > { %v5143_v39 = vsel %vm5079_vm13, %v5047_v28, %v5111_v40  ;;  %vm5084_vm14 = vcmp.gt.f32.partialorder %v5052_v37, 0.0  ;;  %v5116_v50 = vmul.f32 0.018, %v5052_v37  ;;  %v5050_v23 = vadd.f32 %v6667_v26, %v8921_v8 }
 0x23e   : > { %5175 = vst [vmem:[%s8929_s23 + $0xa8] sm:$0xff] %v5143_v39  ;;  %v5206_v3 = vadd.f32 %v5205_v62, %v5143_v39  ;;  %v5244_v58 = vmul.f32 %v5143_v39, %v5143_v39  ;;  %v5053_v22 = vadd.f32 %v6668_v10, %v8921_v8  ;;  %v5051_v59 = vadd.f32 %v6669_v21, %v8921_v8 }
 0x23f   : > { %v5148_v19 = vsel %vm5084_vm14, %v5052_v37, %v5116_v50  ;;  %vm5082_vm15 = vcmp.gt.f32.partialorder %v5050_v23, 0.0  ;;  %v5114_v52 = vmul.f32 0.018, %v5050_v23  ;;  %v6624_v15 = vpop.f32.mrb[28].mxu0 }
 0x240   : > { %v5207_v38 = vadd.f32 %v5206_v3, %v5144_v55  ;;  %v5275_v56 = vadd.f32 %v5274_v14, %v5244_v58  ;;  %5180 = vst [vmem:[%s8929_s23 + $0xd0] sm:$0xff] %v5148_v19  ;;  %vm5085_vm0 = vcmp.gt.f32.partialorder %v5053_v22, 0.0  ;;  %v6432_v1 = vpop.f32.mrb[28].mxu1  ;;  %v4972_v31 = vpop.f32.mrb[29].mxu0  ;;  %v5117_v20 = vmul.f32 0.018, %v5053_v22 }
 0x241   : > { %v5146_v63 = vsel %vm5082_vm15, %v5050_v23, %v5114_v52  ;;  %vm5083_vm1 = vcmp.gt.f32.partialorder %v5051_v59, 0.0  ;;  %v5115_v29 = vmul.f32 0.018, %v5051_v59  ;;  %v2835_v44 = vpop.f32.mrb[29].mxu1  ;;  %v6670_v57 = vadd.f32 %v6624_v15, %v6432_v1  ;;  %v6625_v11 = vpop.f32.mrb[30].mxu0 }
 0x242   : > { %v5276_v35 = vadd.f32 %v5275_v56, %v5245_v30  ;;  %5178 = vst [vmem:[%s8929_s23 + $0xc0] sm:$0xff] %v5146_v63  ;;  %v5208_v4 = vadd.f32 %v5207_v38, %v5145_v12  ;;  %v5247_v34 = vmul.f32 %v5146_v63, %v5146_v63  ;;  %v6433_v53 = vpop.f32.mrb[30].mxu1  ;;  %v5149_v7 = vsel %vm5085_vm0, %v5053_v22, %v5117_v20  ;;  %v4975_v54 = vpop.f32.mrb[31].mxu0 }
 0x243   : > { %v5147_v25 = vsel %vm5083_vm1, %v5051_v59, %v5115_v29  ;;  %v6671_v48 = vadd.f32 %v4972_v31, %v2835_v44  ;;  %v6672_v16 = vadd.f32 %v6625_v11, %v6433_v53  ;;  %v2838_v61 = vpop.f32.mrb[31].mxu1  ;;  %5181 = vst [vmem:[%s8929_s23 + $0xd8] sm:$0xff] %v5149_v7  ;;  %v5056_v27 = vadd.f32 %v6670_v57, %v8921_v8 }
 0x244   : > { %v5209_v13 = vadd.f32 %v5208_v4, %v5146_v63  ;;  %v5277_v60 = vadd.f32 %v5276_v35, %v5246_v43  ;;  %5179 = vst [vmem:[%s8929_s23 + $0xc8] sm:$0xff] %v5147_v25  ;;  %v5248_v0 = vmul.f32 %v5147_v25, %v5147_v25  ;;  %v6673_v42 = vadd.f32 %v4975_v54, %v2838_v61 }
 0x245   : > { %v5054_v46 = vadd.f32 %v6671_v48, %v8921_v8  ;;  %v5057_v2 = vadd.f32 %v6672_v16, %v8921_v8  ;;  %v5249_v17 = vmul.f32 %v5148_v19, %v5148_v19  ;;  %vm5088_vm2 = vcmp.gt.f32.partialorder %v5056_v27, 0.0 }
 0x246   : > { %v5278_v55 = vadd.f32 %v5277_v60, %v5247_v34  ;;  %v5210_v49 = vadd.f32 %v5209_v13, %v5147_v25  ;;  %v5120_v28 = vmul.f32 0.018, %v5056_v27  ;;  %v5055_v5 = vadd.f32 %v6673_v42, %v8921_v8 }
 0x247   : > { %vm5086_vm3 = vcmp.gt.f32.partialorder %v5054_v46, 0.0  ;;  %v5118_v45 = vmul.f32 0.018, %v5054_v46  ;;  %vm5089_vm4 = vcmp.gt.f32.partialorder %v5057_v2, 0.0  ;;  %v5121_v12 = vmul.f32 0.018, %v5057_v2 }
 0x248   : > { %v5211_v36 = vadd.f32 %v5210_v49, %v5148_v19  ;;  %v5279_v47 = vadd.f32 %v5278_v55, %v5248_v0  ;;  %v5152_v51 = vsel %vm5088_vm2, %v5056_v27, %v5120_v28  ;;  %v5250_v62 = vmul.f32 %v5149_v7, %v5149_v7 }
 0x249   : > { %v5150_v32 = vsel %vm5086_vm3, %v5054_v46, %v5118_v45  ;;  %5184 = vst [vmem:[%s8929_s23 + $0xf0] sm:$0xff] %v5152_v51  ;;  %v5153_v24 = vsel %vm5089_vm4, %v5057_v2, %v5121_v12  ;;  %vm5087_vm5 = vcmp.gt.f32.partialorder %v5055_v5, 0.0  ;;  %v5119_v40 = vmul.f32 0.018, %v5055_v5 }
 0x24a   : > { %v5280_v41 = vadd.f32 %v5279_v47, %v5249_v17  ;;  %5182 = vst [vmem:[%s8929_s23 + $0xe0] sm:$0xff] %v5150_v32  ;;  %v5212_v6 = vadd.f32 %v5211_v36, %v5149_v7  ;;  %v5251_v9 = vmul.f32 %v5150_v32, %v5150_v32  ;;  %5185 = vst [vmem:[%s8929_s23 + $0xf8] sm:$0xff] %v5153_v24 }
 0x24b   : > { %v5151_v18 = vsel %vm5087_vm5, %v5055_v5, %v5119_v40  ;;  %v5253_v21 = vmul.f32 %v5152_v51, %v5152_v51  ;;  %v5254_v50 = vmul.f32 %v5153_v24, %v5153_v24 }
 0x24c   : > { %v5213_v37 = vadd.f32 %v5212_v6, %v5150_v32  ;;  %v5281_v26 = vadd.f32 %v5280_v41, %v5250_v62  ;;  %5183 = vst [vmem:[%s8929_s23 + $0xe8] sm:$0xff] %v5151_v18  ;;  %v5252_v10 = vmul.f32 %v5151_v18, %v5151_v18 }
 0x24e   : > { %v5282_v33 = vadd.f32 %v5281_v26, %v5251_v9  ;;  %v5214_v14 = vadd.f32 %v5213_v37, %v5151_v18 }
 0x250   : > { %v5215_v8 = vadd.f32 %v5214_v14, %v5152_v51  ;;  %v5283_v39 = vadd.f32 %v5282_v33, %v5252_v10 }
 0x252   : > { %v5216_v23 = vadd.f32 %v5215_v8, %v5153_v24  ;;  %v5284_v3 = vadd.f32 %v5283_v39, %v5253_v21 }
 0x254   : > { %v5217_v58 = vrot.slane %v5216_v23, 4  ;;  %v5285_v22 = vadd.f32 %v5284_v3, %v5254_v50 }
 0x256   : > { %v5218_v59 = vadd.f32 %v5217_v58, %v5216_v23  ;;  %v5286_v30 = vrot.slane %v5285_v22, 4 }
 0x258   : > { %v5219_v19 = vrot.slane %v5218_v59, 2  ;;  %v5287_v52 = vadd.f32 %v5286_v30, %v5285_v22 }
 0x25a   : > { %v5220_v15 = vadd.f32 %v5219_v19, %v5218_v59  ;;  %v5288_v43 = vrot.slane %v5287_v52, 2 }
 0x25c   : > { %v5221_v38 = vrot.slane %v5220_v15, 1  ;;  %v5289_v56 = vadd.f32 %v5288_v43, %v5287_v52 }
 0x25e   : > { %v5290_v1 = vrot.slane %v5289_v56, 1  ;;  %v5222_v31 = vadd.f32 %v5221_v38, %v5220_v15 }
 0x260   : > { %v5291_v63 = vadd.f32 %v5290_v1, %v5289_v56 }
 0x262   : > { %v5293_v20 = vsel %vm5292_vm6, %v5222_v31, %v5291_v63 }
 0x263   : > { %5294 = vst [vmem:[%s208_s27] sm:$0x3] %v5293_v20 }
 0x264 PF: > { %s15_s15 = sadd.s32 1, %s7103_s15  }
 0x265   : > { %p12_p4 = scmp.ge.s32.totalorder %s15_s15, 4  }
 0x267   :  { %14 = sbr.rel (!%p12_p4) target bundleno = 1 (0x1), region = 84 }

</bundles_post_ra>
